<compile_context>
chip_gen: v5e
topology: v5e:2x2
jax: 0.10.0
libtpu: 0.0.40
codegen_flags: <defaults>
</compile_context>

<pallas_src>
import jax
import jax.numpy as jnp
from jax.experimental import pallas as pl
from jax.experimental.pallas import tpu as pltpu

LANE = 128  # TPU vreg lane width; all head projections are zero-padded to this.


def _ru8(n):
    return ((n + 7) // 8) * 8


# ---------------------------------------------------------------------------
# Kernel 1: fused dual-GRU encoder (question GRU + explanation GRU, one
# recurrence, one MXU matmul per timestep).
# ---------------------------------------------------------------------------
def _dual_gru_kernel(x_ref, wih_ref, whh_ref, bih_ref, bhh_ref, h_ref):
    # x_ref   : [T*B, 2E]   time-major rows, lanes [0,E)=question, [E,2E)=explanation
    # wih_ref : [2E, 3*GW]  block-diagonal fused input weights (gate slabs r|z|n)
    # whh_ref : [GW, 3*GW]  block-diagonal fused hidden weights
    # bih_ref : [1, 3*GW];  bhh_ref : [1, 3*GW]
    # h_ref   : [B, GW]     lanes [0,H)=question hidden, [H,2H)=explanation hidden
    TB = x_ref.shape[0]
    B, GW = h_ref.shape
    T = TB // B

    # Hoisted input projection: ONE matmul for both GRUs and all three gates.
    gi = jnp.dot(x_ref[...], wih_ref[...],
                 preferred_element_type=jnp.float32) + bih_ref[...]
    whh = whh_ref[...]
    bhh = bhh_ref[...]

    h = jnp.zeros((B, GW), dtype=jnp.float32)
    # Static unroll (T is small / known at trace time) so the scheduler can
    # interleave the single per-step matmul with the VPU/EUP gate math.
    for t in range(T):
        g = gi[t * B:(t + 1) * B, :]
        hh = jnp.dot(h, whh, preferred_element_type=jnp.float32) + bhh
        r = jax.nn.sigmoid(g[:, 0:GW] + hh[:, 0:GW])
        z = jax.nn.sigmoid(g[:, GW:2 * GW] + hh[:, GW:2 * GW])
        # PyTorch GRU: n = tanh(gi_n + r * (h @ W_hn + b_hn))
        n = jnp.tanh(g[:, 2 * GW:3 * GW] + r * hh[:, 2 * GW:3 * GW])
        h = (1.0 - z) * n + z * h
    h_ref[...] = h


def dual_gru_last_hidden(x_q_bte, x_e_bte, p):
    """Run both GRUs as one fused recurrence; returns (q_last [B,H], e_last [B,H])."""
    # TODO(synk): the fusion requires both encoders to share (B, T, E, H); pad or
    # fall back to two launches if a config uses different dims/lengths.
    assert x_q_bte.shape == x_e_bte.shape
    B, T, E = x_q_bte.shape
    H = p["qgru_whh"].shape[-1]
    GW = ((2 * H + LANE - 1) // LANE) * LANE  # gate-slab width (>= 2H, lane aligned)
    f32 = jnp.float32

    # Block-diagonal packing: gate slab g occupies lanes [g*GW, (g+1)*GW);
    # question features use the first H lanes of each slab, explanation the next H.
    wih = jnp.zeros((2 * E, 3 * GW), f32)
    whh = jnp.zeros((GW, 3 * GW), f32)
    bih = jnp.zeros((1, 3 * GW), f32)
    bhh = jnp.zeros((1, 3 * GW), f32)
    for g in range(3):
        c = g * GW
        wih = wih.at[0:E, c:c + H].set(p["qgru_wih"][g])
        wih = wih.at[E:2 * E, c + H:c + 2 * H].set(p["egru_wih"][g])
        whh = whh.at[0:H, c:c + H].set(p["qgru_whh"][g])
        whh = whh.at[H:2 * H, c + H:c + 2 * H].set(p["egru_whh"][g])
        bih = bih.at[0, c:c + H].set(p["qgru_bih"][g, 0])
        bih = bih.at[0, c + H:c + 2 * H].set(p["egru_bih"][g, 0])
        bhh = bhh.at[0, c:c + H].set(p["qgru_bhh"][g, 0])
        bhh = bhh.at[0, c + H:c + 2 * H].set(p["egru_bhh"][g, 0])

    def tm_flat(x):  # [B, T, E] -> time-major flattened [T*B, E] (XLA glue)
        return jnp.transpose(x, (1, 0, 2)).reshape(T * B, E)

    x = jnp.concatenate([tm_flat(x_q_bte), tm_flat(x_e_bte)], axis=-1)  # [T*B, 2E]

    h = pl.pallas_call(
        _dual_gru_kernel,
        out_shape=jax.ShapeDtypeStruct((B, GW), f32),
        grid=(1,),
        in_specs=[
            pl.BlockSpec((T * B, 2 * E), lambda i: (0, 0)),
            pl.BlockSpec((2 * E, 3 * GW), lambda i: (0, 0)),
            pl.BlockSpec((GW, 3 * GW), lambda i: (0, 0)),
            pl.BlockSpec((1, 3 * GW), lambda i: (0, 0)),
            pl.BlockSpec((1, 3 * GW), lambda i: (0, 0)),
        ],
        out_specs=pl.BlockSpec((B, GW), lambda i: (0, 0)),
        compiler_params=pltpu.CompilerParams(
            dimension_semantics=("arbitrary",)),
    )(x, wih, whh, bih, bhh)
    return h[:, :H], h[:, H:2 * H]


# ---------------------------------------------------------------------------
# Kernel 2: NewAttention + pooling + q_net/v_net + T_e + classifier, fused and
# batch-tiled (Bblk rows per grid step).
# ---------------------------------------------------------------------------
def _make_att_head_kernel(K, Dv, He, offs):
    o_wv, o_vn, o_te, o_c1, o_c2 = offs

    def kernel(v_ref, q_ref, e_ref, wq_ref, wslab_ref, bias_ref,
               logits_ref, eproj_ref):
        Bblk = q_ref.shape[0]
        bias = bias_ref[...]
        bv, bq, qnb, vnb, teb, c1b, c2b, wl_row = (
            bias[i:i + 1, :] for i in range(8))

        # Fused q projections: attention q-proj (lanes [0,128)) and q_net
        # (lanes [128,256)) in a single MXU pass.
        qall = jnp.dot(q_ref[...], wq_ref[...],
                       preferred_element_type=jnp.float32)             # [Bblk, 256]
        q_proj = jnp.maximum(qall[:, 0:LANE] + bq, 0.0)
        q_repr = jnp.maximum(qall[:, LANE:2 * LANE] + qnb, 0.0)

        # NewAttention: relu(Wv v) * relu(Wq q), combined with w_l via VPU
        # multiply + XLU lane reduce (no degenerate N=1 matmul); the scalar
        # attention bias is softmax-invariant and folded away.
        v3 = v_ref[...]                                                 # [Bblk, K, Dv]
        v2 = v3.reshape(Bblk * K, Dv)
        v_proj = jnp.maximum(
            jnp.dot(v2, wslab_ref[o_wv:o_wv + Dv, :],
                    preferred_element_type=jnp.float32) + bv, 0.0)      # [Bblk*K, 128]
        joint = v_proj.reshape(Bblk, K, LANE) * q_proj[:, None, :]
        att_logits = jnp.sum(joint * wl_row[None, :, :], axis=-1)       # [Bblk, K]
        m = jnp.max(att_logits, axis=-1, keepdims=True)
        ew = jnp.exp(att_logits - m)
        att = ew * pl.reciprocal(jnp.sum(ew, axis=-1, keepdims=True), approx=True)
        v_emb = jnp.sum(att[:, :, None] * v3, axis=1)                   # [Bblk, Dv]

        # Fused head: every projection is zero-padded to 128 output lanes
        # (padded lanes stay exactly zero end-to-end).
        v_repr = jnp.maximum(
            jnp.dot(v_emb, wslab_ref[o_vn:o_vn + Dv, :],
                    preferred_element_type=jnp.float32) + vnb, 0.0)
        vq_repr = q_repr * v_repr
        e_proj = jnp.maximum(
            jnp.dot(e_ref[...], wslab_ref[o_te:o_te + He, :],
                    preferred_element_type=jnp.float32) + teb, 0.0)     # T_e
        joint_vqe = vq_repr * e_proj
        hcls = jnp.maximum(
            jnp.dot(joint_vqe, wslab_ref[o_c1:o_c1 + LANE, :],
                    preferred_element_type=jnp.float32) + c1b, 0.0)
        logits = jnp.dot(hcls, wslab_ref[o_c2:o_c2 + LANE, :],
                         preferred_element_type=jnp.float32) + c2b

        logits_ref[...] = logits                                        # [Bblk,128] lane-dense
        eproj_ref[...] = e_proj

    return kernel


def attention_head(v, q_emb, e_emb, p):
    B, K, Dv = v.shape
    Hq = q_emb.shape[-1]
    He = e_emb.shape[-1]
    Ha = p["att_wv"].shape[1]
    Hj = p["q_net_w"].shape[1]
    Hc = p["cls_w1"].shape[1]
    A = p["cls_w2"].shape[1]
    assert max(Ha, Hj, Hc, A) <= LANE
    f32 = jnp.float32

    # Batch tiling: >= 8 rows per grid step; keep >= 2 blocks when the batch
    # allows it so ("parallel",) can shard across v7x's two TensorCores.
    Bblk = 8
    while Bblk < 64 and Bblk * 4 <= B:
        Bblk *= 2
    Bp = ((B + Bblk - 1) // Bblk) * Bblk
    nb = Bp // Bblk
    if Bp != B:
        v = jnp.pad(v, ((0, Bp - B), (0, 0), (0, 0)))
        q_emb = jnp.pad(q_emb, ((0, Bp - B), (0, 0)))
        e_emb = jnp.pad(e_emb, ((0, Bp - B), (0, 0)))

    # Fused q weight: att_wq || q_net_w -> [Hq, 256], one matmul for both.
    wq_fused = jnp.zeros((Hq, 2 * LANE), f32)
    wq_fused = wq_fused.at[:, :Ha].set(p["att_wq"])
    wq_fused = wq_fused.at[:, LANE:LANE + Hj].set(p["q_net_w"])

    # Single row-stacked weight slab (zero-padded to 128 lanes, 8-aligned rows).
    seg_defs = [("wv", p["att_wv"], _ru8(Dv)), ("vn", p["v_net_w"], _ru8(Dv)),
                ("te", p["T_e_w"], _ru8(He)), ("c1", p["cls_w1"], LANE),
                ("c2", p["cls_w2"], LANE)]
    offs, blocks, rows = {}, [], 0
    for name, w_, r in seg_defs:
        offs[name] = rows
        blocks.append(jnp.zeros((r, LANE), f32)
                      .at[:w_.shape[0], :w_.shape[1]].set(w_))
        rows += r
    wslab = jnp.concatenate(blocks, axis=0)

    # Bias slab: one (8,128) vreg tile holding all biases + the w_l row vector.
    # att_bl (scalar) shifts every region logit equally -> softmax-invariant,
    # folded away exactly.
    bias = jnp.zeros((8, LANE), f32)
    bias = bias.at[0, :Ha].set(p["att_bv"][0])
    bias = bias.at[1, :Ha].set(p["att_bq"][0])
    bias = bias.at[2, :Hj].set(p["q_net_b"][0])
    bias = bias.at[3, :Hj].set(p["v_net_b"][0])
    bias = bias.at[4, :Hj].set(p["T_e_b"][0])
    bias = bias.at[5, :Hc].set(p["cls_b1"][0])
    bias = bias.at[6, :A].set(p["cls_b2"][0])
    bias = bias.at[7, :Ha].set(p["att_wl"][:, 0])

    kernel = _make_att_head_kernel(
        K, Dv, He, (offs["wv"], offs["vn"], offs["te"], offs["c1"], offs["c2"]))

    logits_p, eproj_p = pl.pallas_call(
        kernel,
        out_shape=(jax.ShapeDtypeStruct((Bp, LANE), f32),
                   jax.ShapeDtypeStruct((Bp, LANE), f32)),
        grid=(nb,),
        in_specs=[
            pl.BlockSpec((Bblk, K, Dv), lambda b: (b, 0, 0)),
            pl.BlockSpec((Bblk, Hq), lambda b: (b, 0)),
            pl.BlockSpec((Bblk, He), lambda b: (b, 0)),
            pl.BlockSpec(wq_fused.shape, lambda b: (0, 0)),
            pl.BlockSpec(wslab.shape, lambda b: (0, 0)),
            pl.BlockSpec(bias.shape, lambda b: (0, 0)),
        ],
        out_specs=(pl.BlockSpec((Bblk, LANE), lambda b: (b, 0)),
                   pl.BlockSpec((Bblk, LANE), lambda b: (b, 0))),
        compiler_params=pltpu.CompilerParams(
            dimension_semantics=("parallel",)),  # shard batch blocks across TCs on v7x
    )(v, q_emb, e_emb, wq_fused, wslab, bias)

    vqa_logits = logits_p[:B, :A]
    e_proj = eproj_p[:B, :Hj]
    return vqa_logits, e_proj


# ---------------------------------------------------------------------------
# Full forward
# ---------------------------------------------------------------------------
def vqae2_forward(params, v, q, gt, lengths=None, max_len=None):
    """Pallas implementation of VQAE2.forward.

    `lengths` / `max_len` are accepted for signature parity but -- exactly as in
    the reference forward() -- they are not used (the GRUs run the full padded
    length).
    """
    # TODO(synk): `generator` and `T_vq` are members of VQAE2 but are not used
    # by forward(); they are not implemented here.
    w_emb = params["word_emb"][q]        # [B, Tq, E]  embedding lookups stay in XLA glue
    sentence = params["e_word_emb"][gt]  # [B, Te, E]
    q_emb, e_emb = dual_gru_last_hidden(w_emb, sentence, params)
    vqa_logits, e_proj = attention_head(v, q_emb, e_emb, params)
    vq_proj = None                       # forward() returns vq_proj = None
    return vqa_logits, vq_proj, e_proj


# ---------------------------------------------------------------------------
# Pure-JAX reference for correctness checking
# ---------------------------------------------------------------------------
def _gru_ref(x_bte, wih, whh, bih, bhh):
    B, T, _ = x_bte.shape
    H = whh.shape[-1]
    h = jnp.zeros((B, H), jnp.float32)
    for t in range(T):
        xt = x_bte[:, t, :]
        r = jax.nn.sigmoid(xt @ wih[0] + bih[0] + h @ whh[0] + bhh[0])
        z = jax.nn.sigmoid(xt @ wih[1] + bih[1] + h @ whh[1] + bhh[1])
        n = jnp.tanh(xt @ wih[2] + bih[2] + r * (h @ whh[2] + bhh[2]))
        h = (1.0 - z) * n + z * h
    return h


def _ref_forward(p, v, q, gt):
    q_emb = _gru_ref(p["word_emb"][q], p["qgru_wih"], p["qgru_whh"],
                     p["qgru_bih"], p["qgru_bhh"])
    e_emb = _gru_ref(p["e_word_emb"][gt], p["egru_wih"], p["egru_whh"],
                     p["egru_bih"], p["egru_bhh"])
    vp = jnp.maximum(jnp.einsum("bkd,dh->bkh", v, p["att_wv"]) + p["att_bv"], 0.0)
    qp = jnp.maximum(q_emb @ p["att_wq"] + p["att_bq"], 0.0)
    att_logits = (jnp.einsum("bkh,hi->bki", vp * qp[:, None, :], p["att_wl"])
                  + p["att_bl"])
    att = jax.nn.softmax(att_logits, axis=1)                 # [B, K, 1]
    v_emb = jnp.sum(att * v, axis=1)                         # [B, Dv]
    q_repr = jnp.maximum(q_emb @ p["q_net_w"] + p["q_net_b"], 0.0)
    v_repr = jnp.maximum(v_emb @ p["v_net_w"] + p["v_net_b"], 0.0)
    vq_repr = q_repr * v_repr
    e_proj = jnp.maximum(e_emb @ p["T_e_w"] + p["T_e_b"], 0.0)
    joint = vq_repr * e_proj
    h = jnp.maximum(joint @ p["cls_w1"] + p["cls_b1"], 0.0)
    logits = h @ p["cls_w2"] + p["cls_b2"]
    return logits, None, e_proj


# ---------------------------------------------------------------------------
# Parameter init
# ---------------------------------------------------------------------------
def init_params(key, *, vocab=50, e_vocab=50, E=32, H=32, Dv=32, Ha=32,
                Hj=32, Hc=64, A=10):
    ks = iter(jax.random.split(key, 48))

    def w(shape, scale=0.1):
        return (scale * jax.random.normal(next(ks), shape)).astype(jnp.float32)

    return {
        "word_emb": w((vocab, E)),
        "e_word_emb": w((e_vocab, E)),
        # GRU weights stored per-gate (gate order r, z, n).
        "qgru_wih": w((3, E, H)), "qgru_whh": w((3, H, H)),
        "qgru_bih": w((3, 1, H)), "qgru_bhh": w((3, 1, H)),
        "egru_wih": w((3, E, H)), "egru_whh": w((3, H, H)),
        "egru_bih": w((3, 1, H)), "egru_bhh": w((3, 1, H)),
        # v_att (NewAttention)
        "att_wv": w((Dv, Ha)), "att_bv": w((1, Ha)),
        "att_wq": w((H, Ha)), "att_bq": w((1, Ha)),
        "att_wl": w((Ha, 1)), "att_bl": w((1, 1)),
        # q_net / v_net (FCNet = Linear + ReLU)
        "q_net_w": w((H, Hj)), "q_net_b": w((1, Hj)),
        "v_net_w": w((Dv, Hj)), "v_net_b": w((1, Hj)),
        # T_e (FCNet = Linear + ReLU)
        "T_e_w": w((H, Hj)), "T_e_b": w((1, Hj)),
        # classifier (Linear + ReLU + Linear)
        "cls_w1": w((Hj, Hc)), "cls_b1": w((1, Hc)),
        "cls_w2": w((Hc, A)), "cls_b2": w((1, A)),
    }


if __name__ == "__main__":
    # B=12 exercises both the batch-tile padding (12 -> 16) and a 2-block grid.
    B, K, Dv, Tq, Te, vocab = 12, 16, 32, 8, 8, 50

    params = init_params(jax.random.PRNGKey(0))
    k1, k2, k3 = jax.random.split(jax.random.PRNGKey(0), 3)
    v = jax.random.normal(k1, (B, K, Dv), dtype=jnp.float32)
    q = jax.random.randint(k2, (B, Tq), 0, vocab, dtype=jnp.int32)
    gt = jax.random.randint(k3, (B, Te), 0, vocab, dtype=jnp.int32)
    lengths = jnp.full((B,), Tq, dtype=jnp.int32)
    max_len = Tq

    fwd = jax.jit(lambda v, q, gt: vqae2_forward(params, v, q, gt, lengths, max_len))
    vqa_logits, vq_proj, e_proj = fwd(v, q, gt)
    jax.block_until_ready((vqa_logits, e_proj))

    # correctness check against a pure-JAX reference of the same forward pass
    ref_logits, ref_vqproj, ref_eproj = _ref_forward(params, v, q, gt)
    assert vq_proj is None and ref_vqproj is None
    # e_proj path is exact f32; the logits path goes through the approx-EUP
    # softmax reciprocal, so it gets a slightly looser tolerance.
    assert jnp.allclose(e_proj, ref_eproj, rtol=1e-3, atol=1e-3)
    assert jnp.allclose(vqa_logits, ref_logits, rtol=1e-2, atol=1e-2)

    print("KERNEL_OK")
</pallas_src>

<mosaic_0001>
module attributes {stable_mosaic.version = 11 : i64} {
  func.func @_dual_gru_kernel(%arg0: i32, %arg1: memref<96x64xf32, #tpu.memory_space<vmem>>, %arg2: memref<64x384xf32, #tpu.memory_space<vmem>>, %arg3: memref<128x384xf32, #tpu.memory_space<vmem>>, %arg4: memref<1x384xf32, #tpu.memory_space<vmem>>, %arg5: memref<1x384xf32, #tpu.memory_space<vmem>>, %arg6: memref<12x128xf32, #tpu.memory_space<vmem>>) attributes {dimension_semantics = [#tpu.dimension_semantics<arbitrary>], iteration_bounds = array<i64: 1>, scalar_prefetch = 0 : i64, scratch_operands = 0 : i64, tpu.core_type = #tpu.core_type<tc>, window_params = [{pipeline_mode = #tpu.pipeline_mode<synchronous>, transform_indices = @transform_0, window_bounds = array<i64: 96, 64>}, {pipeline_mode = #tpu.pipeline_mode<synchronous>, transform_indices = @transform_1, window_bounds = array<i64: 64, 384>}, {pipeline_mode = #tpu.pipeline_mode<synchronous>, transform_indices = @transform_2, window_bounds = array<i64: 128, 384>}, {pipeline_mode = #tpu.pipeline_mode<synchronous>, transform_indices = @transform_3, window_bounds = array<i64: 1, 384>}, {pipeline_mode = #tpu.pipeline_mode<synchronous>, transform_indices = @transform_4, window_bounds = array<i64: 1, 384>}, {pipeline_mode = #tpu.pipeline_mode<synchronous>, transform_indices = @transform_5, window_bounds = array<i64: 12, 128>}]} {
    %c0 = arith.constant 0 : index
    %c0_0 = arith.constant 0 : index
    %0 = vector.load %arg1[%c0, %c0_0] : memref<96x64xf32, #tpu.memory_space<vmem>>, vector<96x64xf32>
    %c0_1 = arith.constant 0 : index
    %c0_2 = arith.constant 0 : index
    %1 = vector.load %arg2[%c0_1, %c0_2] : memref<64x384xf32, #tpu.memory_space<vmem>>, vector<64x384xf32>
    %cst = arith.constant dense<0.000000e+00> : vector<96x384xf32>
    %2 = tpu.matmul %0, %1, %cst {dimension_numbers = #tpu.dot_dimension_numbers<[1], [0], [0], [1], [0, 0, 1, 1], [], []>} : vector<96x64xf32>, vector<64x384xf32>, vector<96x384xf32> -> vector<96x384xf32>
    %c0_3 = arith.constant 0 : index
    %c0_4 = arith.constant 0 : index
    %3 = vector.load %arg4[%c0_3, %c0_4] : memref<1x384xf32, #tpu.memory_space<vmem>>, vector<1x384xf32>
    %4 = vector.broadcast %3 : vector<1x384xf32> to vector<96x384xf32>
    %5 = arith.addf %2, %4 : vector<96x384xf32>
    %c0_5 = arith.constant 0 : index
    %c0_6 = arith.constant 0 : index
    %6 = vector.load %arg3[%c0_5, %c0_6] : memref<128x384xf32, #tpu.memory_space<vmem>>, vector<128x384xf32>
    %c0_7 = arith.constant 0 : index
    %c0_8 = arith.constant 0 : index
    %7 = vector.load %arg5[%c0_7, %c0_8] : memref<1x384xf32, #tpu.memory_space<vmem>>, vector<1x384xf32>
    %cst_9 = arith.constant 0.000000e+00 : f32
    %8 = vector.broadcast %cst_9 : f32 to vector<12x128xf32>
    %9 = vector.extract_strided_slice %5 {offsets = [0, 0], sizes = [12, 384], strides = [1, 1]} : vector<96x384xf32> to vector<12x384xf32>
    %cst_10 = arith.constant dense<0.000000e+00> : vector<12x384xf32>
    %10 = tpu.matmul %8, %6, %cst_10 {dimension_numbers = #tpu.dot_dimension_numbers<[1], [0], [0], [1], [0, 0, 1, 1], [], []>} : vector<12x128xf32>, vector<128x384xf32>, vector<12x384xf32> -> vector<12x384xf32>
    %11 = vector.broadcast %7 : vector<1x384xf32> to vector<12x384xf32>
    %12 = arith.addf %10, %11 : vector<12x384xf32>
    %13 = vector.extract_strided_slice %9 {offsets = [0, 0], sizes = [12, 128], strides = [1, 1]} : vector<12x384xf32> to vector<12x128xf32>
    %14 = vector.extract_strided_slice %12 {offsets = [0, 0], sizes = [12, 128], strides = [1, 1]} : vector<12x384xf32> to vector<12x128xf32>
    %15 = arith.addf %13, %14 : vector<12x128xf32>
    %16 = arith.negf %15 : vector<12x128xf32>
    %17 = math.exp %16 : vector<12x128xf32>
    %cst_11 = arith.constant 1.000000e+00 : f32
    %18 = vector.broadcast %cst_11 : f32 to vector<12x128xf32>
    %19 = arith.addf %18, %17 : vector<12x128xf32>
    %20 = arith.divf %18, %19 : vector<12x128xf32>
    %21 = vector.extract_strided_slice %9 {offsets = [0, 128], sizes = [12, 128], strides = [1, 1]} : vector<12x384xf32> to vector<12x128xf32>
    %22 = vector.extract_strided_slice %12 {offsets = [0, 128], sizes = [12, 128], strides = [1, 1]} : vector<12x384xf32> to vector<12x128xf32>
    %23 = arith.addf %21, %22 : vector<12x128xf32>
    %24 = arith.negf %23 : vector<12x128xf32>
    %25 = math.exp %24 : vector<12x128xf32>
    %cst_12 = arith.constant 1.000000e+00 : f32
    %26 = vector.broadcast %cst_12 : f32 to vector<12x128xf32>
    %27 = arith.addf %26, %25 : vector<12x128xf32>
    %28 = arith.divf %26, %27 : vector<12x128xf32>
    %29 = vector.extract_strided_slice %9 {offsets = [0, 256], sizes = [12, 128], strides = [1, 1]} : vector<12x384xf32> to vector<12x128xf32>
    %30 = vector.extract_strided_slice %12 {offsets = [0, 256], sizes = [12, 128], strides = [1, 1]} : vector<12x384xf32> to vector<12x128xf32>
    %31 = arith.mulf %20, %30 : vector<12x128xf32>
    %32 = arith.addf %29, %31 : vector<12x128xf32>
    %33 = math.tanh %32 : vector<12x128xf32>
    %cst_13 = arith.constant 1.000000e+00 : f32
    %34 = vector.broadcast %cst_13 : f32 to vector<12x128xf32>
    %35 = arith.subf %34, %28 : vector<12x128xf32>
    %36 = arith.mulf %35, %33 : vector<12x128xf32>
    %37 = arith.mulf %28, %8 : vector<12x128xf32>
    %38 = arith.addf %36, %37 : vector<12x128xf32>
    %39 = vector.extract_strided_slice %5 {offsets = [12, 0], sizes = [12, 384], strides = [1, 1]} : vector<96x384xf32> to vector<12x384xf32>
    %cst_14 = arith.constant dense<0.000000e+00> : vector<12x384xf32>
    %40 = tpu.matmul %38, %6, %cst_14 {dimension_numbers = #tpu.dot_dimension_numbers<[1], [0], [0], [1], [0, 0, 1, 1], [], []>} : vector<12x128xf32>, vector<128x384xf32>, vector<12x384xf32> -> vector<12x384xf32>
    %41 = vector.broadcast %7 : vector<1x384xf32> to vector<12x384xf32>
    %42 = arith.addf %40, %41 : vector<12x384xf32>
    %43 = vector.extract_strided_slice %39 {offsets = [0, 0], sizes = [12, 128], strides = [1, 1]} : vector<12x384xf32> to vector<12x128xf32>
    %44 = vector.extract_strided_slice %42 {offsets = [0, 0], sizes = [12, 128], strides = [1, 1]} : vector<12x384xf32> to vector<12x128xf32>
    %45 = arith.addf %43, %44 : vector<12x128xf32>
    %46 = arith.negf %45 : vector<12x128xf32>
    %47 = math.exp %46 : vector<12x128xf32>
    %cst_15 = arith.constant 1.000000e+00 : f32
    %48 = vector.broadcast %cst_15 : f32 to vector<12x128xf32>
    %49 = arith.addf %48, %47 : vector<12x128xf32>
    %50 = arith.divf %48, %49 : vector<12x128xf32>
    %51 = vector.extract_strided_slice %39 {offsets = [0, 128], sizes = [12, 128], strides = [1, 1]} : vector<12x384xf32> to vector<12x128xf32>
    %52 = vector.extract_strided_slice %42 {offsets = [0, 128], sizes = [12, 128], strides = [1, 1]} : vector<12x384xf32> to vector<12x128xf32>
    %53 = arith.addf %51, %52 : vector<12x128xf32>
    %54 = arith.negf %53 : vector<12x128xf32>
    %55 = math.exp %54 : vector<12x128xf32>
    %cst_16 = arith.constant 1.000000e+00 : f32
    %56 = vector.broadcast %cst_16 : f32 to vector<12x128xf32>
    %57 = arith.addf %56, %55 : vector<12x128xf32>
    %58 = arith.divf %56, %57 : vector<12x128xf32>
    %59 = vector.extract_strided_slice %39 {offsets = [0, 256], sizes = [12, 128], strides = [1, 1]} : vector<12x384xf32> to vector<12x128xf32>
    %60 = vector.extract_strided_slice %42 {offsets = [0, 256], sizes = [12, 128], strides = [1, 1]} : vector<12x384xf32> to vector<12x128xf32>
    %61 = arith.mulf %50, %60 : vector<12x128xf32>
    %62 = arith.addf %59, %61 : vector<12x128xf32>
    %63 = math.tanh %62 : vector<12x128xf32>
    %cst_17 = arith.constant 1.000000e+00 : f32
    %64 = vector.broadcast %cst_17 : f32 to vector<12x128xf32>
    %65 = arith.subf %64, %58 : vector<12x128xf32>
    %66 = arith.mulf %65, %63 : vector<12x128xf32>
    %67 = arith.mulf %58, %38 : vector<12x128xf32>
    %68 = arith.addf %66, %67 : vector<12x128xf32>
    %69 = vector.extract_strided_slice %5 {offsets = [24, 0], sizes = [12, 384], strides = [1, 1]} : vector<96x384xf32> to vector<12x384xf32>
    %cst_18 = arith.constant dense<0.000000e+00> : vector<12x384xf32>
    %70 = tpu.matmul %68, %6, %cst_18 {dimension_numbers = #tpu.dot_dimension_numbers<[1], [0], [0], [1], [0, 0, 1, 1], [], []>} : vector<12x128xf32>, vector<128x384xf32>, vector<12x384xf32> -> vector<12x384xf32>
    %71 = vector.broadcast %7 : vector<1x384xf32> to vector<12x384xf32>
    %72 = arith.addf %70, %71 : vector<12x384xf32>
    %73 = vector.extract_strided_slice %69 {offsets = [0, 0], sizes = [12, 128], strides = [1, 1]} : vector<12x384xf32> to vector<12x128xf32>
    %74 = vector.extract_strided_slice %72 {offsets = [0, 0], sizes = [12, 128], strides = [1, 1]} : vector<12x384xf32> to vector<12x128xf32>
    %75 = arith.addf %73, %74 : vector<12x128xf32>
    %76 = arith.negf %75 : vector<12x128xf32>
    %77 = math.exp %76 : vector<12x128xf32>
    %cst_19 = arith.constant 1.000000e+00 : f32
    %78 = vector.broadcast %cst_19 : f32 to vector<12x128xf32>
    %79 = arith.addf %78, %77 : vector<12x128xf32>
    %80 = arith.divf %78, %79 : vector<12x128xf32>
    %81 = vector.extract_strided_slice %69 {offsets = [0, 128], sizes = [12, 128], strides = [1, 1]} : vector<12x384xf32> to vector<12x128xf32>
    %82 = vector.extract_strided_slice %72 {offsets = [0, 128], sizes = [12, 128], strides = [1, 1]} : vector<12x384xf32> to vector<12x128xf32>
    %83 = arith.addf %81, %82 : vector<12x128xf32>
    %84 = arith.negf %83 : vector<12x128xf32>
    %85 = math.exp %84 : vector<12x128xf32>
    %cst_20 = arith.constant 1.000000e+00 : f32
    %86 = vector.broadcast %cst_20 : f32 to vector<12x128xf32>
    %87 = arith.addf %86, %85 : vector<12x128xf32>
    %88 = arith.divf %86, %87 : vector<12x128xf32>
    %89 = vector.extract_strided_slice %69 {offsets = [0, 256], sizes = [12, 128], strides = [1, 1]} : vector<12x384xf32> to vector<12x128xf32>
    %90 = vector.extract_strided_slice %72 {offsets = [0, 256], sizes = [12, 128], strides = [1, 1]} : vector<12x384xf32> to vector<12x128xf32>
    %91 = arith.mulf %80, %90 : vector<12x128xf32>
    %92 = arith.addf %89, %91 : vector<12x128xf32>
    %93 = math.tanh %92 : vector<12x128xf32>
    %cst_21 = arith.constant 1.000000e+00 : f32
    %94 = vector.broadcast %cst_21 : f32 to vector<12x128xf32>
    %95 = arith.subf %94, %88 : vector<12x128xf32>
    %96 = arith.mulf %95, %93 : vector<12x128xf32>
    %97 = arith.mulf %88, %68 : vector<12x128xf32>
    %98 = arith.addf %96, %97 : vector<12x128xf32>
    %99 = vector.extract_strided_slice %5 {offsets = [36, 0], sizes = [12, 384], strides = [1, 1]} : vector<96x384xf32> to vector<12x384xf32>
    %cst_22 = arith.constant dense<0.000000e+00> : vector<12x384xf32>
    %100 = tpu.matmul %98, %6, %cst_22 {dimension_numbers = #tpu.dot_dimension_numbers<[1], [0], [0], [1], [0, 0, 1, 1], [], []>} : vector<12x128xf32>, vector<128x384xf32>, vector<12x384xf32> -> vector<12x384xf32>
    %101 = vector.broadcast %7 : vector<1x384xf32> to vector<12x384xf32>
    %102 = arith.addf %100, %101 : vector<12x384xf32>
    %103 = vector.extract_strided_slice %99 {offsets = [0, 0], sizes = [12, 128], strides = [1, 1]} : vector<12x384xf32> to vector<12x128xf32>
    %104 = vector.extract_strided_slice %102 {offsets = [0, 0], sizes = [12, 128], strides = [1, 1]} : vector<12x384xf32> to vector<12x128xf32>
    %105 = arith.addf %103, %104 : vector<12x128xf32>
    %106 = arith.negf %105 : vector<12x128xf32>
    %107 = math.exp %106 : vector<12x128xf32>
    %cst_23 = arith.constant 1.000000e+00 : f32
    %108 = vector.broadcast %cst_23 : f32 to vector<12x128xf32>
    %109 = arith.addf %108, %107 : vector<12x128xf32>
    %110 = arith.divf %108, %109 : vector<12x128xf32>
    %111 = vector.extract_strided_slice %99 {offsets = [0, 128], sizes = [12, 128], strides = [1, 1]} : vector<12x384xf32> to vector<12x128xf32>
    %112 = vector.extract_strided_slice %102 {offsets = [0, 128], sizes = [12, 128], strides = [1, 1]} : vector<12x384xf32> to vector<12x128xf32>
    %113 = arith.addf %111, %112 : vector<12x128xf32>
    %114 = arith.negf %113 : vector<12x128xf32>
    %115 = math.exp %114 : vector<12x128xf32>
    %cst_24 = arith.constant 1.000000e+00 : f32
    %116 = vector.broadcast %cst_24 : f32 to vector<12x128xf32>
    %117 = arith.addf %116, %115 : vector<12x128xf32>
    %118 = arith.divf %116, %117 : vector<12x128xf32>
    %119 = vector.extract_strided_slice %99 {offsets = [0, 256], sizes = [12, 128], strides = [1, 1]} : vector<12x384xf32> to vector<12x128xf32>
    %120 = vector.extract_strided_slice %102 {offsets = [0, 256], sizes = [12, 128], strides = [1, 1]} : vector<12x384xf32> to vector<12x128xf32>
    %121 = arith.mulf %110, %120 : vector<12x128xf32>
    %122 = arith.addf %119, %121 : vector<12x128xf32>
    %123 = math.tanh %122 : vector<12x128xf32>
    %cst_25 = arith.constant 1.000000e+00 : f32
    %124 = vector.broadcast %cst_25 : f32 to vector<12x128xf32>
    %125 = arith.subf %124, %118 : vector<12x128xf32>
    %126 = arith.mulf %125, %123 : vector<12x128xf32>
    %127 = arith.mulf %118, %98 : vector<12x128xf32>
    %128 = arith.addf %126, %127 : vector<12x128xf32>
    %129 = vector.extract_strided_slice %5 {offsets = [48, 0], sizes = [12, 384], strides = [1, 1]} : vector<96x384xf32> to vector<12x384xf32>
    %cst_26 = arith.constant dense<0.000000e+00> : vector<12x384xf32>
    %130 = tpu.matmul %128, %6, %cst_26 {dimension_numbers = #tpu.dot_dimension_numbers<[1], [0], [0], [1], [0, 0, 1, 1], [], []>} : vector<12x128xf32>, vector<128x384xf32>, vector<12x384xf32> -> vector<12x384xf32>
    %131 = vector.broadcast %7 : vector<1x384xf32> to vector<12x384xf32>
    %132 = arith.addf %130, %131 : vector<12x384xf32>
    %133 = vector.extract_strided_slice %129 {offsets = [0, 0], sizes = [12, 128], strides = [1, 1]} : vector<12x384xf32> to vector<12x128xf32>
    %134 = vector.extract_strided_slice %132 {offsets = [0, 0], sizes = [12, 128], strides = [1, 1]} : vector<12x384xf32> to vector<12x128xf32>
    %135 = arith.addf %133, %134 : vector<12x128xf32>
    %136 = arith.negf %135 : vector<12x128xf32>
    %137 = math.exp %136 : vector<12x128xf32>
    %cst_27 = arith.constant 1.000000e+00 : f32
    %138 = vector.broadcast %cst_27 : f32 to vector<12x128xf32>
    %139 = arith.addf %138, %137 : vector<12x128xf32>
    %140 = arith.divf %138, %139 : vector<12x128xf32>
    %141 = vector.extract_strided_slice %129 {offsets = [0, 128], sizes = [12, 128], strides = [1, 1]} : vector<12x384xf32> to vector<12x128xf32>
    %142 = vector.extract_strided_slice %132 {offsets = [0, 128], sizes = [12, 128], strides = [1, 1]} : vector<12x384xf32> to vector<12x128xf32>
    %143 = arith.addf %141, %142 : vector<12x128xf32>
    %144 = arith.negf %143 : vector<12x128xf32>
    %145 = math.exp %144 : vector<12x128xf32>
    %cst_28 = arith.constant 1.000000e+00 : f32
    %146 = vector.broadcast %cst_28 : f32 to vector<12x128xf32>
    %147 = arith.addf %146, %145 : vector<12x128xf32>
    %148 = arith.divf %146, %147 : vector<12x128xf32>
    %149 = vector.extract_strided_slice %129 {offsets = [0, 256], sizes = [12, 128], strides = [1, 1]} : vector<12x384xf32> to vector<12x128xf32>
    %150 = vector.extract_strided_slice %132 {offsets = [0, 256], sizes = [12, 128], strides = [1, 1]} : vector<12x384xf32> to vector<12x128xf32>
    %151 = arith.mulf %140, %150 : vector<12x128xf32>
    %152 = arith.addf %149, %151 : vector<12x128xf32>
    %153 = math.tanh %152 : vector<12x128xf32>
    %cst_29 = arith.constant 1.000000e+00 : f32
    %154 = vector.broadcast %cst_29 : f32 to vector<12x128xf32>
    %155 = arith.subf %154, %148 : vector<12x128xf32>
    %156 = arith.mulf %155, %153 : vector<12x128xf32>
    %157 = arith.mulf %148, %128 : vector<12x128xf32>
    %158 = arith.addf %156, %157 : vector<12x128xf32>
    %159 = vector.extract_strided_slice %5 {offsets = [60, 0], sizes = [12, 384], strides = [1, 1]} : vector<96x384xf32> to vector<12x384xf32>
    %cst_30 = arith.constant dense<0.000000e+00> : vector<12x384xf32>
    %160 = tpu.matmul %158, %6, %cst_30 {dimension_numbers = #tpu.dot_dimension_numbers<[1], [0], [0], [1], [0, 0, 1, 1], [], []>} : vector<12x128xf32>, vector<128x384xf32>, vector<12x384xf32> -> vector<12x384xf32>
    %161 = vector.broadcast %7 : vector<1x384xf32> to vector<12x384xf32>
    %162 = arith.addf %160, %161 : vector<12x384xf32>
    %163 = vector.extract_strided_slice %159 {offsets = [0, 0], sizes = [12, 128], strides = [1, 1]} : vector<12x384xf32> to vector<12x128xf32>
    %164 = vector.extract_strided_slice %162 {offsets = [0, 0], sizes = [12, 128], strides = [1, 1]} : vector<12x384xf32> to vector<12x128xf32>
    %165 = arith.addf %163, %164 : vector<12x128xf32>
    %166 = arith.negf %165 : vector<12x128xf32>
    %167 = math.exp %166 : vector<12x128xf32>
    %cst_31 = arith.constant 1.000000e+00 : f32
    %168 = vector.broadcast %cst_31 : f32 to vector<12x128xf32>
    %169 = arith.addf %168, %167 : vector<12x128xf32>
    %170 = arith.divf %168, %169 : vector<12x128xf32>
    %171 = vector.extract_strided_slice %159 {offsets = [0, 128], sizes = [12, 128], strides = [1, 1]} : vector<12x384xf32> to vector<12x128xf32>
    %172 = vector.extract_strided_slice %162 {offsets = [0, 128], sizes = [12, 128], strides = [1, 1]} : vector<12x384xf32> to vector<12x128xf32>
    %173 = arith.addf %171, %172 : vector<12x128xf32>
    %174 = arith.negf %173 : vector<12x128xf32>
    %175 = math.exp %174 : vector<12x128xf32>
    %cst_32 = arith.constant 1.000000e+00 : f32
    %176 = vector.broadcast %cst_32 : f32 to vector<12x128xf32>
    %177 = arith.addf %176, %175 : vector<12x128xf32>
    %178 = arith.divf %176, %177 : vector<12x128xf32>
    %179 = vector.extract_strided_slice %159 {offsets = [0, 256], sizes = [12, 128], strides = [1, 1]} : vector<12x384xf32> to vector<12x128xf32>
    %180 = vector.extract_strided_slice %162 {offsets = [0, 256], sizes = [12, 128], strides = [1, 1]} : vector<12x384xf32> to vector<12x128xf32>
    %181 = arith.mulf %170, %180 : vector<12x128xf32>
    %182 = arith.addf %179, %181 : vector<12x128xf32>
    %183 = math.tanh %182 : vector<12x128xf32>
    %cst_33 = arith.constant 1.000000e+00 : f32
    %184 = vector.broadcast %cst_33 : f32 to vector<12x128xf32>
    %185 = arith.subf %184, %178 : vector<12x128xf32>
    %186 = arith.mulf %185, %183 : vector<12x128xf32>
    %187 = arith.mulf %178, %158 : vector<12x128xf32>
    %188 = arith.addf %186, %187 : vector<12x128xf32>
    %189 = vector.extract_strided_slice %5 {offsets = [72, 0], sizes = [12, 384], strides = [1, 1]} : vector<96x384xf32> to vector<12x384xf32>
    %cst_34 = arith.constant dense<0.000000e+00> : vector<12x384xf32>
    %190 = tpu.matmul %188, %6, %cst_34 {dimension_numbers = #tpu.dot_dimension_numbers<[1], [0], [0], [1], [0, 0, 1, 1], [], []>} : vector<12x128xf32>, vector<128x384xf32>, vector<12x384xf32> -> vector<12x384xf32>
    %191 = vector.broadcast %7 : vector<1x384xf32> to vector<12x384xf32>
    %192 = arith.addf %190, %191 : vector<12x384xf32>
    %193 = vector.extract_strided_slice %189 {offsets = [0, 0], sizes = [12, 128], strides = [1, 1]} : vector<12x384xf32> to vector<12x128xf32>
    %194 = vector.extract_strided_slice %192 {offsets = [0, 0], sizes = [12, 128], strides = [1, 1]} : vector<12x384xf32> to vector<12x128xf32>
    %195 = arith.addf %193, %194 : vector<12x128xf32>
    %196 = arith.negf %195 : vector<12x128xf32>
    %197 = math.exp %196 : vector<12x128xf32>
    %cst_35 = arith.constant 1.000000e+00 : f32
    %198 = vector.broadcast %cst_35 : f32 to vector<12x128xf32>
    %199 = arith.addf %198, %197 : vector<12x128xf32>
    %200 = arith.divf %198, %199 : vector<12x128xf32>
    %201 = vector.extract_strided_slice %189 {offsets = [0, 128], sizes = [12, 128], strides = [1, 1]} : vector<12x384xf32> to vector<12x128xf32>
    %202 = vector.extract_strided_slice %192 {offsets = [0, 128], sizes = [12, 128], strides = [1, 1]} : vector<12x384xf32> to vector<12x128xf32>
    %203 = arith.addf %201, %202 : vector<12x128xf32>
    %204 = arith.negf %203 : vector<12x128xf32>
    %205 = math.exp %204 : vector<12x128xf32>
    %cst_36 = arith.constant 1.000000e+00 : f32
    %206 = vector.broadcast %cst_36 : f32 to vector<12x128xf32>
    %207 = arith.addf %206, %205 : vector<12x128xf32>
    %208 = arith.divf %206, %207 : vector<12x128xf32>
    %209 = vector.extract_strided_slice %189 {offsets = [0, 256], sizes = [12, 128], strides = [1, 1]} : vector<12x384xf32> to vector<12x128xf32>
    %210 = vector.extract_strided_slice %192 {offsets = [0, 256], sizes = [12, 128], strides = [1, 1]} : vector<12x384xf32> to vector<12x128xf32>
    %211 = arith.mulf %200, %210 : vector<12x128xf32>
    %212 = arith.addf %209, %211 : vector<12x128xf32>
    %213 = math.tanh %212 : vector<12x128xf32>
    %cst_37 = arith.constant 1.000000e+00 : f32
    %214 = vector.broadcast %cst_37 : f32 to vector<12x128xf32>
    %215 = arith.subf %214, %208 : vector<12x128xf32>
    %216 = arith.mulf %215, %213 : vector<12x128xf32>
    %217 = arith.mulf %208, %188 : vector<12x128xf32>
    %218 = arith.addf %216, %217 : vector<12x128xf32>
    %219 = vector.extract_strided_slice %5 {offsets = [84, 0], sizes = [12, 384], strides = [1, 1]} : vector<96x384xf32> to vector<12x384xf32>
    %cst_38 = arith.constant dense<0.000000e+00> : vector<12x384xf32>
    %220 = tpu.matmul %218, %6, %cst_38 {dimension_numbers = #tpu.dot_dimension_numbers<[1], [0], [0], [1], [0, 0, 1, 1], [], []>} : vector<12x128xf32>, vector<128x384xf32>, vector<12x384xf32> -> vector<12x384xf32>
    %221 = vector.broadcast %7 : vector<1x384xf32> to vector<12x384xf32>
    %222 = arith.addf %220, %221 : vector<12x384xf32>
    %223 = vector.extract_strided_slice %219 {offsets = [0, 0], sizes = [12, 128], strides = [1, 1]} : vector<12x384xf32> to vector<12x128xf32>
    %224 = vector.extract_strided_slice %222 {offsets = [0, 0], sizes = [12, 128], strides = [1, 1]} : vector<12x384xf32> to vector<12x128xf32>
    %225 = arith.addf %223, %224 : vector<12x128xf32>
    %226 = arith.negf %225 : vector<12x128xf32>
    %227 = math.exp %226 : vector<12x128xf32>
    %cst_39 = arith.constant 1.000000e+00 : f32
    %228 = vector.broadcast %cst_39 : f32 to vector<12x128xf32>
    %229 = arith.addf %228, %227 : vector<12x128xf32>
    %230 = arith.divf %228, %229 : vector<12x128xf32>
    %231 = vector.extract_strided_slice %219 {offsets = [0, 128], sizes = [12, 128], strides = [1, 1]} : vector<12x384xf32> to vector<12x128xf32>
    %232 = vector.extract_strided_slice %222 {offsets = [0, 128], sizes = [12, 128], strides = [1, 1]} : vector<12x384xf32> to vector<12x128xf32>
    %233 = arith.addf %231, %232 : vector<12x128xf32>
    %234 = arith.negf %233 : vector<12x128xf32>
    %235 = math.exp %234 : vector<12x128xf32>
    %cst_40 = arith.constant 1.000000e+00 : f32
    %236 = vector.broadcast %cst_40 : f32 to vector<12x128xf32>
    %237 = arith.addf %236, %235 : vector<12x128xf32>
    %238 = arith.divf %236, %237 : vector<12x128xf32>
    %239 = vector.extract_strided_slice %219 {offsets = [0, 256], sizes = [12, 128], strides = [1, 1]} : vector<12x384xf32> to vector<12x128xf32>
    %240 = vector.extract_strided_slice %222 {offsets = [0, 256], sizes = [12, 128], strides = [1, 1]} : vector<12x384xf32> to vector<12x128xf32>
    %241 = arith.mulf %230, %240 : vector<12x128xf32>
    %242 = arith.addf %239, %241 : vector<12x128xf32>
    %243 = math.tanh %242 : vector<12x128xf32>
    %cst_41 = arith.constant 1.000000e+00 : f32
    %244 = vector.broadcast %cst_41 : f32 to vector<12x128xf32>
    %245 = arith.subf %244, %238 : vector<12x128xf32>
    %246 = arith.mulf %245, %243 : vector<12x128xf32>
    %247 = arith.mulf %238, %218 : vector<12x128xf32>
    %248 = arith.addf %246, %247 : vector<12x128xf32>
    %c0_42 = arith.constant 0 : index
    %c0_43 = arith.constant 0 : index
    %249 = vector.load %arg6[%c0_42, %c0_43] : memref<12x128xf32, #tpu.memory_space<vmem>>, vector<12x128xf32>
    tpu.vector_store %arg6[%c0_42, %c0_43], %248 {strides = array<i32>} : memref<12x128xf32, #tpu.memory_space<vmem>>, vector<12x128xf32>,
    return
  }
  func.func @transform_0(%arg0: i32) -> (i32, i32) {
    %c0_i32 = arith.constant 0 : i32
    %c0_i32_0 = arith.constant 0 : i32
    %c0_i32_1 = arith.constant 0 : i32
    return %c0_i32, %c0_i32_0 : i32, i32
  }
  func.func @transform_1(%arg0: i32) -> (i32, i32) {
    %c0_i32 = arith.constant 0 : i32
    %c0_i32_0 = arith.constant 0 : i32
    %c0_i32_1 = arith.constant 0 : i32
    return %c0_i32, %c0_i32_0 : i32, i32
  }
  func.func @transform_2(%arg0: i32) -> (i32, i32) {
    %c0_i32 = arith.constant 0 : i32
    %c0_i32_0 = arith.constant 0 : i32
    %c0_i32_1 = arith.constant 0 : i32
    return %c0_i32, %c0_i32_0 : i32, i32
  }
  func.func @transform_3(%arg0: i32) -> (i32, i32) {
    %c0_i32 = arith.constant 0 : i32
    %c0_i32_0 = arith.constant 0 : i32
    %c0_i32_1 = arith.constant 0 : i32
    return %c0_i32, %c0_i32_0 : i32, i32
  }
  func.func @transform_4(%arg0: i32) -> (i32, i32) {
    %c0_i32 = arith.constant 0 : i32
    %c0_i32_0 = arith.constant 0 : i32
    %c0_i32_1 = arith.constant 0 : i32
    return %c0_i32, %c0_i32_0 : i32, i32
  }
  func.func @transform_5(%arg0: i32) -> (i32, i32) {
    %c0_i32 = arith.constant 0 : i32
    %c0_i32_0 = arith.constant 0 : i32
    %c0_i32_1 = arith.constant 0 : i32
    return %c0_i32, %c0_i32_0 : i32, i32
  }
}

module attributes {stable_mosaic.version = 11 : i64} {
  func.func @kernel(%arg0: i32, %arg1: memref<8x16x32xf32, #tpu.memory_space<vmem>>, %arg2: memref<8x32xf32, #tpu.memory_space<vmem>>, %arg3: memref<8x32xf32, #tpu.memory_space<vmem>>, %arg4: memref<32x256xf32, #tpu.memory_space<vmem>>, %arg5: memref<352x128xf32, #tpu.memory_space<vmem>>, %arg6: memref<8x128xf32, #tpu.memory_space<vmem>>, %arg7: memref<8x128xf32, #tpu.memory_space<vmem>>, %arg8: memref<8x128xf32, #tpu.memory_space<vmem>>) attributes {dimension_semantics = [#tpu.dimension_semantics<parallel>], iteration_bounds = array<i64: 2>, scalar_prefetch = 0 : i64, scratch_operands = 0 : i64, tpu.core_type = #tpu.core_type<tc>, window_params = [{transform_indices = @transform_0, window_bounds = array<i64: 8, 16, 32>}, {transform_indices = @transform_1, window_bounds = array<i64: 8, 32>}, {transform_indices = @transform_2, window_bounds = array<i64: 8, 32>}, {pipeline_mode = #tpu.pipeline_mode<synchronous>, transform_indices = @transform_3, window_bounds = array<i64: 32, 256>}, {pipeline_mode = #tpu.pipeline_mode<synchronous>, transform_indices = @transform_4, window_bounds = array<i64: 352, 128>}, {pipeline_mode = #tpu.pipeline_mode<synchronous>, transform_indices = @transform_5, window_bounds = array<i64: 8, 128>}, {transform_indices = @transform_6, window_bounds = array<i64: 8, 128>}, {transform_indices = @transform_7, window_bounds = array<i64: 8, 128>}]} {
    %c0 = arith.constant 0 : index
    %c0_0 = arith.constant 0 : index
    %0 = vector.load %arg6[%c0, %c0_0] : memref<8x128xf32, #tpu.memory_space<vmem>>, vector<8x128xf32>
    %1 = vector.extract_strided_slice %0 {offsets = [0, 0], sizes = [1, 128], strides = [1, 1]} : vector<8x128xf32> to vector<1x128xf32>
    %2 = vector.extract_strided_slice %0 {offsets = [1, 0], sizes = [1, 128], strides = [1, 1]} : vector<8x128xf32> to vector<1x128xf32>
    %3 = vector.extract_strided_slice %0 {offsets = [2, 0], sizes = [1, 128], strides = [1, 1]} : vector<8x128xf32> to vector<1x128xf32>
    %4 = vector.extract_strided_slice %0 {offsets = [3, 0], sizes = [1, 128], strides = [1, 1]} : vector<8x128xf32> to vector<1x128xf32>
    %5 = vector.extract_strided_slice %0 {offsets = [4, 0], sizes = [1, 128], strides = [1, 1]} : vector<8x128xf32> to vector<1x128xf32>
    %6 = vector.extract_strided_slice %0 {offsets = [5, 0], sizes = [1, 128], strides = [1, 1]} : vector<8x128xf32> to vector<1x128xf32>
    %7 = vector.extract_strided_slice %0 {offsets = [6, 0], sizes = [1, 128], strides = [1, 1]} : vector<8x128xf32> to vector<1x128xf32>
    %8 = vector.extract_strided_slice %0 {offsets = [7, 0], sizes = [1, 128], strides = [1, 1]} : vector<8x128xf32> to vector<1x128xf32>
    %c0_1 = arith.constant 0 : index
    %c0_2 = arith.constant 0 : index
    %9 = vector.load %arg2[%c0_1, %c0_2] : memref<8x32xf32, #tpu.memory_space<vmem>>, vector<8x32xf32>
    %c0_3 = arith.constant 0 : index
    %c0_4 = arith.constant 0 : index
    %10 = vector.load %arg4[%c0_3, %c0_4] : memref<32x256xf32, #tpu.memory_space<vmem>>, vector<32x256xf32>
    %cst = arith.constant dense<0.000000e+00> : vector<8x256xf32>
    %11 = tpu.matmul %9, %10, %cst {dimension_numbers = #tpu.dot_dimension_numbers<[1], [0], [0], [1], [0, 0, 1, 1], [], []>} : vector<8x32xf32>, vector<32x256xf32>, vector<8x256xf32> -> vector<8x256xf32>
    %12 = vector.extract_strided_slice %11 {offsets = [0, 0], sizes = [8, 128], strides = [1, 1]} : vector<8x256xf32> to vector<8x128xf32>
    %13 = vector.broadcast %2 : vector<1x128xf32> to vector<8x128xf32>
    %14 = arith.addf %12, %13 : vector<8x128xf32>
    %cst_5 = arith.constant 0.000000e+00 : f32
    %15 = vector.broadcast %cst_5 : f32 to vector<8x128xf32>
    %16 = arith.maximumf %14, %15 : vector<8x128xf32>
    %17 = vector.extract_strided_slice %11 {offsets = [0, 128], sizes = [8, 128], strides = [1, 1]} : vector<8x256xf32> to vector<8x128xf32>
    %18 = vector.broadcast %3 : vector<1x128xf32> to vector<8x128xf32>
    %19 = arith.addf %17, %18 : vector<8x128xf32>
    %cst_6 = arith.constant 0.000000e+00 : f32
    %20 = vector.broadcast %cst_6 : f32 to vector<8x128xf32>
    %21 = arith.maximumf %19, %20 : vector<8x128xf32>
    %c0_7 = arith.constant 0 : index
    %c0_8 = arith.constant 0 : index
    %c0_9 = arith.constant 0 : index
    %22 = vector.load %arg1[%c0_7, %c0_8, %c0_9] : memref<8x16x32xf32, #tpu.memory_space<vmem>>, vector<8x16x32xf32>
    %23 = vector.shape_cast %22 : vector<8x16x32xf32> to vector<128x32xf32>
    %c0_10 = arith.constant 0 : index
    %c0_11 = arith.constant 0 : index
    %24 = vector.load %arg5[%c0_10, %c0_11] : memref<352x128xf32, #tpu.memory_space<vmem>>, vector<32x128xf32>
    %cst_12 = arith.constant dense<0.000000e+00> : vector<128x128xf32>
    %25 = tpu.matmul %23, %24, %cst_12 {dimension_numbers = #tpu.dot_dimension_numbers<[1], [0], [0], [1], [0, 0, 1, 1], [], []>} : vector<128x32xf32>, vector<32x128xf32>, vector<128x128xf32> -> vector<128x128xf32>
    %26 = vector.broadcast %1 : vector<1x128xf32> to vector<128x128xf32>
    %27 = arith.addf %25, %26 : vector<128x128xf32>
    %cst_13 = arith.constant 0.000000e+00 : f32
    %28 = vector.broadcast %cst_13 : f32 to vector<128x128xf32>
    %29 = arith.maximumf %27, %28 : vector<128x128xf32>
    %30 = vector.shape_cast %29 : vector<128x128xf32> to vector<8x16x128xf32>
    %31 = vector.shape_cast %16 : vector<8x128xf32> to vector<8x1x128xf32>
    %32 = vector.broadcast %31 : vector<8x1x128xf32> to vector<8x16x128xf32>
    %33 = arith.mulf %30, %32 : vector<8x16x128xf32>
    %34 = vector.shape_cast %8 : vector<1x128xf32> to vector<1x1x128xf32>
    %35 = vector.broadcast %34 : vector<1x1x128xf32> to vector<8x16x128xf32>
    %36 = arith.mulf %33, %35 : vector<8x16x128xf32>
    %cst_14 = arith.constant dense<0.000000e+00> : vector<8x16xf32>
    %37 = vector.multi_reduction <add>, %36, %cst_14 [2] : vector<8x16x128xf32> to vector<8x16xf32>
    %cst_15 = arith.constant dense<0xFF800000> : vector<8xf32>
    %38 = vector.multi_reduction <maximumf>, %37, %cst_15 [1] : vector<8x16xf32> to vector<8xf32>
    %39 = vector.shape_cast %38 : vector<8xf32> to vector<8x1xf32>
    %40 = vector.broadcast %39 : vector<8x1xf32> to vector<8x16xf32>
    %41 = arith.subf %37, %40 : vector<8x16xf32>
    %42 = math.exp %41 : vector<8x16xf32>
    %cst_16 = arith.constant dense<0.000000e+00> : vector<8xf32>
    %43 = vector.multi_reduction <add>, %42, %cst_16 [1] : vector<8x16xf32> to vector<8xf32>
    %44 = vector.shape_cast %43 : vector<8xf32> to vector<8x1xf32>
    %45 = tpu.reciprocal %44 {approx = true} : vector<8x1xf32> -> vector<8x1xf32>
    %46 = vector.broadcast %45 : vector<8x1xf32> to vector<8x16xf32>
    %47 = arith.mulf %42, %46 : vector<8x16xf32>
    %48 = vector.shape_cast %47 : vector<8x16xf32> to vector<8x16x1xf32>
    %49 = vector.broadcast %48 : vector<8x16x1xf32> to vector<8x16x32xf32>
    %50 = arith.mulf %49, %22 : vector<8x16x32xf32>
    %cst_17 = arith.constant dense<0.000000e+00> : vector<8x32xf32>
    %51 = vector.multi_reduction <add>, %50, %cst_17 [1] : vector<8x16x32xf32> to vector<8x32xf32>
    %c32 = arith.constant 32 : index
    %c0_18 = arith.constant 0 : index
    %52 = vector.load %arg5[%c32, %c0_18] : memref<352x128xf32, #tpu.memory_space<vmem>>, vector<32x128xf32>
    %cst_19 = arith.constant dense<0.000000e+00> : vector<8x128xf32>
    %53 = tpu.matmul %51, %52, %cst_19 {dimension_numbers = #tpu.dot_dimension_numbers<[1], [0], [0], [1], [0, 0, 1, 1], [], []>} : vector<8x32xf32>, vector<32x128xf32>, vector<8x128xf32> -> vector<8x128xf32>
    %54 = vector.broadcast %4 : vector<1x128xf32> to vector<8x128xf32>
    %55 = arith.addf %53, %54 : vector<8x128xf32>
    %cst_20 = arith.constant 0.000000e+00 : f32
    %56 = vector.broadcast %cst_20 : f32 to vector<8x128xf32>
    %57 = arith.maximumf %55, %56 : vector<8x128xf32>
    %58 = arith.mulf %21, %57 : vector<8x128xf32>
    %c0_21 = arith.constant 0 : index
    %c0_22 = arith.constant 0 : index
    %59 = vector.load %arg3[%c0_21, %c0_22] : memref<8x32xf32, #tpu.memory_space<vmem>>, vector<8x32xf32>
    %c64 = arith.constant 64 : index
    %c0_23 = arith.constant 0 : index
    %60 = vector.load %arg5[%c64, %c0_23] : memref<352x128xf32, #tpu.memory_space<vmem>>, vector<32x128xf32>
    %cst_24 = arith.constant dense<0.000000e+00> : vector<8x128xf32>
    %61 = tpu.matmul %59, %60, %cst_24 {dimension_numbers = #tpu.dot_dimension_numbers<[1], [0], [0], [1], [0, 0, 1, 1], [], []>} : vector<8x32xf32>, vector<32x128xf32>, vector<8x128xf32> -> vector<8x128xf32>
    %62 = vector.broadcast %5 : vector<1x128xf32> to vector<8x128xf32>
    %63 = arith.addf %61, %62 : vector<8x128xf32>
    %cst_25 = arith.constant 0.000000e+00 : f32
    %64 = vector.broadcast %cst_25 : f32 to vector<8x128xf32>
    %65 = arith.maximumf %63, %64 : vector<8x128xf32>
    %66 = arith.mulf %58, %65 : vector<8x128xf32>
    %c96 = arith.constant 96 : index
    %c0_26 = arith.constant 0 : index
    %67 = vector.load %arg5[%c96, %c0_26] : memref<352x128xf32, #tpu.memory_space<vmem>>, vector<128x128xf32>
    %cst_27 = arith.constant dense<0.000000e+00> : vector<8x128xf32>
    %68 = tpu.matmul %66, %67, %cst_27 {dimension_numbers = #tpu.dot_dimension_numbers<[1], [0], [0], [1], [0, 0, 1, 1], [], []>} : vector<8x128xf32>, vector<128x128xf32>, vector<8x128xf32> -> vector<8x128xf32>
    %69 = vector.broadcast %6 : vector<1x128xf32> to vector<8x128xf32>
    %70 = arith.addf %68, %69 : vector<8x128xf32>
    %cst_28 = arith.constant 0.000000e+00 : f32
    %71 = vector.broadcast %cst_28 : f32 to vector<8x128xf32>
    %72 = arith.maximumf %70, %71 : vector<8x128xf32>
    %c224 = arith.constant 224 : index
    %c0_29 = arith.constant 0 : index
    %73 = vector.load %arg5[%c224, %c0_29] : memref<352x128xf32, #tpu.memory_space<vmem>>, vector<128x128xf32>
    %cst_30 = arith.constant dense<0.000000e+00> : vector<8x128xf32>
    %74 = tpu.matmul %72, %73, %cst_30 {dimension_numbers = #tpu.dot_dimension_numbers<[1], [0], [0], [1], [0, 0, 1, 1], [], []>} : vector<8x128xf32>, vector<128x128xf32>, vector<8x128xf32> -> vector<8x128xf32>
    %75 = vector.broadcast %7 : vector<1x128xf32> to vector<8x128xf32>
    %76 = arith.addf %74, %75 : vector<8x128xf32>
    %c0_31 = arith.constant 0 : index
    %c0_32 = arith.constant 0 : index
    %77 = vector.load %arg7[%c0_31, %c0_32] : memref<8x128xf32, #tpu.memory_space<vmem>>, vector<8x128xf32>
    tpu.vector_store %arg7[%c0_31, %c0_32], %76 {strides = array<i32>} : memref<8x128xf32, #tpu.memory_space<vmem>>, vector<8x128xf32>,
    %c0_33 = arith.constant 0 : index
    %c0_34 = arith.constant 0 : index
    %78 = vector.load %arg8[%c0_33, %c0_34] : memref<8x128xf32, #tpu.memory_space<vmem>>, vector<8x128xf32>
    tpu.vector_store %arg8[%c0_33, %c0_34], %65 {strides = array<i32>} : memref<8x128xf32, #tpu.memory_space<vmem>>, vector<8x128xf32>,
    return
  }
  func.func @transform_0(%arg0: i32) -> (i32, i32, i32) {
    %c0_i32 = arith.constant 0 : i32
    %c0_i32_0 = arith.constant 0 : i32
    %c0_i32_1 = arith.constant 0 : i32
    return %arg0, %c0_i32, %c0_i32_0 : i32, i32, i32
  }
  func.func @transform_1(%arg0: i32) -> (i32, i32) {
    %c0_i32 = arith.constant 0 : i32
    %c0_i32_0 = arith.constant 0 : i32
    return %arg0, %c0_i32 : i32, i32
  }
  func.func @transform_2(%arg0: i32) -> (i32, i32) {
    %c0_i32 = arith.constant 0 : i32
    %c0_i32_0 = arith.constant 0 : i32
    return %arg0, %c0_i32 : i32, i32
  }
  func.func @transform_3(%arg0: i32) -> (i32, i32) {
    %c0_i32 = arith.constant 0 : i32
    %c0_i32_0 = arith.constant 0 : i32
    %c0_i32_1 = arith.constant 0 : i32
    return %c0_i32, %c0_i32_0 : i32, i32
  }
  func.func @transform_4(%arg0: i32) -> (i32, i32) {
    %c0_i32 = arith.constant 0 : i32
    %c0_i32_0 = arith.constant 0 : i32
    %c0_i32_1 = arith.constant 0 : i32
    return %c0_i32, %c0_i32_0 : i32, i32
  }
  func.func @transform_5(%arg0: i32) -> (i32, i32) {
    %c0_i32 = arith.constant 0 : i32
    %c0_i32_0 = arith.constant 0 : i32
    %c0_i32_1 = arith.constant 0 : i32
    return %c0_i32, %c0_i32_0 : i32, i32
  }
  func.func @transform_6(%arg0: i32) -> (i32, i32) {
    %c0_i32 = arith.constant 0 : i32
    %c0_i32_0 = arith.constant 0 : i32
    return %arg0, %c0_i32 : i32, i32
  }
  func.func @transform_7(%arg0: i32) -> (i32, i32) {
    %c0_i32 = arith.constant 0 : i32
    %c0_i32_0 = arith.constant 0 : i32
    return %arg0, %c0_i32 : i32, i32
  }
}

</mosaic_0001>

<bundles_post_ra>
// kernel: _lambda_.2
= control target key start
LH: loop header
LB: loop body
LE: loop exit
PB: predicated region body
PF: predicated region fallthrough
CT: control target
= control target key end

     0   :  { %vm64_vm0 = vcmask 523264   ;;  %v2046_v37 = vmov 0.0   ;;  %s3630_s2 = inlined_call_operand.vmem [shape: f32[128,384], index: 2, kind: input, shape index: {}]   ;;  %s3631_s1 = inlined_call_operand.vmem [shape: f32[64,384], index: 1, kind: input, shape index: {}]   ;;  %s3632_s0 = inlined_call_operand.vmem [shape: f32[96,64], index: 0, kind: input, shape index: {}]   ;;  %s3633_s3 = inlined_call_operand.vmem [shape: f32[1,384], index: 3, kind: input, shape index: {}]   ;;  %s3634_s4 = inlined_call_operand.vmem [shape: f32[1,384], index: 4, kind: input, shape index: {}]   ;;  %s3635_s5 = inlined_call_operand.vmem [shape: f32[12,128], index: 5, kind: output, shape index: {}]  }
   0x1   :  { %v2080_v0 = vld [vmem:[%s3630_s2 + $0x168] sm:$0xff]  ;;  %v2085_v1 = vld [vmem:[%s3630_s2 + $0x150] sm:$0xff]  ;;  %v2091_v2 = vld [vmem:[%s3630_s2 + $0x138] sm:$0xff] }
   0x2   :  { %316 = vmatpush.msra.mxu3 %v2080_v0  ;;  %v2097_v3 = vld [vmem:[%s3630_s2 + $0x120] sm:$0xff]  ;;  %v2103_v4 = vld [vmem:[%s3630_s2 + $0x108] sm:$0xff]  ;;  %v50_v6 = vld [vmem:[%s3631_s1 + $0x90] sm:$0xff] }
   0x3   :  { %v53_v5 = vld [vmem:[%s3631_s1 + $0xa8] sm:$0xff]  ;;  %v2115_v7 = vld [vmem:[%s3630_s2 + $0xf0] sm:$0xff]  ;;  %v47_v8 = vld [vmem:[%s3631_s1 + $0x78] sm:$0xff] }
   0x4   :  { %317 = vmatpush.msra.mxu3 %v2085_v1  ;;  %109 = vmatpush.msra.mxu0 %v53_v5  ;;  %v2124_v9 = vld [vmem:[%s3630_s2 + $0xd8] sm:$0xff]  ;;  %v44_v10 = vld [vmem:[%s3631_s1 + $0x60] sm:$0xff]  ;;  %v41_v12 = vld [vmem:[%s3631_s1 + $0x48] sm:$0xff] }
   0x5   :  { %1828 = vmatpush.msra.mxu1 %v53_v5  ;;  %v2133_v11 = vld [vmem:[%s3630_s2 + $0xc0] sm:$0xff]  ;;  %v2142_v13 = vld [vmem:[%s3630_s2 + $0xa8] sm:$0xff]  ;;  %v38_v14 = vld [vmem:[%s3631_s1 + $0x30] sm:$0xff] }
   0x6   :  { %318 = vmatpush.msra.mxu3 %v2091_v2  ;;  %110 = vmatpush.msra.mxu0 %v50_v6  ;;  %v2151_v15 = vld [vmem:[%s3630_s2 + $0x90] sm:$0xff]  ;;  %v35_v16 = vld [vmem:[%s3631_s1 + $0x18] sm:$0xff]  ;;  %v32_v18 = vld [vmem:[%s3631_s1] sm:$0xff] }
   0x7   :  { %1829 = vmatpush.msra.mxu1 %v50_v6  ;;  %v2160_v17 = vld [vmem:[%s3630_s2 + $0x78] sm:$0xff]  ;;  %v2169_v19 = vld [vmem:[%s3632_s0] sm:$0xff]  ;;  %v2179_v21 = vld [vmem:[%s3632_s0 + $0x50] sm:$0xff] }
   0x8   :  { %319 = vmatpush.msra.mxu3 %v2097_v3  ;;  %111 = vmatpush.msra.mxu0 %v47_v8  ;;  %v2174_v20 = vld [vmem:[%s3630_s2 + $0x60] sm:$0xff]  ;;  %v54_v22 = vld [vmem:[%s3631_s1 + $0xb0] sm:$0xff]  ;;  %v2188_v23 = vld [vmem:[%s3630_s2 + $0x48] sm:$0xff] }
   0x9   :  { %1830 = vmatpush.msra.mxu1 %v47_v8  ;;  %3694 = vst [vmem:[#allocation2_spill] sm:$0xff] %v2188_v23  ;;  %v51_v24 = vld [vmem:[%s3631_s1 + $0x98] sm:$0xff]  ;;  %v2201_v25 = vld [vmem:[%s3630_s2 + $0x30] sm:$0xff]  ;;  %v48_v26 = vld [vmem:[%s3631_s1 + $0x80] sm:$0xff] }
   0xa   :  { %320 = vmatpush.msra.mxu3 %v2103_v4  ;;  %112 = vmatpush.msra.mxu0 %v44_v10  ;;  %3695 = vst [vmem:[#allocation3_spill] sm:$0xff] %v2201_v25  ;;  %v2211_v27 = vld [vmem:[%s3630_s2 + $0x18] sm:$0xff]  ;;  %v2218_v28 = vld [vmem:[%s3632_s0 + $0x8] sm:$0xff]  ;;  %v2226_v30 = vld [vmem:[%s3630_s2] sm:$0xff] }
   0xb   :  { %1831 = vmatpush.msra.mxu1 %v44_v10  ;;  %3696 = vst [vmem:[#allocation4_spill] sm:$0xff] %v2211_v27  ;;  %v45_v29 = vld [vmem:[%s3631_s1 + $0x68] sm:$0xff]  ;;  %v2231_v31 = vld [vmem:[%s3632_s0 + $0x58] sm:$0xff]  ;;  %v2238_v32 = vld [vmem:[%s3630_s2 + $0x170] sm:$0xff] }
   0xc   :  { %321 = vmatpush.msra.mxu3 %v2115_v7  ;;  %113 = vmatpush.msra.mxu0 %v41_v12  ;;  %3697 = vst [vmem:[#allocation5_spill] sm:$0xff] %v2226_v30  ;;  %v42_v33 = vld [vmem:[%s3631_s1 + $0x50] sm:$0xff]  ;;  %v2249_v34 = vld [vmem:[%s3630_s2 + $0x158] sm:$0xff]  ;;  %v2260_v36 = vld [vmem:[%s3630_s2 + $0x140] sm:$0xff] }
   0xd   :  { %1832 = vmatpush.msra.mxu1 %v41_v12  ;;  %v39_v35 = vld [vmem:[%s3631_s1 + $0x38] sm:$0xff]  ;;  %v36_v38 = vld [vmem:[%s3631_s1 + $0x20] sm:$0xff]  ;;  %v2271_v39 = vld [vmem:[%s3630_s2 + $0x128] sm:$0xff] }
   0xe   :  { %322 = vmatpush.msra.mxu3 %v2124_v9  ;;  %114 = vmatpush.msra.mxu0 %v38_v14  ;;  %v33_v40 = vld [vmem:[%s3631_s1 + $0x8] sm:$0xff]  ;;  %v2281_v41 = vld [vmem:[%s3630_s2 + $0x110] sm:$0xff]  ;;  %v2288_v42 = vld [vmem:[%s3630_s2 + $0xf8] sm:$0xff] }
   0xf   :  { %1833 = vmatpush.msra.mxu1 %v38_v14  ;;  %v2298_v43 = vld [vmem:[%s3630_s2 + $0xe0] sm:$0xff]  ;;  %v2307_v44 = vld [vmem:[%s3630_s2 + $0xc8] sm:$0xff]  ;;  %v2315_v45 = vld [vmem:[%s3630_s2 + $0xb0] sm:$0xff] }
  0x10   :  { %323 = vmatpush.msra.mxu3 %v2133_v11  ;;  %115 = vmatpush.msra.mxu0 %v35_v16  ;;  %v2323_v46 = vld [vmem:[%s3630_s2 + $0x98] sm:$0xff]  ;;  %v2336_v48 = vld [vmem:[%s3630_s2 + $0x80] sm:$0xff]  ;;  %v2347_v50 = vld [vmem:[%s3630_s2 + $0x68] sm:$0xff] }
  0x11   :  { %1834 = vmatpush.msra.mxu1 %v35_v16  ;;  %v55_v47 = vld [vmem:[%s3631_s1 + $0xb8] sm:$0xff]  ;;  %v52_v49 = vld [vmem:[%s3631_s1 + $0xa0] sm:$0xff]  ;;  %3698 = vst [vmem:[#allocation6_spill] sm:$0xff] %v2347_v50  ;;  %v49_v51 = vld [vmem:[%s3631_s1 + $0x88] sm:$0xff] }
  0x12   :  { %324 = vmatpush.msra.mxu3 %v2142_v13  ;;  %116 = vmatpush.msra.mxu0 %v32_v18  ;;  %v2358_v52 = vld [vmem:[%s3630_s2 + $0x50] sm:$0xff]  ;;  %v2369_v54 = vld [vmem:[%s3630_s2 + $0x38] sm:$0xff]  ;;  %v2380_v56 = vld [vmem:[%s3630_s2 + $0x20] sm:$0xff] }
  0x13   :  { %1760 = vmatmul.msk.f32.vlgmr.msra.gmra.mxu0 %vm64_vm0, %v2169_v19  ;;  %1835 = vmatpush.msra.mxu1 %v32_v18  ;;  %3699 = vst [vmem:[#allocation7_spill] sm:$0xff] %v2358_v52  ;;  %v46_v53 = vld [vmem:[%s3631_s1 + $0x70] sm:$0xff]  ;;  %v43_v55 = vld [vmem:[%s3631_s1 + $0x58] sm:$0xff]  ;;  %v40_v57 = vld [vmem:[%s3631_s1 + $0x40] sm:$0xff] }
  0x14   :  { %325 = vmatpush.msra.mxu3 %v2151_v15  ;;  %1770 = vmatmul.msk.f32.vlgmr.msra.gmra.mxu1 %vm64_vm0, %v2179_v21  ;;  %3700 = vst [vmem:[#allocation8_spill] sm:$0xff] %v2369_v54  ;;  %v2391_v58 = vld [vmem:[%s3630_s2 + $0x8] sm:$0xff]  ;;  %v2402_v60 = vld [vmem:[%s3630_s2 + $0x178] sm:$0xff]  ;;  %v2411_v61 = vld [vmem:[%s3630_s2 + $0x160] sm:$0xff] }
  0x15   :  { %162 = vmatpush.msrb.mxu1 %v54_v22  ;;  %479 = vmatpush.msrb.mxu0 %v2080_v0  ;;  %3701 = vst [vmem:[#allocation9_spill] sm:$0xff] %v2380_v56  ;;  %v37_v59 = vld [vmem:[%s3631_s1 + $0x28] sm:$0xff]  ;;  %v34_v62 = vld [vmem:[%s3631_s1 + $0x10] sm:$0xff]  ;;  %v2440_v6 = vld [vmem:[%s3630_s2 + $0x118] sm:$0xff] }
  0x16   :  { %326 = vmatpush.msra.mxu3 %v2160_v17  ;;  %215 = vmatpush.msra.mxu2 %v55_v47  ;;  %3702 = vst [vmem:[#allocation10_spill] sm:$0xff] %v2391_v58  ;;  %v2421_v63 = vld [vmem:[%s3630_s2 + $0x148] sm:$0xff]  ;;  %v2431_v5 = vld [vmem:[%s3630_s2 + $0x130] sm:$0xff]  ;;  %v2450_v8 = vld [vmem:[%s3630_s2 + $0x100] sm:$0xff] }
  0x17   :  { %163 = vmatpush.msrb.mxu1 %v51_v24  ;;  %480 = vmatpush.msrb.mxu0 %v2085_v1  ;;  %v22_v10 = vld [vmem:[%s3632_s0 + $0x10] sm:$0xff]  ;;  %v2461_v12 = vld [vmem:[%s3630_s2 + $0xe8] sm:$0xff]  ;;  %v2480_v16 = vld [vmem:[%s3630_s2 + $0xb8] sm:$0xff] }
  0x18   :  { %327 = vmatpush.msra.mxu3 %v2174_v20  ;;  %216 = vmatpush.msra.mxu2 %v52_v49  ;;  %v2471_v14 = vld [vmem:[%s3630_s2 + $0xd0] sm:$0xff]  ;;  %v23_v18 = vld [vmem:[%s3632_s0 + $0x18] sm:$0xff]  ;;  %v2501_v22 = vld [vmem:[%s3630_s2 + $0x88] sm:$0xff] }
  0x19   :  { %164 = vmatpush.msrb.mxu1 %v48_v26  ;;  %481 = vmatpush.msrb.mxu0 %v2091_v2  ;;  %v2510_v24 = vld [vmem:[%s3630_s2 + $0x70] sm:$0xff]  ;;  %v2519_v26 = vld [vmem:[%s3630_s2 + $0x58] sm:$0xff]  ;;  %v2645_v47 = vld [vmem:[%s3634_s4] sm:$0x7] }
  0x1a   :  { %328 = vmatpush.msra.mxu3 %v2188_v23  ;;  %217 = vmatpush.msra.mxu2 %v49_v51 }
  0x1b   :  { %1761 = vmatmul.msk.f32.gmra.mxu0 %vm64_vm0, %v2218_v28  ;;  %165 = vmatpush.msrb.mxu1 %v45_v29  ;;  %v2537_v29 = vld [vmem:[%s3630_s2 + $0x28] sm:$0xff] }
  0x1c   :  { %329 = vmatpush.msra.mxu3 %v2201_v25  ;;  %1771 = vmatmul.msk.f32.gmra.mxu1 %vm64_vm0, %v2231_v31  ;;  %3704 = vst [vmem:[#allocation12_spill] sm:$0xff] %v2537_v29 }
  0x1d   :  { %166 = vmatpush.msrb.mxu1 %v42_v33  ;;  %482 = vmatpush.msrb.mxu0 %v2097_v3  ;;  %v2546_v33 = vld [vmem:[%s3630_s2 + $0x10] sm:$0xff] }
  0x1e   :  { %330 = vmatpush.msra.mxu3 %v2211_v27  ;;  %218 = vmatpush.msra.mxu2 %v46_v53  ;;  %3705 = vst [vmem:[#allocation13_spill] sm:$0xff] %v2546_v33 }
  0x1f   :  { %167 = vmatpush.msrb.mxu1 %v39_v35  ;;  %483 = vmatpush.msrb.mxu0 %v2103_v4  ;;  %v24_v35 = vld [vmem:[%s3632_s0 + $0x20] sm:$0xff] }
  0x20   :  { %331 = vmatpush.msra.mxu3 %v2226_v30  ;;  %219 = vmatpush.msra.mxu2 %v43_v55  ;;  %v2653_v55 = vperm.slane %v2645_v47, 0 }
  0x21   :  { %332 = vmatmul.f32.vlgmr.msra.gmra.mxu3 %v2046_v37  ;;  %168 = vmatpush.msrb.mxu1 %v36_v38  ;;  %v26_v38 = vld [vmem:[%s3632_s0 + $0x30] sm:$0xff] }
  0x22   :  { %339 = vmatpush.msrb.mxu3 %v2238_v32  ;;  %484 = vmatpush.msrb.mxu0 %v2115_v7  ;;  %3708 = vst [vmem:[#allocation16_spill] sm:$0xff] %v2653_v55 }
  0x23   :  { %169 = vmatpush.msrb.mxu1 %v33_v40  ;;  %220 = vmatpush.msra.mxu2 %v40_v57  ;;  %v2640_v40 = vld [vmem:[%s3633_s3] sm:$0x7] }
  0x24   :  { %340 = vmatpush.msrb.mxu3 %v2249_v34  ;;  %1772 = vmatmul.msk.f32.vlgmr.msrb.gmra.mxu1 %vm64_vm0, %v2169_v19  ;;  %v2650_v51 = vperm.slane %v2640_v40, 0 }
  0x25   :  { %485 = vmatpush.msrb.mxu0 %v2124_v9  ;;  %502 = vmatpush.msra.mxu1 %v2238_v32 }
  0x26   :  { %341 = vmatpush.msrb.mxu3 %v2260_v36  ;;  %221 = vmatpush.msra.mxu2 %v37_v59  ;;  %3707 = vst [vmem:[#allocation15_spill] sm:$0xff] %v2650_v51  ;;  %v27_v59 = vld [vmem:[%s3632_s0 + $0x38] sm:$0xff] }
  0x27   :  { %486 = vmatpush.msrb.mxu0 %v2133_v11  ;;  %503 = vmatpush.msra.mxu1 %v2249_v34 }
  0x28   :  { %342 = vmatpush.msrb.mxu3 %v2271_v39  ;;  %222 = vmatpush.msra.mxu2 %v34_v62 }
  0x29   :  { %335 = vmatmul.f32.gmra.mxu3 %v2046_v37  ;;  %487 = vmatpush.msrb.mxu0 %v2142_v13 }
  0x2a   :  { %343 = vmatpush.msrb.mxu3 %v2281_v41  ;;  %504 = vmatpush.msra.mxu1 %v2260_v36 }
  0x2b   :  { %488 = vmatpush.msrb.mxu0 %v2151_v15  ;;  %1784 = vmatmul.msk.f32.vlgmr.msra.gmra.mxu2 %vm64_vm0, %v2169_v19  ;;  %v2492_v19 = vld [vmem:[%s3630_s2 + $0xa0] sm:$0xff] }
  0x2c   :  { %344 = vmatpush.msrb.mxu3 %v2288_v42  ;;  %505 = vmatpush.msra.mxu1 %v2271_v39 }
  0x2d   :  { %1773 = vmatmul.msk.f32.gmra.mxu1 %vm64_vm0, %v2218_v28  ;;  %489 = vmatpush.msrb.mxu0 %v2160_v17 }
  0x2e   :  { %345 = vmatpush.msrb.mxu3 %v2298_v43  ;;  %506 = vmatpush.msra.mxu1 %v2281_v41 }
  0x2f   :  { %490 = vmatpush.msrb.mxu0 %v2174_v20  ;;  %525 = vmatpush.msrb.mxu2 %v2402_v60 }
  0x30   :  { %346 = vmatpush.msrb.mxu3 %v2307_v44  ;;  %507 = vmatpush.msra.mxu1 %v2288_v42 }
  0x31   :  { %491 = vmatpush.msrb.mxu0 %v2188_v23  ;;  %526 = vmatpush.msrb.mxu2 %v2411_v61 }
  0x32   :  { %347 = vmatpush.msrb.mxu3 %v2315_v45  ;;  %508 = vmatpush.msra.mxu1 %v2298_v43 }
  0x33   :  { %492 = vmatpush.msrb.mxu0 %v2201_v25  ;;  %527 = vmatpush.msrb.mxu2 %v2421_v63 }
  0x34   :  { %348 = vmatpush.msrb.mxu3 %v2323_v46  ;;  %509 = vmatpush.msra.mxu1 %v2307_v44 }
  0x35   :  { %493 = vmatpush.msrb.mxu0 %v2211_v27  ;;  %1774 = vmatmul.msk.f32.gmra.mxu1 %vm64_vm0, %v22_v10 }
  0x36   :  { %349 = vmatpush.msrb.mxu3 %v2336_v48  ;;  %510 = vmatpush.msra.mxu1 %v2315_v45 }
  0x37   :  { %494 = vmatpush.msrb.mxu0 %v2226_v30  ;;  %1785 = vmatmul.msk.f32.gmra.mxu2 %vm64_vm0, %v2218_v28  ;;  %v2528_v28 = vld [vmem:[%s3630_s2 + $0x40] sm:$0xff] }
  0x38   :  { %350 = vmatpush.msrb.mxu3 %v2347_v50  ;;  %511 = vmatpush.msra.mxu1 %v2323_v46  ;;  %3703 = vst [vmem:[#allocation11_spill] sm:$0xff] %v2528_v28 }
  0x39   :  { %701 = vmatpush.msra.mxu0 %v2238_v32  ;;  %528 = vmatpush.msrb.mxu2 %v2431_v5 }
  0x3a   :  { %351 = vmatpush.msrb.mxu3 %v2358_v52  ;;  %512 = vmatpush.msra.mxu1 %v2336_v48 }
  0x3b   :  { %702 = vmatpush.msra.mxu0 %v2249_v34  ;;  %529 = vmatpush.msrb.mxu2 %v2440_v6 }
  0x3c   :  { %352 = vmatpush.msrb.mxu3 %v2369_v54  ;;  %513 = vmatpush.msra.mxu1 %v2347_v50 }
  0x3d   :  { %703 = vmatpush.msra.mxu0 %v2260_v36  ;;  %530 = vmatpush.msrb.mxu2 %v2450_v8 }
  0x3e   :  { %353 = vmatpush.msrb.mxu3 %v2380_v56  ;;  %514 = vmatpush.msra.mxu1 %v2358_v52 }
  0x3f   :  { %704 = vmatpush.msra.mxu0 %v2271_v39  ;;  %1775 = vmatmul.msk.f32.gmra.mxu1 %vm64_vm0, %v23_v18 }
  0x40   :  { %354 = vmatpush.msrb.mxu3 %v2391_v58  ;;  %515 = vmatpush.msra.mxu1 %v2369_v54 }
  0x41   :  { %355 = vmatmul.f32.vlgmr.msrb.gmra.mxu3 %v2046_v37  ;;  %705 = vmatpush.msra.mxu0 %v2281_v41 }
  0x42   :  { %362 = vmatpush.msra.mxu3 %v2402_v60  ;;  %516 = vmatpush.msra.mxu1 %v2380_v56 }
  0x43   :  { %1762 = vmatmul.msk.f32.gmra.mxu0 %vm64_vm0, %v22_v10  ;;  %1786 = vmatmul.msk.f32.gmra.mxu2 %vm64_vm0, %v22_v10 }
  0x44   :  { %363 = vmatpush.msra.mxu3 %v2411_v61  ;;  %517 = vmatpush.msra.mxu1 %v2391_v58 }
  0x45   :  { %706 = vmatpush.msra.mxu0 %v2288_v42  ;;  %531 = vmatpush.msrb.mxu2 %v2461_v12 }
  0x46   :  { %364 = vmatpush.msra.mxu3 %v2421_v63  ;;  %724 = vmatpush.msrb.mxu1 %v2402_v60 }
  0x47   :  { %707 = vmatpush.msra.mxu0 %v2298_v43  ;;  %532 = vmatpush.msrb.mxu2 %v2471_v14 }
  0x48   :  { %365 = vmatpush.msra.mxu3 %v2431_v5  ;;  %725 = vmatpush.msrb.mxu1 %v2411_v61 }
  0x49   :  { %358 = vmatmul.f32.gmra.mxu3 %v2046_v37  ;;  %708 = vmatpush.msra.mxu0 %v2307_v44 }
  0x4a   :  { %366 = vmatpush.msra.mxu3 %v2440_v6  ;;  %726 = vmatpush.msrb.mxu1 %v2421_v63 }
  0x4b   :  { %1763 = vmatmul.msk.f32.gmra.mxu0 %vm64_vm0, %v23_v18  ;;  %533 = vmatpush.msrb.mxu2 %v2480_v16 }
  0x4c   :  { %367 = vmatpush.msra.mxu3 %v2450_v8  ;;  %727 = vmatpush.msrb.mxu1 %v2431_v5 }
  0x4d   :  { %709 = vmatpush.msra.mxu0 %v2315_v45  ;;  %534 = vmatpush.msrb.mxu2 %v2492_v19 }
  0x4e   :  { %368 = vmatpush.msra.mxu3 %v2461_v12  ;;  %728 = vmatpush.msrb.mxu1 %v2440_v6 }
  0x4f   :  { %710 = vmatpush.msra.mxu0 %v2323_v46  ;;  %1787 = vmatmul.msk.f32.gmra.mxu2 %vm64_vm0, %v23_v18 }
  0x50   :  { %369 = vmatpush.msra.mxu3 %v2471_v14  ;;  %729 = vmatpush.msrb.mxu1 %v2450_v8 }
  0x51   :  { %711 = vmatpush.msra.mxu0 %v2336_v48  ;;  %535 = vmatpush.msrb.mxu2 %v2501_v22 }
  0x52   :  { %370 = vmatpush.msra.mxu3 %v2480_v16  ;;  %730 = vmatpush.msrb.mxu1 %v2461_v12 }
  0x53   :  { %712 = vmatpush.msra.mxu0 %v2347_v50  ;;  %536 = vmatpush.msrb.mxu2 %v2510_v24 }
  0x54   :  { %371 = vmatpush.msra.mxu3 %v2492_v19  ;;  %731 = vmatpush.msrb.mxu1 %v2471_v14 }
  0x55   :  { %713 = vmatpush.msra.mxu0 %v2358_v52  ;;  %537 = vmatpush.msrb.mxu2 %v2519_v26 }
  0x56   :  { %372 = vmatpush.msra.mxu3 %v2501_v22  ;;  %732 = vmatpush.msrb.mxu1 %v2480_v16 }
  0x57   :  { %538 = vmatpush.msrb.mxu2 %v2528_v28  ;;  %714 = vmatpush.msra.mxu0 %v2369_v54 }
  0x58   :  { %373 = vmatpush.msra.mxu3 %v2510_v24  ;;  %733 = vmatpush.msrb.mxu1 %v2492_v19 }
  0x59   :  { %539 = vmatpush.msrb.mxu2 %v2537_v29  ;;  %715 = vmatpush.msra.mxu0 %v2380_v56 }
  0x5a   :  { %374 = vmatpush.msra.mxu3 %v2519_v26  ;;  %734 = vmatpush.msrb.mxu1 %v2501_v22 }
  0x5b   :  { %540 = vmatpush.msrb.mxu2 %v2546_v33  ;;  %716 = vmatpush.msra.mxu0 %v2391_v58 }
  0x5c   :  { %375 = vmatpush.msra.mxu3 %v2528_v28  ;;  %735 = vmatpush.msrb.mxu1 %v2510_v24 }
  0x5d   :  { %841 = vmatpush.msra.mxu2 %v2080_v0  ;;  %1776 = vmatmul.msk.f32.gmra.mxu1 %vm64_vm0, %v24_v35 }
  0x5e   :  { %376 = vmatpush.msra.mxu3 %v2537_v29  ;;  %736 = vmatpush.msrb.mxu1 %v2519_v26 }
  0x5f   :  { %842 = vmatpush.msra.mxu2 %v2085_v1  ;;  %1764 = vmatmul.msk.f32.gmra.mxu0 %vm64_vm0, %v24_v35 }
  0x60   :  { %377 = vmatpush.msra.mxu3 %v2546_v33  ;;  %737 = vmatpush.msrb.mxu1 %v2528_v28 }
  0x61   :  { %378 = vmatmul.f32.vlgmr.msra.gmra.mxu3 %v2046_v37  ;;  %843 = vmatpush.msra.mxu2 %v2091_v2 }
  0x62   :  { %678 = vmatpush.msrb.mxu3 %v2080_v0  ;;  %738 = vmatpush.msrb.mxu1 %v2537_v29 }
  0x63   :  { %844 = vmatpush.msra.mxu2 %v2097_v3 }
  0x64   :  { %679 = vmatpush.msrb.mxu3 %v2085_v1  ;;  %739 = vmatpush.msrb.mxu1 %v2546_v33 }
  0x65   :  { %845 = vmatpush.msra.mxu2 %v2103_v4 }
  0x66   :  { %680 = vmatpush.msrb.mxu3 %v2091_v2  ;;  %1788 = vmatmul.msk.f32.gmra.mxu2 %vm64_vm0, %v24_v35 }
  0x67   :  { %846 = vmatpush.msra.mxu2 %v2115_v7 }
  0x68   :  { %681 = vmatpush.msrb.mxu3 %v2097_v3 }
  0x69   :  { %381 = vmatmul.f32.gmra.mxu3 %v2046_v37  ;;  %847 = vmatpush.msra.mxu2 %v2124_v9  ;;  %v25_v37 = vld [vmem:[%s3632_s0 + $0x28] sm:$0xff] }
  0x6a   :  { %682 = vmatpush.msrb.mxu3 %v2103_v4  ;;  %1777 = vmatmul.msk.f32.gmra.mxu1 %vm64_vm0, %v25_v37 }
  0x6b   :  { %848 = vmatpush.msra.mxu2 %v2133_v11  ;;  %1765 = vmatmul.msk.f32.gmra.mxu0 %vm64_vm0, %v25_v37 }
  0x6c   :  { %683 = vmatpush.msrb.mxu3 %v2115_v7 }
  0x6d   :  { %849 = vmatpush.msra.mxu2 %v2142_v13 }
  0x6e   :  { %684 = vmatpush.msrb.mxu3 %v2124_v9  ;;  %1789 = vmatmul.msk.f32.gmra.mxu2 %vm64_vm0, %v25_v37  ;;  %v28_v37 = vld [vmem:[%s3632_s0 + $0x40] sm:$0xff] }
  0x6f   :  { %850 = vmatpush.msra.mxu2 %v2151_v15 }
  0x70   :  { %685 = vmatpush.msrb.mxu3 %v2133_v11 }
  0x71   :  { %851 = vmatpush.msra.mxu2 %v2160_v17 }
  0x72   :  { %686 = vmatpush.msrb.mxu3 %v2142_v13  ;;  %1778 = vmatmul.msk.f32.gmra.mxu1 %vm64_vm0, %v26_v38 }
  0x73   :  { %852 = vmatpush.msra.mxu2 %v2174_v20  ;;  %1766 = vmatmul.msk.f32.gmra.mxu0 %vm64_vm0, %v26_v38 }
  0x74   :  { %687 = vmatpush.msrb.mxu3 %v2151_v15 }
  0x75   :  { %853 = vmatpush.msra.mxu2 %v2188_v23 }
  0x76   :  { %688 = vmatpush.msrb.mxu3 %v2160_v17  ;;  %1790 = vmatmul.msk.f32.gmra.mxu2 %vm64_vm0, %v26_v38 }
  0x77   :  { %854 = vmatpush.msra.mxu2 %v2201_v25 }
  0x78   :  { %689 = vmatpush.msrb.mxu3 %v2174_v20 }
  0x79   :  { %855 = vmatpush.msra.mxu2 %v2211_v27 }
  0x7a   :  { %690 = vmatpush.msrb.mxu3 %v2188_v23  ;;  %1779 = vmatmul.msk.f32.gmra.mxu1 %vm64_vm0, %v27_v59 }
  0x7b   :  { %856 = vmatpush.msra.mxu2 %v2226_v30  ;;  %1767 = vmatmul.msk.f32.gmra.mxu0 %vm64_vm0, %v27_v59 }
  0x7c   :  { %691 = vmatpush.msrb.mxu3 %v2201_v25 }
  0x7e   :  { %692 = vmatpush.msrb.mxu3 %v2211_v27  ;;  %1791 = vmatmul.msk.f32.gmra.mxu2 %vm64_vm0, %v27_v59 }
  0x80   :  { %693 = vmatpush.msrb.mxu3 %v2226_v30 }
  0x82   :  { %864 = vmatpush.msra.mxu3 %v2238_v32  ;;  %1780 = vmatmul.msk.f32.gmra.mxu1 %vm64_vm0, %v28_v37 }
  0x83   :  { %1768 = vmatmul.msk.f32.gmra.mxu0 %vm64_vm0, %v28_v37 }
  0x84   :  { %865 = vmatpush.msra.mxu3 %v2249_v34 }
  0x86   :  { %866 = vmatpush.msra.mxu3 %v2260_v36  ;;  %1792 = vmatmul.msk.f32.gmra.mxu2 %vm64_vm0, %v28_v37  ;;  %v2682_v37 = vperm.slane %v2640_v40, 1 }
  0x88   :  { %867 = vmatpush.msra.mxu3 %v2271_v39  ;;  %3711 = vst [vmem:[#allocation19_spill] sm:$0xff] %v2682_v37 }
  0x8a   :  { %868 = vmatpush.msra.mxu3 %v2281_v41 }
  0x8c   :  { %869 = vmatpush.msra.mxu3 %v2288_v42 }
  0x8e   :  { %870 = vmatpush.msra.mxu3 %v2298_v43 }
  0x90   :  { %871 = vmatpush.msra.mxu3 %v2307_v44  ;;  %v118_v53 = vpop.f32.mrf.mxu0 }
  0x91   :  { %v2647_v49 = vpop.f32.mrf.mxu1  ;;  %v119_v62 = vadd.f32 %v118_v53, %v2650_v51 }
  0x92   :  { %872 = vmatpush.msra.mxu3 %v2315_v45  ;;  %3706 = vst [vmem:[#allocation14_spill] sm:$0xff] %v2647_v49 }
  0x94   :  { %873 = vmatpush.msra.mxu3 %v2323_v46 }
  0x96   :  { %874 = vmatpush.msra.mxu3 %v2336_v48 }
  0x98   :  { %875 = vmatpush.msra.mxu3 %v2347_v50  ;;  %v121_v38 = vpop.f32.mrf.mxu0 }
  0x99   :  { %v2663_v35 = vpop.f32.mrf.mxu1  ;;  %v2672_v53 = vadd.f32 %v121_v38, %v2650_v51 }
  0x9a   :  { %876 = vmatpush.msra.mxu3 %v2358_v52  ;;  %3709 = vst [vmem:[#allocation17_spill] sm:$0xff] %v2663_v35 }
  0x9b   :  { %3710 = vst [vmem:[#allocation18_spill] sm:$0xff] %v2672_v53 }
  0x9c   :  { %877 = vmatpush.msra.mxu3 %v2369_v54  ;;  %v2718_v54 = vperm.slane %v2640_v40, 2 }
  0x9e   :  { %878 = vmatpush.msra.mxu3 %v2380_v56 }
  0xa0   :  { %879 = vmatpush.msra.mxu3 %v2391_v58 }
  0xa1   :  { %v171_v35 = vpop.f32.mrf.mxu1 }
  0xa4   :  { %v333_v57 = vpop.f32.mrf.mxu3 }
  0xa5   :  { %v334_v10 = vadd.f32 %v333_v57, %v2653_v55 }
  0xa7   :  { %v385_v18 = vadd.f32 %v334_v10, %v119_v62  ;;  %v29_v10 = vld [vmem:[%s3632_s0 + $0x48] sm:$0xff] }
  0xa8   :  { %1781 = vmatmul.msk.f32.gmra.mxu1 %vm64_vm0, %v29_v10  ;;  %1793 = vmatmul.msk.f32.gmra.mxu2 %vm64_vm0, %v29_v10 }
  0xa9   :  { %v1796_v59 = vmul.f32 -1.442695, %v385_v18  ;;  %1769 = vmatmul.msk.f32.gmra.mxu0 %vm64_vm0, %v29_v10 }
  0xaa   :  { %v174_v10 = vpop.f32.mrf.mxu1 }
  0xab   :  { %1837 = vpow2.f32 %v1796_v59  ;;  %v172_v59 = vadd.f32 %v171_v35, %v2682_v37  ;;  %v2695_v30 = vadd.f32 %v174_v10, %v2682_v37 }
  0xac   :  { %v336_v49 = vpop.f32.mrf.mxu3 }
  0xad   :  { %v337_v57 = vadd.f32 %v336_v49, %v2653_v55  ;;  %v2686_v49 = vperm.slane %v2645_v47, 1  ;;  %3713 = vst [vmem:[#allocation21_spill] sm:$0xff] %v2695_v30 }
  0xae   :  { %v224_v33 = vpop.f32.mrf.mxu2 }
  0xaf   :  { %v386_v62 = vadd.f32 %v337_v57, %v2672_v53  ;;  %3712 = vst [vmem:[#allocation20_spill] sm:$0xff] %v2686_v49  ;;  %v225_v40 = vadd.f32 %v224_v33, %v2718_v54 }
  0xb0   :  { %1782 = vmatmul.msk.f32.gmra.mxu1 %vm64_vm0, %v2179_v21  ;;  %1794 = vmatmul.msk.f32.gmra.mxu2 %vm64_vm0, %v2179_v21 }
  0xb1   :  { %v1797_v18 = vmul.f32 -1.442695, %v386_v62  ;;  %v1838_v38 = vpop.eup %1837 }
  0xb2   :  { %v393_v51 = vadd.f32 1.0, %v1838_v38 }
  0xb3   :  { %1839 = vpow2.f32 %v1797_v18 }
  0xb4   :  { %1841 = vrcp.f32 %v393_v51  ;;  %vm400_vm1 = vweird.f32 %v393_v51 }
  0xb8   :  { %1783 = vmatmul.msk.f32.gmra.mxu1 %vm64_vm0, %v2231_v31  ;;  %1795 = vmatmul.msk.f32.gmra.mxu2 %vm64_vm0, %v2231_v31 }
  0xb9   :  { %v1840_v58 = vpop.eup %1839 }
  0xba   :  { %v2698_v38 = vadd.f32 1.0, %v1840_v58  ;;  %v1842_v21 = vpop.eup %1841 }
  0xbb   :  { %v396_v10 = vmul.f32 %v1842_v21, %v393_v51  ;;  %vm401_vm2 = vweird.f32 %v1842_v21 }
  0xbc   :  { %vm2710_vm3 = vmor %vm400_vm1, %vm401_vm2  ;;  %vm415_vm5 = vweird.f32 %v2698_v38  ;;  %vm550_vm1 = vcmask 1043456  }
  0xc4   :  { %v356_v57 = vpop.f32.mrf.mxu3 }
  0xc5   :  { %v357_v53 = vadd.f32 %v356_v57, %v2686_v49 }
  0xc7   :  { %v425_v55 = vadd.f32 %v357_v53, %v172_v59 }
  0xc9   :  { %v1798_v62 = vmul.f32 -1.442695, %v425_v55 }
  0xcb   :  { %1843 = vpow2.f32 %v1798_v62  ;;  %v397_v62 = vsub.f32 1.0, %v396_v10 }
  0xcc   :  { %v359_v35 = vpop.f32.mrf.mxu3  ;;  %1845 = vrcp.f32 %v2698_v38 }
  0xcd   :  { %v360_v18 = vadd.f32 %v359_v35, %v2686_v49  ;;  %v398_v56 = vmul.f32 %v1842_v21, %v397_v62 }
  0xcf   :  { %v426_v53 = vadd.f32 %v360_v18, %v2695_v30  ;;  %v406_v18 = vand.u32 2147483648, %v393_v51  ;;  %v404_v30 = vand.u32 2147483647, %v393_v51 }
  0xd1   :  { %v1844_v55 = vpop.eup %1843  ;;  %v1799_v59 = vmul.f32 -1.442695, %v426_v53  ;;  %v407_v62 = vor.u32 1.1754944e-38, %v406_v18  ;;  %vm405_vm4 = vcmp.eq.f32.partialorder %v404_v30, 8.507059e+37 }
  0xd2   :  { %v433_v57 = vadd.f32 1.0, %v1844_v55  ;;  %v1846_v58 = vpop.eup %1845  ;;  %v399_v55 = vadd.f32 %v1842_v21, %v398_v56 }
  0xd3   :  { %1847 = vpow2.f32 %v1799_v59  ;;  %v411_v31 = vmul.f32 %v1846_v58, %v2698_v38  ;;  %vm416_vm6 = vweird.f32 %v1846_v58 }
  0xd4   :  { %1849 = vrcp.f32 %v433_v57  ;;  %v403_v29 = vsel %vm2710_vm3, %v1842_v21, %v399_v55  ;;  %vm440_vm7 = vweird.f32 %v433_v57  ;;  %v446_v55 = vand.u32 2147483648, %v433_v57  ;;  %vm2728_vm9 = vmor %vm415_vm5, %vm416_vm6 }
  0xd5   :  { %v412_v10 = vsub.f32 1.0, %v411_v31  ;;  %v421_v31 = vand.u32 2147483648, %v2698_v38  ;;  %v408_v18 = vsel %vm405_vm4, %v407_v62, %v403_v29  ;;  %v227_v29 = vpop.f32.mrf.mxu2 }
  0xd7   :  { %v413_v51 = vmul.f32 %v1846_v58, %v412_v10  ;;  %v444_v10 = vand.u32 2147483647, %v433_v57 }
  0xd9   :  { %v1848_v35 = vpop.eup %1847  ;;  %v414_v21 = vadd.f32 %v1846_v58, %v413_v51  ;;  %vm445_vm12 = vcmp.eq.f32.partialorder %v444_v10, 8.507059e+37 }
  0xda   :  { %v1850_v37 = vpop.eup %1849  ;;  %v2706_v49 = vadd.f32 1.0, %v1848_v35  ;;  %v2715_v35 = vperm.slane %v2645_v47, 2 }
  0xdb   :  { %v436_v27 = vmul.f32 %v1850_v37, %v433_v57  ;;  %vm441_vm8 = vweird.f32 %v1850_v37 }
  0xdc   :  { %1851 = vrcp.f32 %v2706_v49  ;;  %vm442_vm10 = vmor %vm440_vm7, %vm441_vm8  ;;  %vm455_vm13 = vweird.f32 %v2706_v49 }
  0xdd   :  { %v437_v53 = vsub.f32 1.0, %v436_v27 }
  0xdf   :  { %v438_v27 = vmul.f32 %v1850_v37, %v437_v53  ;;  %v419_v53 = vand.u32 2147483647, %v2698_v38 }
  0xe1   :  { %v439_v28 = vadd.f32 %v1850_v37, %v438_v27  ;;  %v418_v27 = vsel %vm2728_vm9, %v1846_v58, %v414_v21  ;;  %vm420_vm11 = vcmp.eq.f32.partialorder %v419_v53, 8.507059e+37 }
  0xe2   :  { %v1852_v25 = vpop.eup %1851 }
  0xe3   :  { %v451_v56 = vmul.f32 %v1852_v25, %v2706_v49  ;;  %v443_v33 = vsel %vm442_vm10, %v1850_v37, %v439_v28  ;;  %vm456_vm14 = vweird.f32 %v1852_v25  ;;  %v459_v37 = vand.u32 2147483647, %v2706_v49 }
  0xe4   :  { %v379_v52 = vpop.f32.mrf.mxu3  ;;  %vm457_vm15 = vmor %vm455_vm13, %vm456_vm14 }
  0xe5   :  { %v380_v47 = vadd.f32 %v379_v52, %v2715_v35  ;;  %v452_v23 = vsub.f32 1.0, %v451_v56  ;;  %v422_v52 = vor.u32 1.1754944e-38, %v421_v31  ;;  %v447_v56 = vor.u32 1.1754944e-38, %v446_v55 }
  0xe6   :  { %vm460_vm0 = vcmp.eq.f32.partialorder %v459_v37, 8.507059e+37 }
  0xe7   :  { %v465_v30 = vmul.f32 %v408_v18, %v380_v47  ;;  %v453_v62 = vmul.f32 %v1852_v25, %v452_v23  ;;  %v2736_v47 = vadd.f32 %v227_v29, %v2718_v54  ;;  %v448_v57 = vsel %vm445_vm12, %v447_v56, %v443_v33 }
  0xe8   :  { %v423_v18 = vsel %vm420_vm11, %v422_v52, %v418_v27  ;;  %v471_v28 = vsub.f32 1.0, %v448_v57  ;;  %v475_v21 = vmul.f32 0.0, %v448_v57 }
  0xe9   :  { %v467_v50 = vadd.f32 %v465_v30, %v225_v40  ;;  %v454_v40 = vadd.f32 %v1852_v25, %v453_v62 }
  0xeb   :  { %1853 = vtanh.f32 %v467_v50  ;;  %v461_v50 = vand.u32 2147483648, %v2706_v49  ;;  %v458_v53 = vsel %vm457_vm15, %v1852_v25, %v454_v40 }
  0xec   :  { %v382_v51 = vpop.f32.mrf.mxu3 }
  0xed   :  { %v383_v38 = vadd.f32 %v382_v51, %v2715_v35  ;;  %v462_v55 = vor.u32 1.1754944e-38, %v461_v50 }
  0xef   :  { %v466_v23 = vmul.f32 %v423_v18, %v383_v38  ;;  %v463_v10 = vsel %vm460_vm0, %v462_v55, %v458_v53  ;;  %v3748_v53 = vld [vmem:[#allocation16_spill] sm:$0xff] }
  0xf0   :  { %v472_v49 = vsub.f32 1.0, %v463_v10  ;;  %v476_v29 = vmul.f32 0.0, %v463_v10  ;;  %v3749_v10 = vld [vmem:[#allocation20_spill] sm:$0xff] }
  0xf1   :  { %v1854_v58 = vpop.eup %1853  ;;  %v468_v31 = vadd.f32 %v466_v23, %v2736_v47 }
  0xf2   :  { %v473_v30 = vmul.f32 %v1854_v58, %v471_v28 }
  0xf3   :  { %1855 = vtanh.f32 %v468_v31 }
  0xf4   :  { %v2742_v59 = vadd.f32 %v475_v21, %v473_v30 }
  0xf6   :  { %495 = vmatmul.f32.vlgmr.msrb.gmra.mxu0 %v2742_v59  ;;  %518 = vmatmul.f32.vlgmr.msra.gmra.mxu1 %v2742_v59 }
  0xf7   :  { %541 = vmatmul.f32.vlgmr.msrb.gmra.mxu2 %v2742_v59  ;;  %887 = vmatpush.msrb.mxu0 %v2402_v60 }
  0xf8   :  { %1039 = vmatpush.msra.mxu1 %v2080_v0  ;;  %1062 = vmatpush.msrb.mxu2 %v2238_v32  ;;  %v3661_v32 = vrot.slane %v2742_v59, 4 }
  0xf9   :  { %v1856_v25 = vpop.eup %1855  ;;  %888 = vmatpush.msrb.mxu0 %v2411_v61 }
  0xfa   :  { %v474_v52 = vmul.f32 %v1856_v25, %v472_v49  ;;  %1040 = vmatpush.msra.mxu1 %v2085_v1  ;;  %1063 = vmatpush.msrb.mxu2 %v2249_v34  ;;  %v3726_v34 = vld [vmem:[#allocation4_spill] sm:$0xff] }
  0xfb   :  { %889 = vmatpush.msrb.mxu0 %v2421_v63 }
  0xfc   :  { %v478_v33 = vadd.f32 %v476_v29, %v474_v52  ;;  %1041 = vmatpush.msra.mxu1 %v2091_v2  ;;  %1064 = vmatpush.msrb.mxu2 %v2260_v36  ;;  %v177_v2 = vpop.f32.mrf.mxu1  ;;  %v3727_v36 = vld [vmem:[#allocation9_spill] sm:$0xff]  ;;  %v3750_v29 = vld [vmem:[#allocation18_spill] sm:$0xff] }
  0xfd   :  { %890 = vmatpush.msrb.mxu0 %v2431_v5 }
  0xfe   :  { %498 = vmatmul.f32.gmra.mxu0 %v478_v33  ;;  %v663_v0 = vrot.slane %v478_v33, 4  ;;  %521 = vmatmul.f32.gmra.mxu1 %v478_v33 }
  0xff   :  { %544 = vmatmul.f32.gmra.mxu2 %v478_v33  ;;  %891 = vmatpush.msrb.mxu0 %v2440_v6 }
 0x100   :  { %v2762_v1 = vsel %vm550_vm1, %v3661_v32, %v663_v0  ;;  %1042 = vmatpush.msra.mxu1 %v2097_v3  ;;  %1065 = vmatpush.msrb.mxu2 %v2271_v39  ;;  %v3718_v3 = vld [vmem:[#allocation6_spill] sm:$0xff]  ;;  %v3751_v0 = vld [vmem:[#allocation21_spill] sm:$0xff] }
 0x101   :  { %892 = vmatpush.msrb.mxu0 %v2450_v8  ;;  %v3729_v39 = vld [vmem:[#allocation10_spill] sm:$0xff] }
 0x102   :  { %1043 = vmatpush.msra.mxu1 %v2103_v4  ;;  %1066 = vmatpush.msrb.mxu2 %v2281_v41  ;;  %v3719_v4 = vld [vmem:[#allocation11_spill] sm:$0xff] }
 0x103   :  { %893 = vmatpush.msrb.mxu0 %v2461_v12 }
 0x104   :  { %1044 = vmatpush.msra.mxu1 %v2115_v7  ;;  %1067 = vmatpush.msrb.mxu2 %v2288_v42  ;;  %v3720_v7 = vld [vmem:[#allocation2_spill] sm:$0xff]  ;;  %v2801_v41 = vpop.f32.mrf.mxu1  ;;  %v124_v42 = vpop.f32.mrf.mxu0 }
 0x105   :  { %894 = vmatpush.msrb.mxu0 %v2471_v14 }
 0x106   :  { %1045 = vmatpush.msra.mxu1 %v2124_v9  ;;  %1068 = vmatpush.msrb.mxu2 %v2298_v43  ;;  %v3721_v9 = vld [vmem:[#allocation7_spill] sm:$0xff] }
 0x107   :  { %895 = vmatpush.msrb.mxu0 %v2480_v16 }
 0x108   :  { %1046 = vmatpush.msra.mxu1 %v2133_v11  ;;  %1069 = vmatpush.msrb.mxu2 %v2307_v44  ;;  %v3722_v11 = vld [vmem:[#allocation12_spill] sm:$0xff]  ;;  %v2805_v44 = vpop.f32.mrf.mxu2 }
 0x109   :  { %896 = vmatpush.msrb.mxu0 %v2492_v19 }
 0x10a   :  { %1047 = vmatpush.msra.mxu1 %v2142_v13  ;;  %1070 = vmatpush.msrb.mxu2 %v2315_v45  ;;  %v3723_v13 = vld [vmem:[#allocation3_spill] sm:$0xff] }
 0x10b   :  { %897 = vmatpush.msrb.mxu0 %v2501_v22 }
 0x10c   :  { %1048 = vmatpush.msra.mxu1 %v2151_v15  ;;  %1071 = vmatpush.msrb.mxu2 %v2323_v46  ;;  %v3724_v15 = vld [vmem:[#allocation8_spill] sm:$0xff]  ;;  %v2803_v43 = vpop.f32.mrf.mxu1  ;;  %v2807_v45 = vpop.f32.mrf.mxu0 }
 0x10d   :  { %898 = vmatpush.msrb.mxu0 %v2510_v24 }
 0x10e   :  { %1049 = vmatpush.msra.mxu1 %v2160_v17  ;;  %1072 = vmatpush.msrb.mxu2 %v2336_v48  ;;  %v3725_v17 = vld [vmem:[#allocation13_spill] sm:$0xff] }
 0x10f   :  { %899 = vmatpush.msrb.mxu0 %v2519_v26 }
 0x110   :  { %1050 = vmatpush.msra.mxu1 %v2174_v20  ;;  %1073 = vmatpush.msrb.mxu2 %v3718_v3  ;;  %v3728_v20 = vld [vmem:[#allocation5_spill] sm:$0xff]  ;;  %v2811_v48 = vpop.f32.mrf.mxu2 }
 0x111   :  { %900 = vmatpush.msrb.mxu0 %v3719_v4 }
 0x112   :  { %1051 = vmatpush.msra.mxu1 %v3720_v7  ;;  %1074 = vmatpush.msrb.mxu2 %v3721_v9 }
 0x113   :  { %901 = vmatpush.msrb.mxu0 %v3722_v11 }
 0x114   :  { %1052 = vmatpush.msra.mxu1 %v3723_v13  ;;  %1075 = vmatpush.msrb.mxu2 %v3724_v15  ;;  %v2809_v46 = vpop.f32.mrf.mxu1  ;;  %v2813_v60 = vpop.f32.mrf.mxu0 }
 0x115   :  { %902 = vmatpush.msrb.mxu0 %v3725_v17  ;;  %3730 = vst [vmem:[#allocation6_spill] sm:$0xff] %v2809_v46 }
 0x116   :  { %1053 = vmatpush.msra.mxu1 %v3726_v34  ;;  %1076 = vmatpush.msrb.mxu2 %v3727_v36 }
 0x118   :  { %1054 = vmatpush.msra.mxu1 %v3728_v20  ;;  %1077 = vmatpush.msrb.mxu2 %v3729_v39  ;;  %v2817_v63 = vpop.f32.mrf.mxu2 }
 0x11c   :  { %v2815_v61 = vpop.f32.mrf.mxu1  ;;  %v2819_v5 = vpop.f32.mrf.mxu0 }
 0x11d   :  { %3731 = vst [vmem:[#allocation11_spill] sm:$0xff] %v2815_v61 }
 0x11e   :  { %3732 = vst [vmem:[#allocation2_spill] sm:$0xff] %v2819_v5 }
 0x120   :  { %v2823_v62 = vpop.f32.mrf.mxu2 }
 0x121   :  { %3734 = vst [vmem:[#allocation12_spill] sm:$0xff] %v2823_v62 }
 0x124   :  { %v2821_v6 = vpop.f32.mrf.mxu1  ;;  %v2825_v27 = vpop.f32.mrf.mxu0 }
 0x125   :  { %3733 = vst [vmem:[#allocation7_spill] sm:$0xff] %v2821_v6 }
 0x126   :  { %3735 = vst [vmem:[#allocation3_spill] sm:$0xff] %v2825_v27 }
 0x128   :  { %v2829_v51 = vpop.f32.mrf.mxu2 }
 0x129   :  { %3737 = vst [vmem:[#allocation13_spill] sm:$0xff] %v2829_v51 }
 0x12c   :  { %v2827_v56 = vpop.f32.mrf.mxu1  ;;  %v2831_v38 = vpop.f32.mrf.mxu0 }
 0x12d   :  { %3736 = vst [vmem:[#allocation8_spill] sm:$0xff] %v2827_v56 }
 0x12e   :  { %3738 = vst [vmem:[#allocation4_spill] sm:$0xff] %v2831_v38 }
 0x130   :  { %v2835_v18 = vpop.f32.mrf.mxu2 }
 0x131   :  { %3740 = vst [vmem:[#allocation5_spill] sm:$0xff] %v2835_v18 }
 0x134   :  { %v2833_v57 = vpop.f32.mrf.mxu1  ;;  %v2837_v40 = vpop.f32.mrf.mxu0 }
 0x135   :  { %3739 = vst [vmem:[#allocation9_spill] sm:$0xff] %v2833_v57 }
 0x136   :  { %3741 = vst [vmem:[#allocation10_spill] sm:$0xff] %v2837_v40 }
 0x138   :  { %v2841_v50 = vpop.f32.mrf.mxu2 }
 0x139   :  { %3743 = vst [vmem:[#allocation23_spill] sm:$0xff] %v2841_v50 }
 0x13c   :  { %v2839_v23 = vpop.f32.mrf.mxu1  ;;  %v2843_v28 = vpop.f32.mrf.mxu0 }
 0x13d   :  { %3742 = vst [vmem:[#allocation22_spill] sm:$0xff] %v2839_v23 }
 0x13e   :  { %3744 = vst [vmem:[#allocation24_spill] sm:$0xff] %v2843_v28 }
 0x140   :  { %v2847_v58 = vpop.f32.mrf.mxu2 }
 0x141   :  { %3746 = vst [vmem:[#allocation26_spill] sm:$0xff] %v2847_v58 }
 0x144   :  { %v2845_v37 = vpop.f32.mrf.mxu1 }
 0x145   :  { %3745 = vst [vmem:[#allocation25_spill] sm:$0xff] %v2845_v37 }
 0x148   :  { %v2849_v21 = vpop.f32.mrf.mxu2 }
 0x149   :  { %3747 = vst [vmem:[#allocation27_spill] sm:$0xff] %v2849_v21 }
 0x150   :  { %v2857_v20 = vpop.f32.mrf.mxu2 }
 0x151   :  { %3752 = vst [vmem:[#allocation18_spill] sm:$0xff] %v2857_v20 }
 0x173   :  { %v496_v31 = vpop.f32.mrf.mxu0  ;;  %v519_v30 = vpop.f32.mrf.mxu1 }
 0x174   :  { %v497_v55 = vadd.f32 %v496_v31, %v3748_v53  ;;  %v520_v49 = vadd.f32 %v519_v30, %v3749_v10  ;;  %v3753_v30 = vld [vmem:[#allocation19_spill] sm:$0xff] }
 0x175   :  { %v3147_v27 = vadd.f32 %v2803_v43, %v3753_v30 }
 0x176   :  { %v551_v25 = vrot.slane %v497_v55, 4  ;;  %v598_v52 = vrot.slane %v520_v49, 4  ;;  %v178_v55 = vadd.f32 %v177_v2, %v3753_v30  ;;  %v3754_v49 = vld [vmem:[#allocation15_spill] sm:$0xff] }
 0x177   :  { %v128_v6 = vadd.f32 %v2807_v45, %v3754_v49  ;;  %3769 = vst [vmem:[#allocation38_spill] sm:$0xff] %v3147_v27 }
 0x178   :  { %v556_v33 = vadd.f32 %v551_v25, %v3750_v29  ;;  %v603_v3 = vadd.f32 %v598_v52, %v3751_v0  ;;  %v125_v29 = vadd.f32 %v124_v42, %v3754_v49 }
 0x17a   :  { %v1800_v7 = vmul.f32 -1.442695, %v556_v33  ;;  %v1802_v9 = vmul.f32 -1.442695, %v603_v3  ;;  %v542_v2 = vpop.f32.mrf.mxu2 }
 0x17b   :  { %v499_v13 = vpop.f32.mrf.mxu0  ;;  %v522_v15 = vpop.f32.mrf.mxu1 }
 0x17c   :  { %1857 = vpow2.f32 %v1800_v7  ;;  %v500_v34 = vadd.f32 %v499_v13, %v3748_v53  ;;  %v523_v36 = vadd.f32 %v522_v15, %v3749_v10 }
 0x17d   :  { %1859 = vpow2.f32 %v1802_v9 }
 0x17e   :  { %v552_v39 = vrot.slane %v500_v34, 4  ;;  %v599_v31 = vrot.slane %v523_v36, 4 }
 0x180   :  { %v553_v0 = vsel %vm550_vm1, %v551_v25, %v552_v39  ;;  %v600_v33 = vsel %vm550_vm1, %v598_v52, %v599_v31 }
 0x181   :  { %v557_v3 = vadd.f32 %v553_v0, %v125_v29  ;;  %v604_v32 = vadd.f32 %v600_v33, %v178_v55 }
 0x182   :  { %v1858_v7 = vpop.eup %1857 }
 0x183   :  { %v1860_v37 = vpop.eup %1859  ;;  %v564_v13 = vadd.f32 1.0, %v1858_v7  ;;  %v1801_v21 = vmul.f32 -1.442695, %v557_v3  ;;  %v1803_v9 = vmul.f32 -1.442695, %v604_v32  ;;  %v545_v3 = vpop.f32.mrf.mxu2 }
 0x184   :  { %v2863_v15 = vadd.f32 1.0, %v1860_v37 }
 0x185   :  { %1861 = vrcp.f32 %v564_v13  ;;  %v575_v55 = vand.u32 2147483647, %v564_v13  ;;  %v577_v29 = vand.u32 2147483648, %v564_v13  ;;  %vm571_vm3 = vweird.f32 %v564_v13 }
 0x186   :  { %1863 = vrcp.f32 %v2863_v15  ;;  %vm618_vm6 = vweird.f32 %v2863_v15 }
 0x187   :  { %1865 = vpow2.f32 %v1801_v21  ;;  %v543_v21 = vadd.f32 %v542_v2, %v2715_v35  ;;  %v578_v7 = vor.u32 1.1754944e-38, %v577_v29  ;;  %vm576_vm5 = vcmp.eq.f32.partialorder %v575_v55, 8.507059e+37 }
 0x188   :  { %1867 = vpow2.f32 %v1803_v9 }
 0x189   :  { %v645_v20 = vrot.slane %v543_v21, 4 }
 0x18b   :  { %v1862_v42 = vpop.eup %1861 }
 0x18c   :  { %v2866_v34 = vpop.eup %1863  ;;  %v567_v25 = vmul.f32 %v1862_v42, %v564_v13  ;;  %vm572_vm2 = vweird.f32 %v1862_v42 }
 0x18d   :  { %v1866_v52 = vpop.eup %1865  ;;  %v614_v32 = vmul.f32 %v2866_v34, %v2863_v15  ;;  %vm573_vm4 = vmor %vm571_vm3, %vm572_vm2  ;;  %vm619_vm7 = vweird.f32 %v2866_v34 }
 0x18e   :  { %v1868_v36 = vpop.eup %1867  ;;  %v568_v39 = vsub.f32 1.0, %v567_v25  ;;  %v565_v31 = vadd.f32 1.0, %v1866_v52  ;;  %vm2879_vm11 = vmor %vm618_vm6, %vm619_vm7 }
 0x18f   :  { %v612_v0 = vadd.f32 1.0, %v1868_v36  ;;  %v615_v9 = vsub.f32 1.0, %v614_v32  ;;  %v546_v36 = vadd.f32 %v545_v3, %v2715_v35 }
 0x190   :  { %v569_v37 = vmul.f32 %v1862_v42, %v568_v39  ;;  %1869 = vrcp.f32 %v565_v31  ;;  %v590_v29 = vand.u32 2147483647, %v565_v31  ;;  %v592_v32 = vand.u32 2147483648, %v565_v31 }
 0x191   :  { %1871 = vrcp.f32 %v612_v0  ;;  %v616_v2 = vmul.f32 %v2866_v34, %v615_v9  ;;  %v639_v55 = vand.u32 2147483648, %v612_v0  ;;  %v637_v3 = vand.u32 2147483647, %v612_v0 }
 0x192   :  { %v570_v33 = vadd.f32 %v1862_v42, %v569_v37  ;;  %v646_v37 = vrot.slane %v546_v36, 4  ;;  %vm586_vm10 = vweird.f32 %v565_v31  ;;  %vm633_vm12 = vweird.f32 %v612_v0 }
 0x193   :  { %v640_v36 = vor.u32 1.1754944e-38, %v639_v55  ;;  %vm591_vm15 = vcmp.eq.f32.partialorder %v590_v29, 8.507059e+37  ;;  %vm638_vm0 = vcmp.eq.f32.partialorder %v637_v3, 8.507059e+37 }
 0x194   :  { %v574_v25 = vsel %vm573_vm4, %v1862_v42, %v570_v33 }
 0x195   :  { %v579_v52 = vsel %vm576_vm5, %v578_v7, %v574_v25  ;;  %v617_v7 = vadd.f32 %v2866_v34, %v616_v2 }
 0x196   :  { %v1870_v58 = vpop.eup %1869  ;;  %v650_v39 = vmul.f32 %v645_v20, %v579_v52  ;;  %v647_v52 = vsel %vm550_vm1, %v645_v20, %v646_v37 }
 0x197   :  { %v1872_v23 = vpop.eup %1871  ;;  %v582_v28 = vmul.f32 %v1870_v58, %v565_v31  ;;  %vm587_vm8 = vweird.f32 %v1870_v58 }
 0x198   :  { %v629_v57 = vmul.f32 %v1872_v23, %v612_v0  ;;  %v652_v42 = vadd.f32 %v650_v39, %v2736_v47  ;;  %vm634_vm9 = vweird.f32 %v1872_v23  ;;  %v624_v47 = vand.u32 2147483648, %v2863_v15  ;;  %vm588_vm13 = vmor %vm586_vm10, %vm587_vm8 }
 0x199   :  { %v583_v50 = vsub.f32 1.0, %v582_v28  ;;  %v622_v28 = vand.u32 2147483647, %v2863_v15  ;;  %vm635_vm14 = vmor %vm633_vm12, %vm634_vm9  ;;  %v231_v15 = vadd.f32 %v2805_v44, %v2718_v54 }
 0x19a   :  { %v630_v13 = vsub.f32 1.0, %v629_v57  ;;  %1873 = vtanh.f32 %v652_v42 }
 0x19b   :  { %v584_v21 = vmul.f32 %v1870_v58, %v583_v50  ;;  %v593_v50 = vor.u32 1.1754944e-38, %v592_v32  ;;  %vm623_vm2 = vcmp.eq.f32.partialorder %v622_v28, 8.507059e+37  ;;  %v2912_v28 = vld [vmem:[%s3630_s2 + $0x168] sm:$0xff] }
 0x19c   :  { %v631_v33 = vmul.f32 %v1872_v23, %v630_v13  ;;  %v621_v13 = vsel %vm2879_vm11, %v2866_v34, %v617_v7 }
 0x19d   :  { %v585_v9 = vadd.f32 %v1870_v58, %v584_v21  ;;  %v625_v21 = vor.u32 1.1754944e-38, %v624_v47  ;;  %v2918_v47 = vld [vmem:[%s3630_s2 + $0x170] sm:$0xff] }
 0x19e   :  { %v632_v25 = vadd.f32 %v1872_v23, %v631_v33  ;;  %v3757_v33 = vrot.slane %v2742_v59, 4  ;;  %v2906_v59 = vld [vmem:[%s3630_s2 + $0x178] sm:$0xff] }
 0x19f   :  { %v589_v31 = vsel %vm588_vm13, %v1870_v58, %v585_v9  ;;  %v626_v42 = vsel %vm623_vm2, %v625_v21, %v621_v13  ;;  %v2960_v13 = vld [vmem:[%s3630_s2 + $0x130] sm:$0xff]  ;;  %v2988_v21 = vld [vmem:[%s3630_s2 + $0x108] sm:$0xff] }
 0x1a0   :  { %v594_v39 = vsel %vm591_vm15, %v593_v50, %v589_v31  ;;  %v636_v2 = vsel %vm635_vm14, %v1872_v23, %v632_v25  ;;  %v1874_v58 = vpop.eup %1873  ;;  %v656_v29 = vsub.f32 1.0, %v626_v42  ;;  %v667_v3 = vmul.f32 %v3757_v33, %v626_v42  ;;  %v2924_v25 = vld [vmem:[%s3630_s2 + $0x160] sm:$0xff]  ;;  %v2942_v31 = vld [vmem:[%s3630_s2 + $0x148] sm:$0xff] }
 0x1a1   :  { %v641_v0 = vsel %vm638_vm0, %v640_v36, %v636_v2  ;;  %v651_v32 = vmul.f32 %v647_v52, %v594_v39  ;;  %v2930_v52 = vld [vmem:[%s3630_s2 + $0x150] sm:$0xff]  ;;  %v2936_v36 = vld [vmem:[%s3630_s2 + $0x158] sm:$0xff]  ;;  %v2954_v2 = vld [vmem:[%s3630_s2 + $0x140] sm:$0xff] }
 0x1a2   :  { %v668_v20 = vmul.f32 %v2762_v1, %v641_v0  ;;  %v658_v23 = vmul.f32 %v1874_v58, %v656_v29  ;;  %v657_v55 = vsub.f32 1.0, %v641_v0  ;;  %v2948_v39 = vld [vmem:[%s3630_s2 + $0x138] sm:$0xff]  ;;  %v2975_v0 = vld [vmem:[%s3630_s2 + $0x120] sm:$0xff]  ;;  %v3033_v58 = vld [vmem:[%s3630_s2 + $0xc8] sm:$0xff] }
 0x1a3   :  { %v653_v37 = vadd.f32 %v651_v32, %v231_v15  ;;  %v2969_v15 = vld [vmem:[%s3630_s2 + $0x118] sm:$0xff]  ;;  %v2981_v32 = vld [vmem:[%s3630_s2 + $0x128] sm:$0xff]  ;;  %v3020_v42 = vld [vmem:[%s3630_s2 + $0xe0] sm:$0xff] }
 0x1a4   :  { %v669_v9 = vadd.f32 %v667_v3, %v658_v23  ;;  %v3046_v29 = vld [vmem:[%s3630_s2 + $0xb0] sm:$0xff]  ;;  %v3059_v23 = vld [vmem:[%s3630_s2 + $0x98] sm:$0xff]  ;;  %v3085_v33 = vld [vmem:[%s3630_s2 + $0x68] sm:$0xff] }
 0x1a5   :  { %1875 = vtanh.f32 %v653_v37  ;;  %v3007_v37 = vld [vmem:[%s3630_s2 + $0xf8] sm:$0xff]  ;;  %3760 = vst [vmem:[#allocation29_spill] sm:$0xff] %v3085_v33  ;;  %v3098_v3 = vld [vmem:[%s3630_s2 + $0x50] sm:$0xff] }
 0x1a6   :  { %v673_v57 = vrot.slane %v669_v9, 4  ;;  %3762 = vst [vmem:[#allocation31_spill] sm:$0xff] %v3098_v3  ;;  %v3130_v9 = vld [vmem:[%s3630_s2] sm:$0xff] }
 0x1a7   :  { %3767 = vst [vmem:[#allocation36_spill] sm:$0xff] %v3130_v9 }
 0x1ab   :  { %v1876_v34 = vpop.eup %1875 }
 0x1ac   :  { %v659_v7 = vmul.f32 %v1876_v34, %v657_v55  ;;  %v3072_v55 = vld [vmem:[%s3630_s2 + $0x80] sm:$0xff]  ;;  %v3111_v34 = vld [vmem:[%s3630_s2 + $0x38] sm:$0xff] }
 0x1ad   :  { %3758 = vst [vmem:[#allocation21_spill] sm:$0xff] %v3072_v55 }
 0x1ae   :  { %v670_v44 = vadd.f32 %v668_v20, %v659_v7  ;;  %v2994_v20 = vld [vmem:[%s3630_s2 + $0x110] sm:$0xff]  ;;  %3764 = vst [vmem:[#allocation33_spill] sm:$0xff] %v3111_v34  ;;  %v3124_v7 = vld [vmem:[%s3630_s2 + $0x20] sm:$0xff] }
 0x1af   :  { %3766 = vst [vmem:[#allocation35_spill] sm:$0xff] %v3124_v7 }
 0x1b0   :  { %v2894_v50 = vrot.slane %v670_v44, 4 }
 0x1b2   :  { %v2898_v1 = vsel %vm550_vm1, %v673_v57, %v2894_v50  ;;  %v181_v57 = vadd.f32 %v2801_v41, %v3753_v30 }
 0x1b3   :  { %694 = vmatmul.f32.vlgmr.msrb.gmra.mxu3 %v2898_v1  ;;  %717 = vmatmul.f32.vlgmr.msra.gmra.mxu0 %v2898_v1 }
 0x1b4   :  { %740 = vmatmul.f32.vlgmr.msrb.gmra.mxu1 %v2898_v1  ;;  %1085 = vmatpush.msrb.mxu3 %v2906_v59 }
 0x1b5   :  { %1202 = vmatpush.msra.mxu0 %v2912_v28  ;;  %1225 = vmatpush.msrb.mxu1 %v2918_v47 }
 0x1b6   :  { %1086 = vmatpush.msrb.mxu3 %v2924_v25 }
 0x1b7   :  { %1203 = vmatpush.msra.mxu0 %v2930_v52  ;;  %1226 = vmatpush.msrb.mxu1 %v2936_v36 }
 0x1b8   :  { %1087 = vmatpush.msrb.mxu3 %v2942_v31 }
 0x1b9   :  { %1204 = vmatpush.msra.mxu0 %v2948_v39  ;;  %1227 = vmatpush.msrb.mxu1 %v2954_v2 }
 0x1ba   :  { %1088 = vmatpush.msrb.mxu3 %v2960_v13 }
 0x1bb   :  { %697 = vmatmul.f32.gmra.mxu3 %v2894_v50  ;;  %720 = vmatmul.f32.gmra.mxu0 %v2894_v50 }
 0x1bc   :  { %743 = vmatmul.f32.gmra.mxu1 %v2894_v50  ;;  %1089 = vmatpush.msrb.mxu3 %v2969_v15 }
 0x1bd   :  { %1205 = vmatpush.msra.mxu0 %v2975_v0  ;;  %1228 = vmatpush.msrb.mxu1 %v2981_v32 }
 0x1be   :  { %1090 = vmatpush.msrb.mxu3 %v2450_v8  ;;  %v3001_v8 = vld [vmem:[%s3630_s2 + $0xf0] sm:$0xff] }
 0x1bf   :  { %1206 = vmatpush.msra.mxu0 %v2988_v21  ;;  %1229 = vmatpush.msrb.mxu1 %v2994_v20 }
 0x1c0   :  { %1091 = vmatpush.msrb.mxu3 %v2461_v12  ;;  %v3014_v12 = vld [vmem:[%s3630_s2 + $0xd8] sm:$0xff] }
 0x1c1   :  { %1207 = vmatpush.msra.mxu0 %v3001_v8  ;;  %1230 = vmatpush.msrb.mxu1 %v3007_v37 }
 0x1c2   :  { %1092 = vmatpush.msrb.mxu3 %v2471_v14  ;;  %v3027_v14 = vld [vmem:[%s3630_s2 + $0xc0] sm:$0xff] }
 0x1c3   :  { %1208 = vmatpush.msra.mxu0 %v3014_v12  ;;  %1231 = vmatpush.msrb.mxu1 %v3020_v42 }
 0x1c4   :  { %1093 = vmatpush.msrb.mxu3 %v2480_v16  ;;  %v3040_v16 = vld [vmem:[%s3630_s2 + $0xa8] sm:$0xff] }
 0x1c5   :  { %1209 = vmatpush.msra.mxu0 %v3027_v14  ;;  %1232 = vmatpush.msrb.mxu1 %v3033_v58 }
 0x1c6   :  { %1094 = vmatpush.msrb.mxu3 %v2492_v19  ;;  %v3053_v19 = vld [vmem:[%s3630_s2 + $0x90] sm:$0xff] }
 0x1c7   :  { %1210 = vmatpush.msra.mxu0 %v3040_v16  ;;  %1233 = vmatpush.msrb.mxu1 %v3046_v29 }
 0x1c8   :  { %1095 = vmatpush.msrb.mxu3 %v2501_v22  ;;  %v3066_v22 = vld [vmem:[%s3630_s2 + $0x78] sm:$0xff] }
 0x1c9   :  { %1211 = vmatpush.msra.mxu0 %v3053_v19  ;;  %1234 = vmatpush.msrb.mxu1 %v3059_v23 }
 0x1ca   :  { %1096 = vmatpush.msrb.mxu3 %v2510_v24  ;;  %v3079_v24 = vld [vmem:[%s3630_s2 + $0x60] sm:$0xff] }
 0x1cb   :  { %1212 = vmatpush.msra.mxu0 %v3066_v22  ;;  %1235 = vmatpush.msrb.mxu1 %v3072_v55  ;;  %3759 = vst [vmem:[#allocation28_spill] sm:$0xff] %v3079_v24 }
 0x1cc   :  { %1097 = vmatpush.msrb.mxu3 %v2519_v26  ;;  %v3092_v26 = vld [vmem:[%s3630_s2 + $0x48] sm:$0xff] }
 0x1cd   :  { %1213 = vmatpush.msra.mxu0 %v3079_v24  ;;  %1236 = vmatpush.msrb.mxu1 %v3085_v33  ;;  %3761 = vst [vmem:[#allocation30_spill] sm:$0xff] %v3092_v26 }
 0x1ce   :  { %1098 = vmatpush.msrb.mxu3 %v3719_v4  ;;  %v3105_v4 = vld [vmem:[%s3630_s2 + $0x30] sm:$0xff] }
 0x1cf   :  { %1214 = vmatpush.msra.mxu0 %v3092_v26  ;;  %1237 = vmatpush.msrb.mxu1 %v3098_v3  ;;  %3763 = vst [vmem:[#allocation32_spill] sm:$0xff] %v3105_v4 }
 0x1d0   :  { %1099 = vmatpush.msrb.mxu3 %v3722_v11  ;;  %v3118_v11 = vld [vmem:[%s3630_s2 + $0x18] sm:$0xff] }
 0x1d1   :  { %1215 = vmatpush.msra.mxu0 %v3105_v4  ;;  %1238 = vmatpush.msrb.mxu1 %v3111_v34  ;;  %3765 = vst [vmem:[#allocation34_spill] sm:$0xff] %v3118_v11 }
 0x1d2   :  { %1100 = vmatpush.msrb.mxu3 %v3725_v17  ;;  %v3136_v17 = vld [vmem:[%s3630_s2 + $0x8] sm:$0xff] }
 0x1d3   :  { %1216 = vmatpush.msra.mxu0 %v3118_v11  ;;  %1239 = vmatpush.msrb.mxu1 %v3124_v7  ;;  %3768 = vst [vmem:[#allocation37_spill] sm:$0xff] %v3136_v17 }
 0x1d5   :  { %1217 = vmatpush.msra.mxu0 %v3130_v9  ;;  %1240 = vmatpush.msrb.mxu1 %v3136_v17 }
 0x230   :  { %v718_v44 = vpop.f32.mrf.mxu0 }
 0x231   :  { %v719_v40 = vadd.f32 %v718_v44, %v3749_v10 }
 0x233   :  { %v787_v56 = vadd.f32 %v719_v40, %v181_v57 }
 0x235   :  { %v1806_v18 = vmul.f32 -1.442695, %v787_v56 }
 0x236   :  { %v695_v51 = vpop.f32.mrf.mxu3 }
 0x237   :  { %1877 = vpow2.f32 %v1806_v18  ;;  %v696_v38 = vadd.f32 %v695_v51, %v3748_v53  ;;  %v3155_v51 = vadd.f32 %v2813_v60, %v3754_v49 }
 0x238   :  { %v721_v61 = vpop.f32.mrf.mxu0 }
 0x239   :  { %v747_v62 = vadd.f32 %v696_v38, %v128_v6  ;;  %v722_v5 = vadd.f32 %v721_v61, %v3749_v10  ;;  %3770 = vst [vmem:[#allocation39_spill] sm:$0xff] %v3155_v51 }
 0x23b   :  { %v1804_v41 = vmul.f32 -1.442695, %v747_v62  ;;  %v788_v44 = vadd.f32 %v722_v5, %v3147_v27 }
 0x23d   :  { %v1878_v40 = vpop.eup %1877  ;;  %1879 = vpow2.f32 %v1804_v41  ;;  %v1807_v56 = vmul.f32 -1.442695, %v788_v44 }
 0x23e   :  { %v3151_v57 = vadd.f32 1.0, %v1878_v40  ;;  %v698_v45 = vpop.f32.mrf.mxu3 }
 0x23f   :  { %1881 = vpow2.f32 %v1807_v56  ;;  %v699_v43 = vadd.f32 %v698_v45, %v3748_v53 }
 0x240   :  { %1883 = vrcp.f32 %v3151_v57  ;;  %vm802_vm8 = vweird.f32 %v3151_v57 }
 0x241   :  { %v748_v61 = vadd.f32 %v699_v43, %v3155_v51 }
 0x243   :  { %v1880_v6 = vpop.eup %1879  ;;  %v1805_v62 = vmul.f32 -1.442695, %v748_v61 }
 0x244   :  { %v755_v5 = vadd.f32 1.0, %v1880_v6  ;;  %v741_v6 = vpop.f32.mrf.mxu1 }
 0x245   :  { %v1882_v38 = vpop.eup %1881  ;;  %1885 = vpow2.f32 %v1805_v62 }
 0x246   :  { %1887 = vrcp.f32 %v755_v5  ;;  %v1884_v18 = vpop.eup %1883  ;;  %v3160_v41 = vadd.f32 1.0, %v1882_v38  ;;  %v768_v46 = vand.u32 2147483648, %v755_v5  ;;  %v766_v30 = vand.u32 2147483647, %v755_v5 }
 0x247   :  { %v798_v60 = vmul.f32 %v1884_v18, %v3151_v57  ;;  %vm762_vm4 = vweird.f32 %v755_v5  ;;  %vm803_vm7 = vweird.f32 %v1884_v18 }
 0x248   :  { %1889 = vrcp.f32 %v3160_v41  ;;  %vm767_vm6 = vcmp.eq.f32.partialorder %v766_v30, 8.507059e+37  ;;  %vm3174_vm10 = vmor %vm802_vm8, %vm803_vm7  ;;  %vm817_vm0 = vweird.f32 %v3160_v41 }
 0x249   :  { %v799_v49 = vsub.f32 1.0, %v798_v60  ;;  %v742_v60 = vadd.f32 %v741_v6, %v2715_v35 }
 0x24b   :  { %v1886_v44 = vpop.eup %1885  ;;  %v800_v27 = vmul.f32 %v1884_v18, %v799_v49  ;;  %v808_v49 = vand.u32 2147483648, %v3151_v57 }
 0x24c   :  { %v1888_v40 = vpop.eup %1887  ;;  %v756_v56 = vadd.f32 1.0, %v1886_v44  ;;  %v769_v44 = vor.u32 1.1754944e-38, %v768_v46  ;;  %v806_v46 = vand.u32 2147483647, %v3151_v57 }
 0x24d   :  { %v758_v45 = vmul.f32 %v1888_v40, %v755_v5  ;;  %vm763_vm3 = vweird.f32 %v1888_v40  ;;  %v801_v7 = vadd.f32 %v1884_v18, %v800_v27 }
 0x24e   :  { %1891 = vrcp.f32 %v756_v56  ;;  %v3164_v43 = vpop.eup %1889  ;;  %vm764_vm5 = vmor %vm762_vm4, %vm763_vm3  ;;  %v783_v5 = vand.u32 2147483648, %v756_v56  ;;  %v781_v30 = vand.u32 2147483647, %v756_v56  ;;  %vm777_vm11 = vweird.f32 %v756_v56 }
 0x24f   :  { %v759_v61 = vsub.f32 1.0, %v758_v45  ;;  %v813_v38 = vmul.f32 %v3164_v43, %v3160_v41  ;;  %vm807_vm13 = vcmp.eq.f32.partialorder %v806_v46, 8.507059e+37  ;;  %vm818_vm15 = vweird.f32 %v3164_v43 }
 0x250   :  { %v784_v57 = vor.u32 1.1754944e-38, %v783_v5  ;;  %vm782_vm14 = vcmp.eq.f32.partialorder %v781_v30, 8.507059e+37  ;;  %vm819_vm2 = vmor %vm817_vm0, %vm818_vm15 }
 0x251   :  { %v760_v62 = vmul.f32 %v1888_v40, %v759_v61  ;;  %v814_v45 = vsub.f32 1.0, %v813_v38  ;;  %v234_v61 = vadd.f32 %v2811_v48, %v2718_v54  ;;  %v805_v48 = vsel %vm3174_vm10, %v1884_v18, %v801_v7 }
 0x252   :  { %v3186_v7 = vadd.f32 %v2817_v63, %v2718_v54  ;;  %v823_v18 = vand.u32 2147483648, %v3160_v41 }
 0x253   :  { %v761_v51 = vadd.f32 %v1888_v40, %v760_v62 }
 0x254   :  { %v1892_v10 = vpop.eup %1891  ;;  %v824_v30 = vor.u32 1.1754944e-38, %v823_v18  ;;  %v3286_v18 = vld [vmem:[%s3630_s2 + $0x40] sm:$0xff] }
 0x255   :  { %v765_v53 = vsel %vm764_vm5, %v1888_v40, %v761_v51  ;;  %v773_v17 = vmul.f32 %v1892_v10, %v756_v56  ;;  %vm778_vm9 = vweird.f32 %v1892_v10  ;;  %v809_v40 = vor.u32 1.1754944e-38, %v808_v49  ;;  %3774 = vst [vmem:[#allocation41_spill] sm:$0xff] %v3286_v18 }
 0x256   :  { %v770_v9 = vsel %vm767_vm6, %v769_v44, %v765_v53  ;;  %v744_v53 = vpop.f32.mrf.mxu1  ;;  %vm779_vm12 = vmor %vm777_vm11, %vm778_vm9  ;;  %v821_v49 = vand.u32 2147483647, %v3160_v41 }
 0x257   :  { %v774_v11 = vsub.f32 1.0, %v773_v17  ;;  %v827_v62 = vmul.f32 %v770_v9, %v742_v60  ;;  %v815_v17 = vmul.f32 %v3164_v43, %v814_v45  ;;  %v810_v44 = vsel %vm807_vm13, %v809_v40, %v805_v48  ;;  %v3230_v40 = vld [vmem:[%s3630_s2 + $0xe8] sm:$0xff] }
 0x258   :  { %v833_v45 = vsub.f32 1.0, %v810_v44  ;;  %v837_v46 = vmul.f32 %v810_v44, %v2898_v1  ;;  %vm822_vm3 = vcmp.eq.f32.partialorder %v821_v49, 8.507059e+37  ;;  %v3262_v44 = vld [vmem:[%s3630_s2 + $0x88] sm:$0xff]  ;;  %v3777_v49 = vld [vmem:[#allocation34_spill] sm:$0xff] }
 0x259   :  { %v775_v6 = vmul.f32 %v1892_v10, %v774_v11  ;;  %v829_v27 = vadd.f32 %v827_v62, %v234_v61  ;;  %v745_v11 = vadd.f32 %v744_v53, %v2715_v35  ;;  %v816_v61 = vadd.f32 %v3164_v43, %v815_v17 }
 0x25b   :  { %v776_v9 = vadd.f32 %v1892_v10, %v775_v6  ;;  %1893 = vtanh.f32 %v829_v27  ;;  %v820_v6 = vsel %vm819_vm2, %v3164_v43, %v816_v61  ;;  %v3278_v61 = vld [vmem:[%s3630_s2 + $0x58] sm:$0xff] }
 0x25c   :  { %v825_v51 = vsel %vm822_vm3, %v824_v30, %v820_v6  ;;  %3773 = vst [vmem:[#allocation40_spill] sm:$0xff] %v3278_v61  ;;  %v3781_v30 = vld [vmem:[#allocation16_spill] sm:$0xff] }
 0x25d   :  { %v780_v38 = vsel %vm779_vm12, %v1892_v10, %v776_v9  ;;  %v834_v41 = vsub.f32 1.0, %v825_v51  ;;  %v838_v27 = vmul.f32 %v825_v51, %v2894_v50  ;;  %v3222_v9 = vld [vmem:[%s3630_s2 + $0x100] sm:$0xff] }
 0x25e   :  { %v785_v60 = vsel %vm782_vm14, %v784_v57, %v780_v38  ;;  %v3238_v57 = vld [vmem:[%s3630_s2 + $0xd0] sm:$0xff]  ;;  %v3254_v38 = vld [vmem:[%s3630_s2 + $0xa0] sm:$0xff] }
 0x25f   :  { %v828_v56 = vmul.f32 %v785_v60, %v745_v11  ;;  %v3246_v11 = vld [vmem:[%s3630_s2 + $0xb8] sm:$0xff]  ;;  %v3270_v60 = vld [vmem:[%s3630_s2 + $0x70] sm:$0xff] }
 0x261   :  { %v1894_v10 = vpop.eup %1893  ;;  %v830_v62 = vadd.f32 %v828_v56, %v3186_v7  ;;  %v3294_v56 = vld [vmem:[%s3630_s2 + $0x28] sm:$0xff] }
 0x262   :  { %v835_v5 = vmul.f32 %v1894_v10, %v833_v45  ;;  %3775 = vst [vmem:[#allocation42_spill] sm:$0xff] %v3294_v56  ;;  %v3302_v45 = vld [vmem:[%s3630_s2 + $0x10] sm:$0xff]  ;;  %v3778_v10 = vld [vmem:[#allocation35_spill] sm:$0xff] }
 0x263   :  { %1895 = vtanh.f32 %v830_v62  ;;  %3776 = vst [vmem:[#allocation43_spill] sm:$0xff] %v3302_v45  ;;  %v3779_v62 = vld [vmem:[#allocation36_spill] sm:$0xff] }
 0x264   :  { %v3194_v63 = vadd.f32 %v837_v46, %v835_v5  ;;  %v3780_v5 = vld [vmem:[#allocation37_spill] sm:$0xff] }
 0x266   :  { %857 = vmatmul.f32.vlgmr.msra.gmra.mxu2 %v3194_v63  ;;  %880 = vmatmul.f32.vlgmr.msra.gmra.mxu3 %v3194_v63  ;;  %v3676_v17 = vrot.slane %v3194_v63, 4 }
 0x267   :  { %903 = vmatmul.f32.vlgmr.msrb.gmra.mxu0 %v3194_v63  ;;  %1248 = vmatpush.msra.mxu2 %v2906_v59 }
 0x268   :  { %1400 = vmatpush.msra.mxu3 %v2912_v28  ;;  %1423 = vmatpush.msrb.mxu0 %v2918_v47 }
 0x269   :  { %v1896_v1 = vpop.eup %1895  ;;  %1249 = vmatpush.msra.mxu2 %v2924_v25 }
 0x26a   :  { %v836_v43 = vmul.f32 %v1896_v1, %v834_v41  ;;  %1401 = vmatpush.msra.mxu3 %v2930_v52  ;;  %1424 = vmatpush.msrb.mxu0 %v2936_v36  ;;  %v3782_v41 = vld [vmem:[#allocation20_spill] sm:$0xff] }
 0x26b   :  { %1250 = vmatpush.msra.mxu2 %v2942_v31 }
 0x26c   :  { %v840_v53 = vadd.f32 %v838_v27, %v836_v43  ;;  %1402 = vmatpush.msra.mxu3 %v2948_v39  ;;  %1425 = vmatpush.msrb.mxu0 %v2954_v2 }
 0x26d   :  { %1251 = vmatpush.msra.mxu2 %v2960_v13 }
 0x26e   :  { %860 = vmatmul.f32.gmra.mxu2 %v840_v53  ;;  %v1024_v48 = vrot.slane %v840_v53, 4  ;;  %883 = vmatmul.f32.gmra.mxu3 %v840_v53 }
 0x26f   :  { %906 = vmatmul.f32.gmra.mxu0 %v840_v53  ;;  %1252 = vmatpush.msra.mxu2 %v2969_v15  ;;  %v3783_v53 = vld [vmem:[#allocation39_spill] sm:$0xff] }
 0x270   :  { %v3215_v50 = vsel %vm550_vm1, %v3676_v17, %v1024_v48  ;;  %1403 = vmatpush.msra.mxu3 %v2975_v0  ;;  %1426 = vmatpush.msrb.mxu0 %v2981_v32  ;;  %v3784_v17 = vld [vmem:[#allocation38_spill] sm:$0xff] }
 0x271   :  { %1253 = vmatpush.msra.mxu2 %v3222_v9 }
 0x272   :  { %1404 = vmatpush.msra.mxu3 %v2988_v21  ;;  %1427 = vmatpush.msrb.mxu0 %v2994_v20 }
 0x273   :  { %1254 = vmatpush.msra.mxu2 %v3230_v40 }
 0x274   :  { %1405 = vmatpush.msra.mxu3 %v3001_v8  ;;  %1428 = vmatpush.msrb.mxu0 %v3007_v37 }
 0x275   :  { %1255 = vmatpush.msra.mxu2 %v3238_v57 }
 0x276   :  { %1406 = vmatpush.msra.mxu3 %v3014_v12  ;;  %1429 = vmatpush.msrb.mxu0 %v3020_v42 }
 0x277   :  { %1256 = vmatpush.msra.mxu2 %v3246_v11 }
 0x278   :  { %1407 = vmatpush.msra.mxu3 %v3027_v14  ;;  %1430 = vmatpush.msrb.mxu0 %v3033_v58 }
 0x279   :  { %1257 = vmatpush.msra.mxu2 %v3254_v38 }
 0x27a   :  { %1408 = vmatpush.msra.mxu3 %v3040_v16  ;;  %1431 = vmatpush.msrb.mxu0 %v3046_v29 }
 0x27b   :  { %1258 = vmatpush.msra.mxu2 %v3262_v44 }
 0x27c   :  { %1409 = vmatpush.msra.mxu3 %v3053_v19  ;;  %1432 = vmatpush.msrb.mxu0 %v3059_v23 }
 0x27d   :  { %1259 = vmatpush.msra.mxu2 %v3270_v60 }
 0x27e   :  { %1410 = vmatpush.msra.mxu3 %v3066_v22  ;;  %1433 = vmatpush.msrb.mxu0 %v3072_v55 }
 0x27f   :  { %1260 = vmatpush.msra.mxu2 %v3278_v61 }
 0x280   :  { %1411 = vmatpush.msra.mxu3 %v3079_v24  ;;  %1434 = vmatpush.msrb.mxu0 %v3085_v33 }
 0x281   :  { %1261 = vmatpush.msra.mxu2 %v3286_v18 }
 0x282   :  { %1412 = vmatpush.msra.mxu3 %v3092_v26  ;;  %1435 = vmatpush.msrb.mxu0 %v3098_v3  ;;  %v3785_v3 = vld [vmem:[#allocation19_spill] sm:$0xff]  ;;  %v3788_v26 = vld [vmem:[#allocation2_spill] sm:$0xff] }
 0x283   :  { %1262 = vmatpush.msra.mxu2 %v3294_v56 }
 0x284   :  { %1413 = vmatpush.msra.mxu3 %v3105_v4  ;;  %1436 = vmatpush.msrb.mxu0 %v3111_v34 }
 0x285   :  { %1263 = vmatpush.msra.mxu2 %v3302_v45 }
 0x286   :  { %1414 = vmatpush.msra.mxu3 %v3777_v49  ;;  %1437 = vmatpush.msrb.mxu0 %v3778_v10 }
 0x288   :  { %1415 = vmatpush.msra.mxu3 %v3779_v62  ;;  %1438 = vmatpush.msrb.mxu0 %v3780_v5 }
 0x2e9   :  { %v858_v46 = vpop.f32.mrf.mxu2  ;;  %v881_v6 = vpop.f32.mrf.mxu3 }
 0x2ea   :  { %v859_v51 = vadd.f32 %v858_v46, %v3781_v30  ;;  %v882_v1 = vadd.f32 %v881_v6, %v3782_v41  ;;  %v3786_v6 = vld [vmem:[#allocation6_spill] sm:$0xff] }
 0x2ec   :  { %v912_v43 = vrot.slane %v859_v51, 4  ;;  %v959_v27 = vrot.slane %v882_v1, 4  ;;  %v187_v51 = vadd.f32 %v3786_v6, %v3785_v3  ;;  %v3787_v1 = vld [vmem:[#allocation15_spill] sm:$0xff] }
 0x2ee   :  { %v917_v48 = vadd.f32 %v912_v43, %v3783_v53  ;;  %v964_v45 = vadd.f32 %v959_v27, %v3784_v17  ;;  %v134_v53 = vadd.f32 %v3788_v26, %v3787_v1 }
 0x2f0   :  { %v1808_v34 = vmul.f32 -1.442695, %v917_v48  ;;  %v1810_v49 = vmul.f32 -1.442695, %v964_v45 }
 0x2f1   :  { %v861_v4 = vpop.f32.mrf.mxu2  ;;  %v884_v10 = vpop.f32.mrf.mxu3 }
 0x2f2   :  { %1897 = vpow2.f32 %v1808_v34  ;;  %v862_v62 = vadd.f32 %v861_v4, %v3781_v30  ;;  %v885_v5 = vadd.f32 %v884_v10, %v3782_v41 }
 0x2f3   :  { %1899 = vpow2.f32 %v1810_v49 }
 0x2f4   :  { %v913_v56 = vrot.slane %v862_v62, 4  ;;  %v960_v46 = vrot.slane %v885_v5, 4  ;;  %v904_v62 = vpop.f32.mrf.mxu0 }
 0x2f6   :  { %v914_v17 = vsel %vm550_vm1, %v912_v43, %v913_v56  ;;  %v961_v45 = vsel %vm550_vm1, %v959_v27, %v960_v46 }
 0x2f7   :  { %v918_v48 = vadd.f32 %v914_v17, %v134_v53  ;;  %v965_v18 = vadd.f32 %v961_v45, %v187_v51 }
 0x2f8   :  { %v1898_v34 = vpop.eup %1897 }
 0x2f9   :  { %v1900_v33 = vpop.eup %1899  ;;  %v925_v4 = vadd.f32 1.0, %v1898_v34  ;;  %v1809_v30 = vmul.f32 -1.442695, %v918_v48  ;;  %v1811_v49 = vmul.f32 -1.442695, %v965_v18 }
 0x2fa   :  { %v3321_v10 = vadd.f32 1.0, %v1900_v33 }
 0x2fb   :  { %1901 = vrcp.f32 %v925_v4  ;;  %v936_v51 = vand.u32 2147483647, %v925_v4  ;;  %v938_v53 = vand.u32 2147483648, %v925_v4  ;;  %vm932_vm5 = vweird.f32 %v925_v4 }
 0x2fc   :  { %1903 = vrcp.f32 %v3321_v10  ;;  %v907_v48 = vpop.f32.mrf.mxu0  ;;  %vm979_vm8 = vweird.f32 %v3321_v10 }
 0x2fd   :  { %1905 = vpow2.f32 %v1809_v30  ;;  %v905_v30 = vadd.f32 %v904_v62, %v2715_v35  ;;  %v939_v34 = vor.u32 1.1754944e-38, %v938_v53  ;;  %vm937_vm7 = vcmp.eq.f32.partialorder %v936_v51, 8.507059e+37 }
 0x2fe   :  { %1907 = vpow2.f32 %v1811_v49 }
 0x301   :  { %v1902_v26 = vpop.eup %1901 }
 0x302   :  { %v3324_v5 = vpop.eup %1903  ;;  %v928_v56 = vmul.f32 %v1902_v26, %v925_v4  ;;  %vm933_vm4 = vweird.f32 %v1902_v26 }
 0x303   :  { %v1906_v43 = vpop.eup %1905  ;;  %v975_v18 = vmul.f32 %v3324_v5, %v3321_v10  ;;  %vm934_vm6 = vmor %vm932_vm5, %vm933_vm4  ;;  %vm980_vm9 = vweird.f32 %v3324_v5 }
 0x304   :  { %v1908_v27 = vpop.eup %1907  ;;  %v929_v46 = vsub.f32 1.0, %v928_v56  ;;  %v926_v6 = vadd.f32 1.0, %v1906_v43  ;;  %v1006_v43 = vrot.slane %v905_v30, 4  ;;  %vm3338_vm13 = vmor %vm979_vm8, %vm980_vm9 }
 0x305   :  { %v973_v17 = vadd.f32 1.0, %v1908_v27  ;;  %v976_v56 = vsub.f32 1.0, %v975_v18  ;;  %v908_v27 = vadd.f32 %v907_v48, %v2715_v35 }
 0x306   :  { %v930_v33 = vmul.f32 %v1902_v26, %v929_v46  ;;  %1909 = vrcp.f32 %v926_v6  ;;  %v951_v4 = vand.u32 2147483647, %v926_v6  ;;  %v953_v53 = vand.u32 2147483648, %v926_v6 }
 0x307   :  { %1911 = vrcp.f32 %v973_v17  ;;  %v977_v62 = vmul.f32 %v3324_v5, %v976_v56  ;;  %v1007_v55 = vrot.slane %v908_v27, 4  ;;  %v1000_v18 = vand.u32 2147483648, %v973_v17 }
 0x308   :  { %v931_v45 = vadd.f32 %v1902_v26, %v930_v33  ;;  %vm947_vm12 = vweird.f32 %v926_v6  ;;  %v985_v56 = vand.u32 2147483648, %v3321_v10  ;;  %v954_v27 = vor.u32 1.1754944e-38, %v953_v53 }
 0x309   :  { %v978_v48 = vadd.f32 %v3324_v5, %v977_v62  ;;  %vm994_vm15 = vweird.f32 %v973_v17  ;;  %vm952_vm0 = vcmp.eq.f32.partialorder %v951_v4, 8.507059e+37 }
 0x30a   :  { %v935_v49 = vsel %vm934_vm6, %v1902_v26, %v931_v45 }
 0x30b   :  { %v940_v46 = vsel %vm937_vm7, %v939_v34, %v935_v49  ;;  %v998_v34 = vand.u32 2147483647, %v973_v17  ;;  %v1008_v49 = vsel %vm550_vm1, %v1006_v43, %v1007_v55  ;;  %v1001_v55 = vor.u32 1.1754944e-38, %v1000_v18 }
 0x30c   :  { %v1910_v41 = vpop.eup %1909  ;;  %v1011_v24 = vmul.f32 %v1006_v43, %v940_v46  ;;  %v982_v43 = vsel %vm3338_vm13, %v3324_v5, %v978_v48  ;;  %v3792_v5 = vrot.slane %v3194_v63, 4 }
 0x30d   :  { %v1912_v3 = vpop.eup %1911  ;;  %v943_v1 = vmul.f32 %v1910_v41, %v926_v6  ;;  %vm948_vm10 = vweird.f32 %v1910_v41  ;;  %vm999_vm3 = vcmp.eq.f32.partialorder %v998_v34, 8.507059e+37 }
 0x30e   :  { %v990_v61 = vmul.f32 %v1912_v3, %v973_v17  ;;  %v1013_v30 = vadd.f32 %v1011_v24, %v3186_v7  ;;  %vm995_vm11 = vweird.f32 %v1912_v3  ;;  %vm949_vm14 = vmor %vm947_vm12, %vm948_vm10  ;;  %v983_v24 = vand.u32 2147483647, %v3321_v10 }
 0x30f   :  { %v944_v33 = vsub.f32 1.0, %v943_v1  ;;  %vm996_vm2 = vmor %vm994_vm15, %vm995_vm11 }
 0x310   :  { %v991_v26 = vsub.f32 1.0, %v990_v61  ;;  %1913 = vtanh.f32 %v1013_v30  ;;  %vm984_vm4 = vcmp.eq.f32.partialorder %v983_v24, 8.507059e+37 }
 0x311   :  { %v945_v51 = vmul.f32 %v1910_v41, %v944_v33  ;;  %v3791_v33 = vld [vmem:[#allocation12_spill] sm:$0xff] }
 0x312   :  { %v992_v45 = vmul.f32 %v1912_v3, %v991_v26  ;;  %v240_v53 = vadd.f32 %v3791_v33, %v2718_v54  ;;  %v986_v26 = vor.u32 1.1754944e-38, %v985_v56  ;;  %v3814_v33 = vld [vmem:[#allocation4_spill] sm:$0xff] }
 0x313   :  { %v946_v1 = vadd.f32 %v1910_v41, %v945_v51 }
 0x314   :  { %v993_v7 = vadd.f32 %v1912_v3, %v992_v45  ;;  %v987_v4 = vsel %vm984_vm4, %v986_v26, %v982_v43 }
 0x315   :  { %v950_v46 = vsel %vm949_vm14, %v1910_v41, %v946_v1  ;;  %v1017_v30 = vsub.f32 1.0, %v987_v4 }
 0x316   :  { %v955_v6 = vsel %vm952_vm0, %v954_v27, %v950_v46  ;;  %v997_v62 = vsel %vm996_vm2, %v1912_v3, %v993_v7  ;;  %v1914_v18 = vpop.eup %1913  ;;  %v1028_v3 = vmul.f32 %v3792_v5, %v987_v4  ;;  %v3811_v7 = vld [vmem:[#allocation19_spill] sm:$0xff] }
 0x317   :  { %v1012_v17 = vmul.f32 %v1008_v49, %v955_v6  ;;  %v1002_v10 = vsel %vm999_vm3, %v1001_v55, %v997_v62  ;;  %v1019_v45 = vmul.f32 %v1914_v18, %v1017_v30  ;;  %v3812_v46 = vld [vmem:[#allocation11_spill] sm:$0xff]  ;;  %v3813_v6 = vld [vmem:[#allocation20_spill] sm:$0xff] }
 0x318   :  { %v1029_v41 = vmul.f32 %v3215_v50, %v1002_v10  ;;  %v1018_v1 = vsub.f32 1.0, %v1002_v10  ;;  %v190_v55 = vadd.f32 %v3812_v46, %v3811_v7  ;;  %v3816_v46 = vld [vmem:[#allocation13_spill] sm:$0xff] }
 0x319   :  { %v1014_v51 = vadd.f32 %v1012_v17, %v240_v53  ;;  %v1030_v61 = vadd.f32 %v1028_v3, %v1019_v45  ;;  %v3815_v45 = vld [vmem:[#allocation7_spill] sm:$0xff] }
 0x31b   :  { %1915 = vtanh.f32 %v1014_v51  ;;  %v1034_v49 = vrot.slane %v1030_v61, 4 }
 0x321   :  { %v1916_v48 = vpop.eup %1915 }
 0x322   :  { %v1020_v34 = vmul.f32 %v1916_v48, %v1018_v1  ;;  %v3427_v1 = vadd.f32 %v3815_v45, %v3811_v7 }
 0x324   :  { %v1031_v27 = vadd.f32 %v1029_v41, %v1020_v34 }
 0x326   :  { %v3353_v56 = vrot.slane %v1031_v27, 4 }
 0x328   :  { %v3357_v50 = vsel %vm550_vm1, %v1034_v49, %v3353_v56 }
 0x329   :  { %1055 = vmatmul.f32.vlgmr.msra.gmra.mxu1 %v3357_v50  ;;  %1078 = vmatmul.f32.vlgmr.msrb.gmra.mxu2 %v3357_v50 }
 0x32a   :  { %1101 = vmatmul.f32.vlgmr.msrb.gmra.mxu3 %v3357_v50  ;;  %1446 = vmatpush.msra.mxu1 %v2906_v59 }
 0x32b   :  { %1563 = vmatpush.msrb.mxu2 %v2912_v28  ;;  %1586 = vmatpush.msrb.mxu3 %v2918_v47  ;;  %v3793_v28 = vld [vmem:[#allocation21_spill] sm:$0xff]  ;;  %v3794_v47 = vld [vmem:[#allocation40_spill] sm:$0xff] }
 0x32c   :  { %1447 = vmatpush.msra.mxu1 %v2924_v25 }
 0x32d   :  { %1564 = vmatpush.msrb.mxu2 %v2930_v52  ;;  %1587 = vmatpush.msrb.mxu3 %v2936_v36  ;;  %v3795_v52 = vld [vmem:[#allocation28_spill] sm:$0xff]  ;;  %v3796_v36 = vld [vmem:[#allocation29_spill] sm:$0xff] }
 0x32e   :  { %1448 = vmatpush.msra.mxu1 %v2942_v31 }
 0x32f   :  { %1565 = vmatpush.msrb.mxu2 %v2948_v39  ;;  %1588 = vmatpush.msrb.mxu3 %v2954_v2  ;;  %v3797_v39 = vld [vmem:[#allocation41_spill] sm:$0xff]  ;;  %v3798_v2 = vld [vmem:[#allocation30_spill] sm:$0xff] }
 0x330   :  { %1449 = vmatpush.msra.mxu1 %v2960_v13 }
 0x331   :  { %1058 = vmatmul.f32.gmra.mxu1 %v3353_v56  ;;  %1081 = vmatmul.f32.gmra.mxu2 %v3353_v56 }
 0x332   :  { %1104 = vmatmul.f32.gmra.mxu3 %v3353_v56  ;;  %1450 = vmatpush.msra.mxu1 %v2969_v15  ;;  %v3799_v15 = vld [vmem:[#allocation31_spill] sm:$0xff] }
 0x333   :  { %1566 = vmatpush.msrb.mxu2 %v2975_v0  ;;  %1589 = vmatpush.msrb.mxu3 %v2981_v32  ;;  %v3800_v0 = vld [vmem:[#allocation42_spill] sm:$0xff]  ;;  %v3801_v32 = vld [vmem:[#allocation32_spill] sm:$0xff] }
 0x334   :  { %1451 = vmatpush.msra.mxu1 %v3222_v9 }
 0x335   :  { %1567 = vmatpush.msrb.mxu2 %v2988_v21  ;;  %1590 = vmatpush.msrb.mxu3 %v2994_v20  ;;  %v3802_v21 = vld [vmem:[#allocation33_spill] sm:$0xff]  ;;  %v3803_v20 = vld [vmem:[#allocation43_spill] sm:$0xff] }
 0x336   :  { %1452 = vmatpush.msra.mxu1 %v3230_v40 }
 0x337   :  { %1568 = vmatpush.msrb.mxu2 %v3001_v8  ;;  %1591 = vmatpush.msrb.mxu3 %v3007_v37  ;;  %v3804_v8 = vld [vmem:[#allocation34_spill] sm:$0xff]  ;;  %v3805_v37 = vld [vmem:[#allocation35_spill] sm:$0xff] }
 0x338   :  { %1453 = vmatpush.msra.mxu1 %v3238_v57 }
 0x339   :  { %1569 = vmatpush.msrb.mxu2 %v3014_v12  ;;  %1592 = vmatpush.msrb.mxu3 %v3020_v42  ;;  %v3806_v12 = vld [vmem:[#allocation36_spill] sm:$0xff]  ;;  %v3807_v42 = vld [vmem:[#allocation37_spill] sm:$0xff] }
 0x33a   :  { %1454 = vmatpush.msra.mxu1 %v3246_v11 }
 0x33b   :  { %1570 = vmatpush.msrb.mxu2 %v3027_v14  ;;  %1593 = vmatpush.msrb.mxu3 %v3033_v58  ;;  %v3808_v58 = vld [vmem:[#allocation15_spill] sm:$0xff] }
 0x33c   :  { %1455 = vmatpush.msra.mxu1 %v3254_v38  ;;  %v3421_v53 = vadd.f32 %v3814_v33, %v3808_v58 }
 0x33d   :  { %1571 = vmatpush.msrb.mxu2 %v3040_v16  ;;  %1594 = vmatpush.msrb.mxu3 %v3046_v29  ;;  %v3809_v16 = vld [vmem:[#allocation3_spill] sm:$0xff] }
 0x33e   :  { %1456 = vmatpush.msra.mxu1 %v3262_v44  ;;  %v137_v29 = vadd.f32 %v3809_v16, %v3808_v58 }
 0x33f   :  { %1572 = vmatpush.msrb.mxu2 %v3053_v19  ;;  %1595 = vmatpush.msrb.mxu3 %v3059_v23  ;;  %v3810_v19 = vld [vmem:[#allocation16_spill] sm:$0xff] }
 0x340   :  { %1457 = vmatpush.msra.mxu1 %v3270_v60 }
 0x341   :  { %1573 = vmatpush.msrb.mxu2 %v3066_v22  ;;  %1596 = vmatpush.msrb.mxu3 %v3793_v28 }
 0x342   :  { %1458 = vmatpush.msra.mxu1 %v3794_v47 }
 0x343   :  { %1574 = vmatpush.msrb.mxu2 %v3795_v52  ;;  %1597 = vmatpush.msrb.mxu3 %v3796_v36 }
 0x344   :  { %1459 = vmatpush.msra.mxu1 %v3797_v39 }
 0x345   :  { %1575 = vmatpush.msrb.mxu2 %v3798_v2  ;;  %1598 = vmatpush.msrb.mxu3 %v3799_v15 }
 0x346   :  { %1460 = vmatpush.msra.mxu1 %v3800_v0 }
 0x347   :  { %1576 = vmatpush.msrb.mxu2 %v3801_v32  ;;  %1599 = vmatpush.msrb.mxu3 %v3802_v21 }
 0x348   :  { %1461 = vmatpush.msra.mxu1 %v3803_v20 }
 0x349   :  { %1577 = vmatpush.msrb.mxu2 %v3804_v8  ;;  %1600 = vmatpush.msrb.mxu3 %v3805_v37 }
 0x34b   :  { %1578 = vmatpush.msrb.mxu2 %v3806_v12  ;;  %1601 = vmatpush.msrb.mxu3 %v3807_v42 }
 0x3a6   :  { %v1056_v14 = vpop.f32.mrf.mxu1 }
 0x3a7   :  { %v1057_v23 = vadd.f32 %v1056_v14, %v3810_v19 }
 0x3a9   :  { %v1108_v22 = vadd.f32 %v1057_v23, %v137_v29 }
 0x3ab   :  { %v1812_v63 = vmul.f32 -1.442695, %v1108_v22 }
 0x3ac   :  { %v1079_v24 = vpop.f32.mrf.mxu2 }
 0x3ad   :  { %1917 = vpow2.f32 %v1812_v63  ;;  %v1080_v43 = vadd.f32 %v1079_v24, %v3813_v6  ;;  %v1102_v36 = vpop.f32.mrf.mxu3 }
 0x3ae   :  { %v1059_v62 = vpop.f32.mrf.mxu1  ;;  %v1103_v29 = vadd.f32 %v1102_v36, %v2715_v35 }
 0x3af   :  { %v1148_v17 = vadd.f32 %v1080_v43, %v190_v55  ;;  %v1060_v26 = vadd.f32 %v1059_v62, %v3810_v19  ;;  %v243_v55 = vadd.f32 %v3816_v46, %v2718_v54 }
 0x3b1   :  { %v1814_v10 = vmul.f32 -1.442695, %v1148_v17  ;;  %v1109_v41 = vadd.f32 %v1060_v26, %v3421_v53 }
 0x3b3   :  { %v1918_v4 = vpop.eup %1917  ;;  %1919 = vpow2.f32 %v1814_v10  ;;  %v1813_v51 = vmul.f32 -1.442695, %v1109_v41 }
 0x3b4   :  { %v1116_v18 = vadd.f32 1.0, %v1918_v4  ;;  %v1082_v30 = vpop.f32.mrf.mxu2 }
 0x3b5   :  { %1921 = vpow2.f32 %v1813_v51  ;;  %v1083_v5 = vadd.f32 %v1082_v30, %v3813_v6 }
 0x3b6   :  { %1923 = vrcp.f32 %v1116_v18  ;;  %v1129_v15 = vand.u32 2147483648, %v1116_v18  ;;  %v1127_v8 = vand.u32 2147483647, %v1116_v18  ;;  %vm1123_vm6 = vweird.f32 %v1116_v18 }
 0x3b7   :  { %v1149_v3 = vadd.f32 %v1083_v5, %v3427_v1 }
 0x3b8   :  { %v1130_v23 = vor.u32 1.1754944e-38, %v1129_v15  ;;  %vm1128_vm8 = vcmp.eq.f32.partialorder %v1127_v8, 8.507059e+37  ;;  %v3817_v15 = vld [vmem:[#allocation5_spill] sm:$0xff] }
 0x3b9   :  { %v1920_v48 = vpop.eup %1919  ;;  %v1815_v34 = vmul.f32 -1.442695, %v1149_v3 }
 0x3ba   :  { %v1156_v61 = vadd.f32 1.0, %v1920_v48 }
 0x3bb   :  { %v1922_v27 = vpop.eup %1921  ;;  %1925 = vpow2.f32 %v1815_v34 }
 0x3bc   :  { %v1924_v49 = vpop.eup %1923  ;;  %1927 = vrcp.f32 %v1156_v61  ;;  %v1117_v28 = vadd.f32 1.0, %v1922_v27  ;;  %v1169_v62 = vand.u32 2147483648, %v1156_v61  ;;  %vm1163_vm10 = vweird.f32 %v1156_v61 }
 0x3bd   :  { %v1119_v52 = vmul.f32 %v1924_v49, %v1116_v18  ;;  %vm1124_vm5 = vweird.f32 %v1924_v49  ;;  %v1167_v4 = vand.u32 2147483647, %v1156_v61  ;;  %v1105_v18 = vpop.f32.mrf.mxu3 }
 0x3be   :  { %1929 = vrcp.f32 %v1117_v28  ;;  %vm1125_vm7 = vmor %vm1123_vm6, %vm1124_vm5  ;;  %v1142_v10 = vand.u32 2147483647, %v1117_v28  ;;  %v1144_v41 = vand.u32 2147483648, %v1117_v28  ;;  %vm1138_vm12 = vweird.f32 %v1117_v28 }
 0x3bf   :  { %v1120_v2 = vsub.f32 1.0, %v1119_v52  ;;  %v1170_v3 = vor.u32 1.1754944e-38, %v1169_v62  ;;  %vm1168_vm15 = vcmp.eq.f32.partialorder %v1167_v4, 8.507059e+37 }
 0x3c0   :  { %v1145_v52 = vor.u32 1.1754944e-38, %v1144_v41  ;;  %vm1143_vm0 = vcmp.eq.f32.partialorder %v1142_v10, 8.507059e+37 }
 0x3c1   :  { %v1926_v32 = vpop.eup %1925  ;;  %v1121_v21 = vmul.f32 %v1924_v49, %v1120_v2 }
 0x3c2   :  { %v1928_v37 = vpop.eup %1927  ;;  %v3431_v12 = vadd.f32 1.0, %v1926_v32  ;;  %v3441_v32 = vadd.f32 %v3817_v15, %v2718_v54 }
 0x3c3   :  { %v1159_v42 = vmul.f32 %v1928_v37, %v1156_v61  ;;  %v1122_v14 = vadd.f32 %v1924_v49, %v1121_v21  ;;  %vm1164_vm9 = vweird.f32 %v1928_v37 }
 0x3c4   :  { %v1930_v16 = vpop.eup %1929  ;;  %1931 = vrcp.f32 %v3431_v12  ;;  %vm1165_vm13 = vmor %vm1163_vm10, %vm1164_vm9  ;;  %vm1178_vm3 = vweird.f32 %v3431_v12 }
 0x3c5   :  { %v1160_v22 = vsub.f32 1.0, %v1159_v42  ;;  %v1126_v63 = vsel %vm1125_vm7, %v1924_v49, %v1122_v14  ;;  %v1134_v24 = vmul.f32 %v1930_v16, %v1117_v28  ;;  %vm1139_vm11 = vweird.f32 %v1930_v16 }
 0x3c6   :  { %v1131_v43 = vsel %vm1128_vm8, %v1130_v23, %v1126_v63  ;;  %v1106_v49 = vadd.f32 %v1105_v18, %v2715_v35  ;;  %vm1140_vm14 = vmor %vm1138_vm12, %vm1139_vm11  ;;  %v1184_v42 = vand.u32 2147483648, %v3431_v12  ;;  %v1182_v14 = vand.u32 2147483647, %v3431_v12 }
 0x3c7   :  { %v1188_v33 = vmul.f32 %v1131_v43, %v1103_v29  ;;  %v1135_v17 = vsub.f32 1.0, %v1134_v24  ;;  %v1161_v26 = vmul.f32 %v1928_v37, %v1160_v22 }
 0x3c8   :  { %v1185_v46 = vor.u32 1.1754944e-38, %v1184_v42  ;;  %vm1183_vm5 = vcmp.eq.f32.partialorder %v1182_v14, 8.507059e+37 }
 0x3c9   :  { %v1190_v51 = vadd.f32 %v1188_v33, %v243_v55  ;;  %v1136_v30 = vmul.f32 %v1930_v16, %v1135_v17  ;;  %v1162_v45 = vadd.f32 %v1928_v37, %v1161_v26 }
 0x3ca   :  { %v1932_v5 = vpop.eup %1931 }
 0x3cb   :  { %1933 = vtanh.f32 %v1190_v51  ;;  %v1174_v48 = vmul.f32 %v1932_v5, %v3431_v12  ;;  %v1137_v34 = vadd.f32 %v1930_v16, %v1136_v30  ;;  %v1166_v27 = vsel %vm1165_vm13, %v1928_v37, %v1162_v45  ;;  %v3818_v51 = vld [vmem:[#allocation8_spill] sm:$0xff]  ;;  %v3819_v30 = vld [vmem:[#allocation10_spill] sm:$0xff] }
 0x3cc   :  { %v1171_v2 = vsel %vm1168_vm15, %v1170_v3, %v1166_v27  ;;  %vm1179_vm2 = vweird.f32 %v1932_v5  ;;  %v196_v18 = vadd.f32 %v3818_v51, %v3811_v7 }
 0x3cd   :  { %v1175_v61 = vsub.f32 1.0, %v1174_v48  ;;  %v1141_v36 = vsel %vm1140_vm14, %v1930_v16, %v1137_v34  ;;  %v1194_v37 = vsub.f32 1.0, %v1171_v2  ;;  %v1198_v63 = vmul.f32 %v1171_v2, %v3357_v50  ;;  %vm1180_vm4 = vmor %vm1178_vm3, %vm1179_vm2 }
 0x3ce   :  { %v1146_v28 = vsel %vm1143_vm0, %v1145_v52, %v1141_v36 }
 0x3cf   :  { %v1189_v21 = vmul.f32 %v1146_v28, %v1106_v49  ;;  %v1176_v8 = vmul.f32 %v1932_v5, %v1175_v61 }
 0x3d1   :  { %v1934_v29 = vpop.eup %1933  ;;  %v1191_v23 = vadd.f32 %v1189_v21, %v3441_v32  ;;  %v1177_v22 = vadd.f32 %v1932_v5, %v1176_v8 }
 0x3d2   :  { %v1196_v16 = vmul.f32 %v1934_v29, %v1194_v37 }
 0x3d3   :  { %1935 = vtanh.f32 %v1191_v23  ;;  %v1181_v24 = vsel %vm1180_vm4, %v1932_v5, %v1177_v22 }
 0x3d4   :  { %v3448_v55 = vadd.f32 %v1198_v63, %v1196_v16  ;;  %v1186_v43 = vsel %vm1183_vm5, %v1185_v46, %v1181_v24 }
 0x3d5   :  { %v1195_v12 = vsub.f32 1.0, %v1186_v43  ;;  %v1199_v33 = vmul.f32 %v1186_v43, %v3353_v56 }
 0x3d6   :  { %1218 = vmatmul.f32.vlgmr.msra.gmra.mxu0 %v3448_v55  ;;  %1241 = vmatmul.f32.vlgmr.msrb.gmra.mxu1 %v3448_v55  ;;  %v1384_v10 = vrot.slane %v3448_v55, 4 }
 0x3d7   :  { %1264 = vmatmul.f32.vlgmr.msra.gmra.mxu2 %v3448_v55  ;;  %1609 = vmatpush.msra.mxu0 %v2906_v59  ;;  %v2045_v59 = vld [vmem:[%s3630_s2 + $0x118] sm:$0xff] }
 0x3d9   :  { %v1936_v62 = vpop.eup %1935  ;;  %1610 = vmatpush.msra.mxu0 %v2924_v25 }
 0x3da   :  { %v1197_v50 = vmul.f32 %v1936_v62, %v1195_v12 }
 0x3db   :  { %1611 = vmatpush.msra.mxu0 %v2942_v31 }
 0x3dc   :  { %v1201_v17 = vadd.f32 %v1199_v33, %v1197_v50 }
 0x3dd   :  { %1612 = vmatpush.msra.mxu0 %v2960_v13 }
 0x3de   :  { %1221 = vmatmul.f32.gmra.mxu0 %v1201_v17  ;;  %v1385_v26 = vrot.slane %v1201_v17, 4  ;;  %1244 = vmatmul.f32.gmra.mxu1 %v1201_v17 }
 0x3df   :  { %1267 = vmatmul.f32.gmra.mxu2 %v1201_v17  ;;  %1613 = vmatpush.msra.mxu0 %v2045_v59 }
 0x3e0   :  { %v3465_v25 = vsel %vm550_vm1, %v1384_v10, %v1385_v26 }
 0x3e1   :  { %1614 = vmatpush.msra.mxu0 %v3222_v9 }
 0x3e3   :  { %1615 = vmatpush.msra.mxu0 %v3230_v40 }
 0x3e5   :  { %1616 = vmatpush.msra.mxu0 %v3238_v57 }
 0x3e7   :  { %1617 = vmatpush.msra.mxu0 %v3246_v11 }
 0x3e9   :  { %1618 = vmatpush.msra.mxu0 %v3254_v38 }
 0x3eb   :  { %1619 = vmatpush.msra.mxu0 %v3262_v44 }
 0x3ed   :  { %1620 = vmatpush.msra.mxu0 %v3270_v60 }
 0x3ef   :  { %1621 = vmatpush.msra.mxu0 %v3794_v47 }
 0x3f1   :  { %1622 = vmatpush.msra.mxu0 %v3797_v39 }
 0x3f3   :  { %1623 = vmatpush.msra.mxu0 %v3800_v0 }
 0x3f5   :  { %1624 = vmatpush.msra.mxu0 %v3803_v20 }
 0x453   :  { %v1219_v31 = vpop.f32.mrf.mxu0  ;;  %v1242_v13 = vpop.f32.mrf.mxu1 }
 0x454   :  { %v1220_v9 = vadd.f32 %v1219_v31, %v3810_v19  ;;  %v1243_v40 = vadd.f32 %v1242_v13, %v3813_v6 }
 0x456   :  { %v1273_v57 = vrot.slane %v1220_v9, 4  ;;  %v1320_v11 = vrot.slane %v1243_v40, 4 }
 0x458   :  { %v1278_v38 = vadd.f32 %v1273_v57, %v3421_v53  ;;  %v1325_v44 = vadd.f32 %v1320_v11, %v3427_v1  ;;  %v143_v53 = vadd.f32 %v3819_v30, %v3808_v58 }
 0x45a   :  { %v1816_v60 = vmul.f32 -1.442695, %v1278_v38  ;;  %v1818_v56 = vmul.f32 -1.442695, %v1325_v44  ;;  %v1265_v36 = vpop.f32.mrf.mxu2 }
 0x45b   :  { %v1222_v47 = vpop.f32.mrf.mxu0  ;;  %v1245_v39 = vpop.f32.mrf.mxu1  ;;  %v1266_v63 = vadd.f32 %v1265_v36, %v2715_v35 }
 0x45c   :  { %1937 = vpow2.f32 %v1816_v60  ;;  %v1223_v0 = vadd.f32 %v1222_v47, %v3810_v19  ;;  %v1246_v20 = vadd.f32 %v1245_v39, %v3813_v6 }
 0x45d   :  { %1939 = vpow2.f32 %v1818_v56  ;;  %v1367_v33 = vrot.slane %v1266_v63, 4 }
 0x45e   :  { %v1274_v41 = vrot.slane %v1223_v0, 4  ;;  %v1321_v4 = vrot.slane %v1246_v20, 4 }
 0x460   :  { %v1275_v1 = vsel %vm550_vm1, %v1273_v57, %v1274_v41  ;;  %v1322_v45 = vsel %vm550_vm1, %v1320_v11, %v1321_v4 }
 0x461   :  { %v1279_v5 = vadd.f32 %v1275_v1, %v143_v53  ;;  %v1326_v3 = vadd.f32 %v1322_v45, %v196_v18 }
 0x462   :  { %v1938_v48 = vpop.eup %1937  ;;  %v1268_v46 = vpop.f32.mrf.mxu2 }
 0x463   :  { %v1940_v34 = vpop.eup %1939  ;;  %v1286_v27 = vadd.f32 1.0, %v1938_v48  ;;  %v1817_v49 = vmul.f32 -1.442695, %v1279_v5  ;;  %v1819_v61 = vmul.f32 -1.442695, %v1326_v3  ;;  %v1269_v17 = vadd.f32 %v1268_v46, %v2715_v35 }
 0x464   :  { %v3490_v52 = vadd.f32 1.0, %v1940_v34 }
 0x465   :  { %1941 = vrcp.f32 %v1286_v27  ;;  %v1297_v14 = vand.u32 2147483647, %v1286_v27  ;;  %v1299_v29 = vand.u32 2147483648, %v1286_v27  ;;  %vm1293_vm7 = vweird.f32 %v1286_v27 }
 0x466   :  { %1943 = vrcp.f32 %v3490_v52  ;;  %v1368_v11 = vrot.slane %v1269_v17, 4  ;;  %vm1340_vm10 = vweird.f32 %v3490_v52  ;;  %v1344_v18 = vand.u32 2147483647, %v3490_v52 }
 0x467   :  { %1945 = vpow2.f32 %v1817_v49  ;;  %v1300_v43 = vor.u32 1.1754944e-38, %v1299_v29  ;;  %vm1298_vm9 = vcmp.eq.f32.partialorder %v1297_v14, 8.507059e+37 }
 0x468   :  { %1947 = vpow2.f32 %v1819_v61  ;;  %v1369_v1 = vsel %vm550_vm1, %v1367_v33, %v1368_v11 }
 0x46b   :  { %v1942_v2 = vpop.eup %1941 }
 0x46c   :  { %v3493_v15 = vpop.eup %1943  ;;  %v1289_v28 = vmul.f32 %v1942_v2, %v1286_v27  ;;  %vm1294_vm6 = vweird.f32 %v1942_v2  ;;  %v3822_v27 = vld [vmem:[#allocation23_spill] sm:$0xff] }
 0x46d   :  { %v1946_v21 = vpop.eup %1945  ;;  %v1336_v22 = vmul.f32 %v3493_v15, %v3490_v52  ;;  %vm1295_vm8 = vmor %vm1293_vm7, %vm1294_vm6  ;;  %vm1341_vm11 = vweird.f32 %v3493_v15  ;;  %v249_v49 = vadd.f32 %v3822_v27, %v2718_v54  ;;  %vm1345_vm6 = vcmp.eq.f32.partialorder %v1344_v18, 8.507059e+37 }
 0x46e   :  { %v1948_v8 = vpop.eup %1947  ;;  %v1290_v42 = vsub.f32 1.0, %v1289_v28  ;;  %v1287_v37 = vadd.f32 1.0, %v1946_v21  ;;  %vm3506_vm15 = vmor %vm1340_vm10, %vm1341_vm11 }
 0x46f   :  { %v1334_v23 = vadd.f32 1.0, %v1948_v8  ;;  %v1337_v12 = vsub.f32 1.0, %v1336_v22 }
 0x470   :  { %v1291_v16 = vmul.f32 %v1942_v2, %v1290_v42  ;;  %1949 = vrcp.f32 %v1287_v37  ;;  %v1312_v44 = vand.u32 2147483647, %v1287_v37  ;;  %v1314_v60 = vand.u32 2147483648, %v1287_v37 }
 0x471   :  { %1951 = vrcp.f32 %v1334_v23  ;;  %v1338_v40 = vmul.f32 %v3493_v15, %v1337_v12  ;;  %v1361_v47 = vand.u32 2147483648, %v1334_v23  ;;  %v1359_v20 = vand.u32 2147483647, %v1334_v23 }
 0x472   :  { %v1292_v24 = vadd.f32 %v1942_v2, %v1291_v16  ;;  %vm1308_vm14 = vweird.f32 %v1287_v37  ;;  %vm1355_vm0 = vweird.f32 %v1334_v23  ;;  %v1315_v30 = vor.u32 1.1754944e-38, %v1314_v60 }
 0x473   :  { %v1339_v41 = vadd.f32 %v3493_v15, %v1338_v40  ;;  %v1362_v45 = vor.u32 1.1754944e-38, %v1361_v47  ;;  %vm1313_vm4 = vcmp.eq.f32.partialorder %v1312_v44, 8.507059e+37  ;;  %vm1360_vm5 = vcmp.eq.f32.partialorder %v1359_v20, 8.507059e+37  ;;  %v3826_v47 = vld [vmem:[#allocation14_spill] sm:$0xff] }
 0x474   :  { %v1296_v62 = vsel %vm1295_vm8, %v1942_v2, %v1292_v24 }
 0x475   :  { %v1301_v50 = vsel %vm1298_vm9, %v1300_v43, %v1296_v62  ;;  %v1343_v34 = vsel %vm3506_vm15, %v3493_v15, %v1339_v41 }
 0x476   :  { %v1950_v26 = vpop.eup %1949  ;;  %v1372_v31 = vmul.f32 %v1367_v33, %v1301_v50  ;;  %v3824_v33 = vld [vmem:[#allocation24_spill] sm:$0xff] }
 0x477   :  { %v1952_v59 = vpop.eup %1951  ;;  %v1304_v13 = vmul.f32 %v1950_v26, %v1287_v37  ;;  %vm1309_vm12 = vweird.f32 %v1950_v26  ;;  %v146_v17 = vadd.f32 %v3824_v33, %v3808_v58 }
 0x478   :  { %v1351_v9 = vmul.f32 %v1952_v59, %v1334_v23  ;;  %v1374_v56 = vadd.f32 %v1372_v31, %v3441_v32  ;;  %vm1356_vm13 = vweird.f32 %v1952_v59  ;;  %v1346_v32 = vand.u32 2147483648, %v3490_v52  ;;  %vm1310_vm2 = vmor %vm1308_vm14, %vm1309_vm12  ;;  %v3825_v31 = vld [vmem:[#allocation22_spill] sm:$0xff] }
 0x479   :  { %v1305_v57 = vsub.f32 1.0, %v1304_v13  ;;  %vm1357_vm3 = vmor %vm1355_vm0, %vm1356_vm13  ;;  %v3541_v13 = vadd.f32 %v3825_v31, %v3811_v7 }
 0x47a   :  { %v1352_v38 = vsub.f32 1.0, %v1351_v9  ;;  %1953 = vtanh.f32 %v1374_v56  ;;  %v1347_v36 = vor.u32 1.1754944e-38, %v1346_v32 }
 0x47b   :  { %v1306_v39 = vmul.f32 %v1950_v26, %v1305_v57 }
 0x47c   :  { %v1353_v0 = vmul.f32 %v1952_v59, %v1352_v38  ;;  %v1348_v21 = vsel %vm1345_vm6, %v1347_v36, %v1343_v34 }
 0x47d   :  { %v1307_v4 = vadd.f32 %v1950_v26, %v1306_v39  ;;  %v1378_v42 = vsub.f32 1.0, %v1348_v21  ;;  %v1389_v29 = vmul.f32 %v1384_v10, %v1348_v21  ;;  %v3823_v10 = vld [vmem:[#allocation9_spill] sm:$0xff]  ;;  %v3549_v39 = vadd.f32 %v3826_v47, %v3808_v58  ;;  %v3830_v47 = vld [vmem:[#allocation27_spill] sm:$0xff] }
 0x47e   :  { %v1354_v53 = vadd.f32 %v1952_v59, %v1353_v0  ;;  %v199_v46 = vadd.f32 %v3823_v10, %v3811_v7 }
 0x47f   :  { %v1311_v5 = vsel %vm1310_vm2, %v1950_v26, %v1307_v4 }
 0x480   :  { %v1316_v3 = vsel %vm1313_vm4, %v1315_v30, %v1311_v5  ;;  %v1358_v48 = vsel %vm1357_vm3, %v1952_v59, %v1354_v53  ;;  %v1954_v8 = vpop.eup %1953 }
 0x481   :  { %v1363_v52 = vsel %vm1360_vm5, %v1362_v45, %v1358_v48  ;;  %v1373_v61 = vmul.f32 %v1369_v1, %v1316_v3  ;;  %v1380_v37 = vmul.f32 %v1954_v8, %v1378_v42 }
 0x482   :  { %v1390_v2 = vmul.f32 %v3465_v25, %v1363_v52  ;;  %v1379_v14 = vsub.f32 1.0, %v1363_v52 }
 0x483   :  { %v1375_v28 = vadd.f32 %v1373_v61, %v249_v49  ;;  %v1391_v22 = vadd.f32 %v1389_v29, %v1380_v37 }
 0x485   :  { %1955 = vtanh.f32 %v1375_v28  ;;  %v1395_v63 = vrot.slane %v1391_v22, 4 }
 0x48b   :  { %v1956_v15 = vpop.eup %1955 }
 0x48c   :  { %v1381_v23 = vmul.f32 %v1956_v15, %v1379_v14 }
 0x48e   :  { %v1392_v16 = vadd.f32 %v1390_v2, %v1381_v23 }
 0x490   :  { %v3521_v24 = vrot.slane %v1392_v16, 4  ;;  %v3827_v16 = vld [vmem:[#allocation26_spill] sm:$0xff] }
 0x492   :  { %v3525_v25 = vsel %vm550_vm1, %v1395_v63, %v3521_v24  ;;  %v252_v63 = vadd.f32 %v3827_v16, %v2718_v54 }
 0x493   :  { %1416 = vmatmul.f32.vlgmr.msra.gmra.mxu3 %v3525_v25  ;;  %1439 = vmatmul.f32.vlgmr.msrb.gmra.mxu0 %v3525_v25 }
 0x494   :  { %1462 = vmatmul.f32.vlgmr.msra.gmra.mxu1 %v3525_v25 }
 0x49b   :  { %1419 = vmatmul.f32.gmra.mxu3 %v3521_v24  ;;  %1442 = vmatmul.f32.gmra.mxu0 %v3521_v24 }
 0x49c   :  { %1465 = vmatmul.f32.gmra.mxu1 %v3521_v24 }
 0x510   :  { %v1440_v55 = vpop.f32.mrf.mxu0 }
 0x511   :  { %v1441_v43 = vadd.f32 %v1440_v55, %v3813_v6  ;;  %v1463_v49 = vpop.f32.mrf.mxu1 }
 0x512   :  { %v1464_v37 = vadd.f32 %v1463_v49, %v2715_v35 }
 0x513   :  { %v1509_v12 = vadd.f32 %v1441_v43, %v199_v46 }
 0x515   :  { %v1822_v62 = vmul.f32 -1.442695, %v1509_v12 }
 0x516   :  { %v1417_v50 = vpop.f32.mrf.mxu3 }
 0x517   :  { %1957 = vpow2.f32 %v1822_v62  ;;  %v1418_v26 = vadd.f32 %v1417_v50, %v3810_v19 }
 0x518   :  { %v1443_v59 = vpop.f32.mrf.mxu0 }
 0x519   :  { %v1469_v9 = vadd.f32 %v1418_v26, %v146_v17  ;;  %v1444_v40 = vadd.f32 %v1443_v59, %v3813_v6  ;;  %v1466_v26 = vpop.f32.mrf.mxu1 }
 0x51b   :  { %v1820_v57 = vmul.f32 -1.442695, %v1469_v9  ;;  %v1510_v11 = vadd.f32 %v1444_v40, %v3541_v13 }
 0x51d   :  { %v1958_v38 = vpop.eup %1957  ;;  %1959 = vpow2.f32 %v1820_v57  ;;  %v1823_v44 = vmul.f32 -1.442695, %v1510_v11  ;;  %v1467_v11 = vadd.f32 %v1466_v26, %v2715_v35 }
 0x51e   :  { %v3545_v60 = vadd.f32 1.0, %v1958_v38  ;;  %v1420_v56 = vpop.f32.mrf.mxu3 }
 0x51f   :  { %1961 = vpow2.f32 %v1823_v44  ;;  %v1421_v0 = vadd.f32 %v1420_v56, %v3810_v19 }
 0x520   :  { %1963 = vrcp.f32 %v3545_v60  ;;  %v1530_v10 = vand.u32 2147483648, %v3545_v60  ;;  %vm1524_vm12 = vweird.f32 %v3545_v60  ;;  %v1528_v12 = vand.u32 2147483647, %v3545_v60 }
 0x521   :  { %v1470_v20 = vadd.f32 %v1421_v0, %v3549_v39  ;;  %v3580_v0 = vadd.f32 %v3830_v47, %v2718_v54 }
 0x522   :  { %v1531_v40 = vor.u32 1.1754944e-38, %v1530_v10  ;;  %vm1529_vm2 = vcmp.eq.f32.partialorder %v1528_v12, 8.507059e+37  ;;  %v3832_v12 = vld [vmem:[#allocation25_spill] sm:$0xff] }
 0x523   :  { %v1960_v41 = vpop.eup %1959  ;;  %v1821_v4 = vmul.f32 -1.442695, %v1470_v20 }
 0x524   :  { %v1477_v51 = vadd.f32 1.0, %v1960_v41 }
 0x525   :  { %v1962_v18 = vpop.eup %1961  ;;  %1965 = vpow2.f32 %v1821_v4 }
 0x526   :  { %1967 = vrcp.f32 %v1477_v51  ;;  %v1964_v32 = vpop.eup %1963  ;;  %v3554_v30 = vadd.f32 1.0, %v1962_v18  ;;  %v1490_v52 = vand.u32 2147483648, %v1477_v51  ;;  %v1488_v36 = vand.u32 2147483647, %v1477_v51 }
 0x527   :  { %v1520_v53 = vmul.f32 %v1964_v32, %v3545_v60  ;;  %vm1484_vm8 = vweird.f32 %v1477_v51  ;;  %vm1525_vm11 = vweird.f32 %v1964_v32 }
 0x528   :  { %1969 = vrcp.f32 %v3554_v30  ;;  %v1491_v42 = vor.u32 1.1754944e-38, %v1490_v52  ;;  %vm1489_vm10 = vcmp.eq.f32.partialorder %v1488_v36, 8.507059e+37  ;;  %vm3568_vm14 = vmor %vm1524_vm12, %vm1525_vm11  ;;  %v1545_v20 = vand.u32 2147483648, %v3554_v30 }
 0x529   :  { %v1521_v48 = vsub.f32 1.0, %v1520_v53  ;;  %vm1539_vm5 = vweird.f32 %v3554_v30 }
 0x52b   :  { %v1966_v1 = vpop.eup %1965  ;;  %v1522_v28 = vmul.f32 %v1964_v32, %v1521_v48 }
 0x52c   :  { %v1968_v45 = vpop.eup %1967  ;;  %v1478_v5 = vadd.f32 1.0, %v1966_v1 }
 0x52d   :  { %v1480_v3 = vmul.f32 %v1968_v45, %v1477_v51  ;;  %vm1485_vm7 = vweird.f32 %v1968_v45  ;;  %v1523_v22 = vadd.f32 %v1964_v32, %v1522_v28  ;;  %v1543_v51 = vand.u32 2147483647, %v3554_v30 }
 0x52e   :  { %1971 = vrcp.f32 %v1478_v5  ;;  %v3558_v34 = vpop.eup %1969  ;;  %vm1486_vm9 = vmor %vm1484_vm8, %vm1485_vm7  ;;  %v1505_v43 = vand.u32 2147483648, %v1478_v5  ;;  %v1503_v50 = vand.u32 2147483647, %v1478_v5  ;;  %vm1499_vm15 = vweird.f32 %v1478_v5 }
 0x52f   :  { %v1481_v27 = vsub.f32 1.0, %v1480_v3  ;;  %v1535_v2 = vmul.f32 %v3558_v34, %v3554_v30  ;;  %v1527_v59 = vsel %vm3568_vm14, %v1964_v32, %v1523_v22  ;;  %vm1540_vm4 = vweird.f32 %v3558_v34 }
 0x530   :  { %v1506_v57 = vor.u32 1.1754944e-38, %v1505_v43  ;;  %vm1504_vm3 = vcmp.eq.f32.partialorder %v1503_v50, 8.507059e+37  ;;  %v1532_v44 = vsel %vm1529_vm2, %v1531_v40, %v1527_v59  ;;  %vm1541_vm6 = vmor %vm1539_vm5, %vm1540_vm4  ;;  %vm1544_vm7 = vcmp.eq.f32.partialorder %v1543_v51, 8.507059e+37 }
 0x531   :  { %v1482_v61 = vmul.f32 %v1968_v45, %v1481_v27  ;;  %v1536_v15 = vsub.f32 1.0, %v1535_v2  ;;  %v1555_v4 = vsub.f32 1.0, %v1532_v44  ;;  %v1559_v1 = vmul.f32 %v1532_v44, %v3525_v25 }
 0x533   :  { %v1483_v21 = vadd.f32 %v1968_v45, %v1482_v61  ;;  %v1537_v31 = vmul.f32 %v3558_v34, %v1536_v15 }
 0x534   :  { %v1972_v8 = vpop.eup %1971 }
 0x535   :  { %v1487_v14 = vsel %vm1486_vm9, %v1968_v45, %v1483_v21  ;;  %v1495_v29 = vmul.f32 %v1972_v8, %v1478_v5  ;;  %vm1500_vm13 = vweird.f32 %v1972_v8  ;;  %v1538_v56 = vadd.f32 %v3558_v34, %v1537_v31 }
 0x536   :  { %v1492_v23 = vsel %vm1489_vm10, %v1491_v42, %v1487_v14  ;;  %vm1501_vm0 = vmor %vm1499_vm15, %vm1500_vm13  ;;  %v1546_v5 = vor.u32 1.1754944e-38, %v1545_v20 }
 0x537   :  { %v1496_v55 = vsub.f32 1.0, %v1495_v29  ;;  %v1549_v46 = vmul.f32 %v1492_v23, %v1464_v37  ;;  %v1542_v45 = vsel %vm1541_vm6, %v3558_v34, %v1538_v56 }
 0x538   :  { %v1547_v48 = vsel %vm1544_vm7, %v1546_v5, %v1542_v45 }
 0x539   :  { %v1497_v62 = vmul.f32 %v1972_v8, %v1496_v55  ;;  %v1551_v17 = vadd.f32 %v1549_v46, %v252_v63  ;;  %v1556_v30 = vsub.f32 1.0, %v1547_v48  ;;  %v1560_v52 = vmul.f32 %v1547_v48, %v3521_v24  ;;  %v3831_v46 = vld [vmem:[#allocation17_spill] sm:$0xff] }
 0x53a   :  { %v152_v43 = vadd.f32 %v3831_v46, %v3808_v58 }
 0x53b   :  { %v1498_v9 = vadd.f32 %v1972_v8, %v1497_v62  ;;  %1973 = vtanh.f32 %v1551_v17 }
 0x53d   :  { %v1502_v38 = vsel %vm1501_vm0, %v1972_v8, %v1498_v9 }
 0x53e   :  { %v1507_v60 = vsel %vm1504_vm3, %v1506_v57, %v1502_v38 }
 0x53f   :  { %v1550_v41 = vmul.f32 %v1507_v60, %v1467_v11 }
 0x541   :  { %v1974_v18 = vpop.eup %1973  ;;  %v1552_v32 = vadd.f32 %v1550_v41, %v3580_v0 }
 0x542   :  { %v1557_v53 = vmul.f32 %v1974_v18, %v1555_v4 }
 0x543   :  { %1975 = vtanh.f32 %v1552_v32 }
 0x544   :  { %v3588_v3 = vadd.f32 %v1559_v1, %v1557_v53 }
 0x546   :  { %1579 = vmatmul.f32.vlgmr.msrb.gmra.mxu2 %v3588_v3  ;;  %1602 = vmatmul.f32.vlgmr.msrb.gmra.mxu3 %v3588_v3  ;;  %v1745_v34 = vrot.slane %v3588_v3, 4 }
 0x547   :  { %1625 = vmatmul.f32.vlgmr.msra.gmra.mxu0 %v3588_v3 }
 0x549   :  { %v1976_v27 = vpop.eup %1975 }
 0x54a   :  { %v1558_v49 = vmul.f32 %v1976_v27, %v1556_v30 }
 0x54c   :  { %v1562_v25 = vadd.f32 %v1560_v52, %v1558_v49 }
 0x54e   :  { %1582 = vmatmul.f32.gmra.mxu2 %v1562_v25  ;;  %v1746_v61 = vrot.slane %v1562_v25, 4  ;;  %1605 = vmatmul.f32.gmra.mxu3 %v1562_v25 }
 0x54f   :  { %1628 = vmatmul.f32.gmra.mxu0 %v1562_v25 }
 0x550   :  { %v3598_v36 = vsel %vm550_vm1, %v1745_v34, %v1746_v61 }
 0x5c4   :  { %v1626_v9 = vpop.f32.mrf.mxu0 }
 0x5c5   :  { %v3613_v56 = vadd.f32 %v1626_v9, %v2715_v35 }
 0x5c7   :  { %v1728_v45 = vrot.slane %v3613_v56, 4 }
 0x5c9   :  { %v1580_v2 = vpop.f32.mrf.mxu2  ;;  %v1603_v28 = vpop.f32.mrf.mxu3 }
 0x5ca   :  { %v1581_v21 = vadd.f32 %v1580_v2, %v3810_v19  ;;  %v1604_v8 = vadd.f32 %v1603_v28, %v3813_v6 }
 0x5cc   :  { %v1634_v42 = vrot.slane %v1581_v21, 4  ;;  %v1681_v24 = vrot.slane %v1604_v8, 4  ;;  %v1629_v32 = vpop.f32.mrf.mxu0 }
 0x5cd   :  { %v1630_v48 = vadd.f32 %v1629_v32, %v2715_v35 }
 0x5ce   :  { %v1639_v37 = vadd.f32 %v1634_v42, %v3549_v39  ;;  %v1686_v14 = vadd.f32 %v1681_v24, %v3541_v13  ;;  %v205_v39 = vadd.f32 %v3832_v12, %v3811_v7 }
 0x5d0   :  { %v1824_v29 = vmul.f32 -1.442695, %v1639_v37  ;;  %v1826_v15 = vmul.f32 -1.442695, %v1686_v14 }
 0x5d1   :  { %v1583_v23 = vpop.f32.mrf.mxu2  ;;  %v1606_v22 = vpop.f32.mrf.mxu3 }
 0x5d2   :  { %1977 = vpow2.f32 %v1824_v29  ;;  %v1584_v16 = vadd.f32 %v1583_v23, %v3810_v19  ;;  %v1607_v63 = vadd.f32 %v1606_v22, %v3813_v6 }
 0x5d3   :  { %1979 = vpow2.f32 %v1826_v15 }
 0x5d4   :  { %v1635_v55 = vrot.slane %v1584_v16, 4  ;;  %v1682_v10 = vrot.slane %v1607_v63, 4 }
 0x5d6   :  { %v1636_v13 = vsel %vm550_vm1, %v1634_v42, %v1635_v55  ;;  %v1683_v62 = vsel %vm550_vm1, %v1681_v24, %v1682_v10  ;;  %v1729_v24 = vrot.slane %v1630_v48, 4 }
 0x5d7   :  { %v1640_v50 = vadd.f32 %v1636_v13, %v152_v43  ;;  %v1687_v33 = vadd.f32 %v1683_v62, %v205_v39 }
 0x5d8   :  { %v1978_v17 = vpop.eup %1977 }
 0x5d9   :  { %v1980_v26 = vpop.eup %1979  ;;  %v1647_v19 = vadd.f32 1.0, %v1978_v17  ;;  %v1825_v59 = vmul.f32 -1.442695, %v1640_v50  ;;  %v1827_v31 = vmul.f32 -1.442695, %v1687_v33  ;;  %v1730_v33 = vsel %vm550_vm1, %v1728_v45, %v1729_v24 }
 0x5da   :  { %v1694_v6 = vadd.f32 1.0, %v1980_v26 }
 0x5db   :  { %1981 = vrcp.f32 %v1647_v19  ;;  %v1660_v47 = vand.u32 2147483648, %v1647_v19  ;;  %v1658_v51 = vand.u32 2147483647, %v1647_v19  ;;  %vm1654_vm9 = vweird.f32 %v1647_v19 }
 0x5dc   :  { %1983 = vrcp.f32 %v1694_v6  ;;  %v1705_v49 = vand.u32 2147483647, %v1694_v6  ;;  %v1707_v61 = vand.u32 2147483648, %v1694_v6  ;;  %vm1701_vm13 = vweird.f32 %v1694_v6 }
 0x5dd   :  { %1985 = vpow2.f32 %v1825_v59  ;;  %v1661_v1 = vor.u32 1.1754944e-38, %v1660_v47  ;;  %vm1659_vm11 = vcmp.eq.f32.partialorder %v1658_v51, 8.507059e+37 }
 0x5de   :  { %1987 = vpow2.f32 %v1827_v31  ;;  %vm1706_vm15 = vcmp.eq.f32.partialorder %v1705_v49, 8.507059e+37  ;;  %v1708_v35 = vor.u32 1.1754944e-38, %v1707_v61 }
 0x5e1   :  { %v1982_v58 = vpop.eup %1981 }
 0x5e2   :  { %v1984_v40 = vpop.eup %1983  ;;  %v1650_v7 = vmul.f32 %v1982_v58, %v1647_v19  ;;  %vm1655_vm8 = vweird.f32 %v1982_v58 }
 0x5e3   :  { %v1986_v57 = vpop.eup %1985  ;;  %v1697_v11 = vmul.f32 %v1984_v40, %v1694_v6  ;;  %vm1656_vm10 = vmor %vm1654_vm9, %vm1655_vm8  ;;  %vm1702_vm12 = vweird.f32 %v1984_v40 }
 0x5e4   :  { %v1988_v38 = vpop.eup %1987  ;;  %v1651_v44 = vsub.f32 1.0, %v1650_v7  ;;  %v1648_v60 = vadd.f32 1.0, %v1986_v57  ;;  %vm1703_vm14 = vmor %vm1701_vm13, %vm1702_vm12 }
 0x5e5   :  { %v1698_v20 = vsub.f32 1.0, %v1697_v11  ;;  %v1695_v41 = vadd.f32 1.0, %v1988_v38 }
 0x5e6   :  { %v1652_v4 = vmul.f32 %v1982_v58, %v1651_v44  ;;  %1989 = vrcp.f32 %v1648_v60  ;;  %v1675_v14 = vand.u32 2147483648, %v1648_v60  ;;  %v1673_v23 = vand.u32 2147483647, %v1648_v60 }
 0x5e7   :  { %v1699_v18 = vmul.f32 %v1984_v40, %v1698_v20  ;;  %1991 = vrcp.f32 %v1695_v41  ;;  %v1722_v22 = vand.u32 2147483648, %v1695_v41  ;;  %v1720_v55 = vand.u32 2147483647, %v1695_v41 }
 0x5e8   :  { %v1653_v53 = vadd.f32 %v1982_v58, %v1652_v4  ;;  %vm1669_vm3 = vweird.f32 %v1648_v60  ;;  %v1676_v43 = vor.u32 1.1754944e-38, %v1675_v14  ;;  %vm1716_vm5 = vweird.f32 %v1695_v41 }
 0x5e9   :  { %v1700_v27 = vadd.f32 %v1984_v40, %v1699_v18  ;;  %vm1674_vm6 = vcmp.eq.f32.partialorder %v1673_v23, 8.507059e+37  ;;  %v1723_v62 = vor.u32 1.1754944e-38, %v1722_v22  ;;  %vm1721_vm8 = vcmp.eq.f32.partialorder %v1720_v55, 8.507059e+37 }
 0x5ea   :  { %v1657_v5 = vsel %vm1656_vm10, %v1982_v58, %v1653_v53 }
 0x5eb   :  { %v1662_v30 = vsel %vm1659_vm11, %v1661_v1, %v1657_v5  ;;  %v1704_v42 = vsel %vm1703_vm14, %v1984_v40, %v1700_v27 }
 0x5ec   :  { %v1990_v52 = vpop.eup %1989  ;;  %v1733_v25 = vmul.f32 %v1728_v45, %v1662_v30  ;;  %v1709_v16 = vsel %vm1706_vm15, %v1708_v35, %v1704_v42 }
 0x5ed   :  { %v1992_v2 = vpop.eup %1991  ;;  %v1665_v28 = vmul.f32 %v1990_v52, %v1648_v60  ;;  %vm1670_vm0 = vweird.f32 %v1990_v52  ;;  %v1739_v39 = vsub.f32 1.0, %v1709_v16  ;;  %v1750_v59 = vmul.f32 %v1745_v34, %v1709_v16 }
 0x5ee   :  { %v1735_v21 = vadd.f32 %v1733_v25, %v3580_v0  ;;  %v1712_v8 = vmul.f32 %v1992_v2, %v1695_v41  ;;  %vm1717_vm2 = vweird.f32 %v1992_v2  ;;  %v3833_v0 = vld [vmem:[#allocation18_spill] sm:$0xff]  ;;  %vm1671_vm4 = vmor %vm1669_vm3, %vm1670_vm0 }
 0x5ef   :  { %v1666_v37 = vsub.f32 1.0, %v1665_v28  ;;  %v258_v46 = vadd.f32 %v3833_v0, %v2718_v54  ;;  %vm1718_vm7 = vmor %vm1716_vm5, %vm1717_vm2 }
 0x5f0   :  { %1993 = vtanh.f32 %v1735_v21  ;;  %v1713_v29 = vsub.f32 1.0, %v1712_v8 }
 0x5f1   :  { %v1667_v15 = vmul.f32 %v1990_v52, %v1666_v37 }
 0x5f2   :  { %v1714_v63 = vmul.f32 %v1992_v2, %v1713_v29 }
 0x5f3   :  { %v1668_v10 = vadd.f32 %v1990_v52, %v1667_v15 }
 0x5f4   :  { %v1715_v12 = vadd.f32 %v1992_v2, %v1714_v63 }
 0x5f5   :  { %v1672_v13 = vsel %vm1671_vm4, %v1990_v52, %v1668_v10 }
 0x5f6   :  { %v1994_v50 = vpop.eup %1993  ;;  %v1677_v17 = vsel %vm1674_vm6, %v1676_v43, %v1672_v13  ;;  %v1719_v26 = vsel %vm1718_vm7, %v1992_v2, %v1715_v12 }
 0x5f7   :  { %v1741_v19 = vmul.f32 %v1994_v50, %v1739_v39  ;;  %v1734_v54 = vmul.f32 %v1730_v33, %v1677_v17  ;;  %v1724_v6 = vsel %vm1721_vm8, %v1723_v62, %v1719_v26 }
 0x5f8   :  { %v1751_v31 = vmul.f32 %v3598_v36, %v1724_v6  ;;  %v1740_v40 = vsub.f32 1.0, %v1724_v6 }
 0x5f9   :  { %v1752_v9 = vadd.f32 %v1750_v59, %v1741_v19  ;;  %v1736_v58 = vadd.f32 %v1734_v54, %v258_v46 }
 0x5fb   :  { %1754 = vst [vmem:[%s3635_s5 - $0x4] sm:$0xf0] %v1752_v9  ;;  %1995 = vtanh.f32 %v1736_v58 }
 0x601   :  { %v1996_v7 = vpop.eup %1995 }
 0x602   :  { %v1742_v57 = vmul.f32 %v1996_v7, %v1740_v40 }
 0x604   :  { %v1753_v11 = vadd.f32 %v1751_v31, %v1742_v57 }
 0x606   :  { %1755 = vst [vmem:[%s3635_s5 + $0x4] sm:$0xff] %v1753_v11 }

// kernel: _lambda_.3
= control target key start
LH: loop header
LB: loop body
LE: loop exit
PB: predicated region body
PF: predicated region fallthrough
CT: control target
= control target key end

     0   :  { %s2300_s0 = inlined_call_operand.vmem [shape: f32[16,16,32], index: 0, kind: input, shape index: {}]   ;;  %s2301_s1 = inlined_call_operand.vmem [shape: f32[16,32], index: 1, kind: input, shape index: {}]   ;;  %s2302_s2 = inlined_call_operand.vmem [shape: f32[16,32], index: 2, kind: input, shape index: {}]   ;;  %s2303_s3 = inlined_call_operand.vmem [shape: f32[32,256], index: 3, kind: input, shape index: {}]   ;;  %s2304_s4 = inlined_call_operand.vmem [shape: f32[352,128], index: 4, kind: input, shape index: {}]   ;;  %s2305_s5 = inlined_call_operand.vmem [shape: f32[8,128], index: 5, kind: input, shape index: {}]   ;;  %s2306_s6 = inlined_call_operand.hbm [shape: f32[16,128], index: 6, kind: output, shape index: {0}]   ;;  %s2307_s7 = inlined_call_operand.hbm [shape: f32[16,128], index: 7, kind: output, shape index: {1}]  }
   0x1   :  { %2309 = sst [smem:[#allocation8_spill]] %s2300_s0 }
   0x2   :  { %13 = vsyncpa [#allocation3], 0 }
   0x3   :  { %15 = vsyncpa [#allocation3 + $0x1], 0 }
   0x4   :  { %16 = vsyncpa [#allocation5], 0 }
   0x5   :  { %18 = vsyncpa [#allocation5 + $0x1], 0  ;;  %s1624_s24 = smov 0   ;;  %s1626_s25 = smov 0  }
   0x6   :  { %s1628_s26 = smov 0   ;;  %s1630_s27 = smov 0  }
   0x7 LB: > { %s1645_s28 = sadd.s32 4294967295, %s1581_s27   ;;  %s1358_s29 = sadd.s32 4294967294, %s1581_s27   ;;  %s1581_s27 = sphi %s1630_s27, %s2317_s27   ;;  %s1577_s26 = sphi %s1628_s26, %s2316_s26   ;;  %s1573_s25 = sphi %s1626_s25, %s2315_s25   ;;  %s1569_s24 = sphi %s1624_s24, %s2314_s24  }
   0x8   : > { %s1649_s30 = sadd.s32 1, %s1581_s27   ;;  %s172_s8 = sadd.s32 1, %s1577_s26 }
   0x9   : > { %s169_s9 = ssub.s32 %s1581_s27, %s1649_s30  ;;  %p182_p0 = scmp.ne.s32.totalorder %s1577_s26, %s1573_s25 }
   0xa   : > { %p170_p1 = scmp.eq.s32.totalorder %s169_s9, 0  ;;  %p183_p2 = scmp.eq.s32.totalorder %s1645_s28, 1 }
   0xb   : > { %p188_p3 = scmp.ne.s32.totalorder %s1573_s25, %s1569_s24  ;;  %p189_p4 = scmp.eq.s32.totalorder %s1358_s29, 1 }
   0xc   : > { %s1660_s10 = scalar_select %p170_p1, %s1577_s26, %s172_s8  }
   0xd   : > { %p1662_p5 = por %p183_p2, %p182_p0  ;;  %p1666_p6 = por %p189_p4, %p188_p3 }
   0xe   : > { %p1361_p7 = scmp.ge.s32.totalorder %s1581_s27, 1  ;;  %p266_p8 = scmp.lt.s32.totalorder %s1581_s27, 3 }
  0x10   : > { %p267_p9 = pnand %p1361_p7, %p266_p8 }
  0x11   : > { %p319_p10 = scmp.lt.s32.totalorder (!%p267_p9), %s1645_s28, 1  ;;  %s1683_s19 = sshll.u32 (!%p267_p9), %s1645_s28, 3 }
  0x12   : > { %270 = sbr.rel (%p267_p9) target bundleno = 1349 (0x545), region = 44  ;;  %p313_p11 = scmp.lt.s32.totalorder (!%p267_p9), %s1683_s19, 15 }
  0x13   : > { %s2312_s0 = sld [smem:[#allocation8_spill]] (!%p267_p9)  ;;  %s2171_s13 = sand.u32 (!%p267_p9), 1, %s1573_s25  }
  0x14   : > { %s1237_s9 = scalar_lea.hbm (!%p267_p9), %s2307_s7, %s1683_s19  ;;  %s1507_s22 = scalar_lea.hbm (!%p267_p9), %s2307_s7, 16 }
  0x17   : > { %v335_v0 = vld [vmem:[%s2303_s3 + $0x30] sm:$0xff]  ;;  %v336_v1 = vld [vmem:[%s2303_s3 + $0x38] sm:$0xff]  ;;  %v333_v3 = vld [vmem:[%s2303_s3 + $0x20] sm:$0xff]  ;;  %s2319_s28 = smov (!%p319_p10, %s1645_s28), 1  ;;  %vm337_vm0 = vcmask 261120   ;;  %vm647_vm1 = vcmask 130112  }
  0x18   : > { %v406_v2 = vld [vmem:[%s2304_s4 + $0x18] sm:$0xff]  ;;  %353 = vmatpush.msra.mxu3 %v335_v0  ;;  %373 = vmatpush.msra.mxu1 %v336_v1  ;;  %v334_v4 = vld [vmem:[%s2303_s3 + $0x28] sm:$0xff]  ;;  %v405_v5 = vld [vmem:[%s2304_s4 + $0x10] sm:$0xff]  ;;  %s314_s18 = scalar_select %p313_p11, %s1683_s19, 15  ;;  %vm670_vm2 = vcmask 1041409   ;;  %vm672_vm3 = vcmask 1042434  }
  0x19   : > { %468 = vmatpush.msra.mxu0 %v406_v2  ;;  %1397 = vmatpush.msra.mxu2 %v406_v2  ;;  %v331_v6 = vld [vmem:[%s2303_s3 + $0x10] sm:$0xff]  ;;  %v332_v7 = vld [vmem:[%s2303_s3 + $0x18] sm:$0xff]  ;;  %v404_v8 = vld [vmem:[%s2304_s4 + $0x8] sm:$0xff]  ;;  %s1367_s29 = sshll.u32 %s2319_s28, 3  ;;  %vm674_vm4 = vcmask 1043459   ;;  %vm676_vm5 = vcmask 1044484  }
  0x1a   : > { %354 = vmatpush.msra.mxu3 %v333_v3  ;;  %374 = vmatpush.msra.mxu1 %v334_v4  ;;  %v329_v9 = vld [vmem:[%s2303_s3] sm:$0xff]  ;;  %v330_v10 = vld [vmem:[%s2303_s3 + $0x8] sm:$0xff]  ;;  %s322_s15 = scalar_lea.vmem %s2301_s1, %s1367_s29  ;;  %s1395_s16 = sshll.u32 %s314_s18, 4  ;;  %vm678_vm6 = vcmask 1045509   ;;  %vm680_vm7 = vcmask 1046534   ;;  %vm682_vm8 = vcmask 1047559  }
  0x1b   : > { %469 = vmatpush.msra.mxu0 %v405_v5  ;;  %1399 = vmatpush.msra.mxu2 %v405_v5  ;;  %v403_v11 = vld [vmem:[%s2304_s4] sm:$0xff]  ;;  %s1726_s21 = scalar_lea.vmem %s2312_s0, %s1395_s16  ;;  %vm685_vm9 = vcmask 130048   ;;  %s326_s14 = scalar_lea.vmem %s2302_s2, %s1367_s29 }
  0x1c   : > { %355 = vmatpush.msra.mxu3 %v331_v6  ;;  %375 = vmatpush.msra.mxu1 %v332_v7  ;;  %v328_v12 = vld [vmem:[%s322_s15] sm:$0xff]  ;;  %v1732_v14 = vld [vmem:[%s1726_s21 + $0x48] sm:$0xff]  ;;  %v1747_v17 = vld [vmem:[%s1726_s21 + $0x50] sm:$0xff]  ;;  %s2308_s28 = sshll.u32 %s2171_s13, 3  ;;  %s1241_s15 = sshll.u32 %s1237_s9, 4  ;;  %s1242_s15 = int_to_ptr.hbm [resolvable:$true] %s1241_s15 }
  0x1d   : > { %470 = vmatpush.msra.mxu0 %v404_v8  ;;  %1401 = vmatpush.msra.mxu2 %v404_v8  ;;  %v1729_v13 = vld [vmem:[%s1726_s21] sm:$0xff]  ;;  %v1741_v15 = vld [vmem:[%s1726_s21 + $0x8] sm:$0xff]  ;;  %v1756_v18 = vld [vmem:[%s1726_s21 + $0x10] sm:$0xff]  ;;  %s2200_s29 = scalar_lea.vmem [#allocation4], %s2308_s28  ;;  %s1213_s16 = scalar_lea.sflag [#allocation5], %s2171_s13 }
  0x1e   : > { %356 = vmatpush.msra.mxu3 %v329_v9  ;;  %376 = vmatpush.msra.mxu1 %v330_v10  ;;  %v1744_v16 = vld [vmem:[%s1726_s21 + $0x28] sm:$0xff]  ;;  %v1759_v19 = vld [vmem:[%s1726_s21 + $0x30] sm:$0xff]  ;;  %v1762_v20 = vld [vmem:[%s1726_s21 + $0x58] sm:$0xff]  ;;  %s1501_s17 = sshra.s32 %s1242_s15, 4  ;;  %s1502_s17 = int_to_ptr.hbm [resolvable:$true] %s1501_s17 }
  0x1f   : > { %471 = vmatpush.msra.mxu0 %v403_v11  ;;  %1403 = vmatpush.msra.mxu2 %v403_v11  ;;  %v1771_v21 = vld [vmem:[%s1726_s21 + $0x18] sm:$0xff]  ;;  %v1777_v23 = vld [vmem:[%s1726_s21 + $0x60] sm:$0xff]  ;;  %v1792_v26 = vld [vmem:[%s1726_s21 + $0x68] sm:$0xff]  ;;  %s1503_s20 = scalar_lea.hbm %s1502_s17, 8  ;;  %p1508_p1 = scmp.lt.s32.totalorder %s1502_s17, %s2307_s7 }
  0x20   : > { %1369 = vmatmul.msk.f32.vlgmr.msra.gmra.mxu3 %vm337_vm0, %v328_v12  ;;  %1370 = vmatmul.msk.f32.vlgmr.msra.gmra.mxu1 %vm337_vm0, %v328_v12  ;;  %v1774_v22 = vld [vmem:[%s1726_s21 + $0x38] sm:$0xff]  ;;  %v1786_v24 = vld [vmem:[%s1726_s21 + $0x20] sm:$0xff]  ;;  %v1801_v27 = vld [vmem:[%s1726_s21 + $0x70] sm:$0xff]  ;;  %p1504_p12 = scmp.ne.s32.totalorder %s1502_s17, %s1503_s20  ;;  %p1509_p2 = scmp.lt.s32.totalorder %s1507_s22, %s1503_s20 }
  0x21   : > { %1371 = vmatmul.msk.f32.vlgmr.msra.gmra.mxu0 %vm337_vm0, %v1729_v13  ;;  %1380 = vmatmul.msk.f32.vlgmr.msra.gmra.mxu2 %vm337_vm0, %v1732_v14  ;;  %v1789_v25 = vld [vmem:[%s1726_s21 + $0x40] sm:$0xff]  ;;  %v1806_v28 = vld [vmem:[%s1726_s21 + $0x78] sm:$0xff] }
  0x22   : > { %1396 = vmatpush.msrb.mxu1 %v406_v2  ;;  %v327_v29 = vld [vmem:[%s2305_s5] sm:$0xff]  ;;  %p1505_p13 = pnand %p1504_p12, %p1662_p5  ;;  %p1510_p3 = por %p1509_p2, %p1508_p1 }
  0x23   : > { %v1815_v32 = vperm.slane %v327_v29, 0  ;;  %v381_v33 = vperm.slane %v327_v29, 1  ;;  %v1821_v42 = vperm.slane %v327_v29, 7 }
  0x24   : > { %1398 = vmatpush.msrb.mxu1 %v405_v5  ;;  %p1506_p0 = pneg %p1505_p13 }
  0x26   : > { %1400 = vmatpush.msrb.mxu1 %v404_v8  ;;  %p1511_p4 = pnand %p1510_p3, %p1506_p0 }
  0x28   : > { %1402 = vmatpush.msrb.mxu1 %v403_v11 }
  0x29   : > { %1372 = vmatmul.msk.f32.gmra.mxu0 %vm337_vm0, %v1741_v15  ;;  %1376 = vmatmul.msk.f32.vlgmr.msrb.gmra.mxu1 %vm337_vm0, %v1744_v16 }
  0x2a   : > { %1381 = vmatmul.msk.f32.gmra.mxu2 %vm337_vm0, %v1747_v17 }
  0x31   : > { %1373 = vmatmul.msk.f32.gmra.mxu0 %vm337_vm0, %v1756_v18  ;;  %1377 = vmatmul.msk.f32.gmra.mxu1 %vm337_vm0, %v1759_v19 }
  0x32   : > { %1382 = vmatmul.msk.f32.gmra.mxu2 %vm337_vm0, %v1762_v20 }
  0x39   : > { %1374 = vmatmul.msk.f32.gmra.mxu0 %vm337_vm0, %v1771_v21  ;;  %1378 = vmatmul.msk.f32.gmra.mxu1 %vm337_vm0, %v1774_v22 }
  0x3a   : > { %1383 = vmatmul.msk.f32.gmra.mxu2 %vm337_vm0, %v1777_v23 }
  0x41   : > { %1375 = vmatmul.msk.f32.gmra.mxu0 %vm337_vm0, %v1786_v24  ;;  %1379 = vmatmul.msk.f32.gmra.mxu1 %vm337_vm0, %v1789_v25 }
  0x42   : > { %1384 = vmatmul.msk.f32.gmra.mxu2 %vm337_vm0, %v1792_v26 }
  0x4a   : > { %1385 = vmatmul.msk.f32.gmra.mxu2 %vm337_vm0, %v1801_v27 }
  0x52   : > { %1386 = vmatmul.msk.f32.gmra.mxu2 %vm337_vm0, %v1806_v28 }
  0x9d   : > { %v1813_v30 = vpop.f32.mrf.mxu1 }
  0x9e   : > { %v473_v31 = vpop.f32.mrf.mxu0 }
  0x9f   : > { %v474_v35 = vadd.f32 %v473_v31, %v1815_v32 }
  0xa1   : > { %v521_v43 = vmax.f32 %v474_v35, 0.0 }
  0xa3   : > { %v358_v34 = vpop.f32.mrf.mxu3 }
  0xa4   : > { %v382_v36 = vadd.f32 %v381_v33, %v358_v34  ;;  %v500_v37 = vpop.f32.mrf.mxu2 }
  0xa5   : > { %v501_v2 = vadd.f32 %v500_v37, %v1815_v32 }
  0xa6   : > { %v1818_v38 = vmax.f32 %v382_v36, 0.0  ;;  %v476_v39 = vpop.f32.mrf.mxu0  ;;  %v488_v40 = vpop.f32.mrf.mxu1 }
  0xa7   : > { %v489_v41 = vadd.f32 %v488_v40, %v1815_v32  ;;  %v477_v44 = vadd.f32 %v476_v39, %v1815_v32  ;;  %v530_v12 = vmax.f32 %v501_v2, 0.0 }
  0xa8   : > { %v545_v45 = vperm.slane %v1818_v38, 0  ;;  %v539_v47 = vrot.slane %v1818_v38, 2  ;;  %v542_v49 = vrot.slane %v1818_v38, 5  ;;  %v538_v63 = vrot.slane %v1818_v38, 1 }
  0xa9   : > { %v526_v46 = vmax.f32 %v489_v41, 0.0  ;;  %v522_v51 = vmax.f32 %v477_v44, 0.0  ;;  %v541_v0 = vrot.slane %v1818_v38, 4  ;;  %v540_v36 = vrot.slane %v1818_v38, 3 }
  0xaa   : > { %v561_v48 = vmul.f32 %v545_v45, %v521_v43  ;;  %v547_v50 = vperm.slane %v539_v47, 0  ;;  %v550_v58 = vperm.slane %v542_v49, 0  ;;  %v546_v4 = vperm.slane %v538_v63, 0 }
  0xab   : > { %v562_v60 = vmul.f32 %v545_v45, %v522_v51  ;;  %v549_v7 = vperm.slane %v541_v0, 0  ;;  %v548_v44 = vperm.slane %v540_v36, 0 }
  0xac   : > { %v578_v52 = vmul.f32 %v1821_v42, %v561_v48  ;;  %v566_v54 = vmul.f32 %v547_v50, %v526_v46 }
  0xad   : > { %v503_v53 = vpop.f32.mrf.mxu2  ;;  %v579_v6 = vmul.f32 %v1821_v42, %v562_v60  ;;  %v570_v34 = vmul.f32 %v549_v7, %v530_v12 }
  0xae   : > { %v504_v55 = vadd.f32 %v503_v53, %v1815_v32  ;;  %v479_v56 = vpop.f32.mrf.mxu0  ;;  %v491_v57 = vpop.f32.mrf.mxu1  ;;  %594 = vadd.xlane.f32.xlu0 %v578_v52  ;;  %v583_v59 = vmul.f32 %v1821_v42, %v566_v54 }
  0xaf   : > { %v480_v62 = vadd.f32 %v479_v56, %v1815_v32  ;;  %v492_v35 = vadd.f32 %v491_v57, %v1815_v32  ;;  %v587_v46 = vmul.f32 %v1821_v42, %v570_v34  ;;  %v543_v57 = vrot.slane %v1818_v38, 6 }
  0xb0   : > { %v531_v61 = vmax.f32 %v504_v55, 0.0  ;;  %604 = vadd.xlane.f32.xlu2 %v583_v59 }
  0xb1   : > { %v523_v3 = vmax.f32 %v480_v62, 0.0  ;;  %v527_v43 = vmax.f32 %v492_v35, 0.0  ;;  %v551_v2 = vperm.slane %v543_v57, 0 }
  0xb2   : > { %v571_v1 = vmul.f32 %v550_v58, %v531_v61 }
  0xb3   : > { %v563_v29 = vmul.f32 %v546_v4, %v523_v3  ;;  %v567_v53 = vmul.f32 %v548_v44, %v527_v43 }
  0xb4   : > { %v588_v5 = vmul.f32 %v1821_v42, %v571_v1 }
  0xb5   : > { %v506_v8 = vpop.f32.mrf.mxu2  ;;  %v580_v41 = vmul.f32 %v1821_v42, %v563_v29  ;;  %v584_v1 = vmul.f32 %v1821_v42, %v567_v53 }
  0xb6   : > { %v507_v9 = vadd.f32 %v506_v8, %v1815_v32  ;;  %614 = vadd.xlane.f32.xlu1 %v588_v5  ;;  %v482_v10 = vpop.f32.mrf.mxu0  ;;  %v494_v11 = vpop.f32.mrf.mxu1  ;;  %596 = vadd.xlane.f32.xlu0 %v579_v6  ;;  %v544_v8 = vrot.slane %v1818_v38, 7 }
  0xb7   : > { %v483_v33 = vadd.f32 %v482_v10, %v1815_v32  ;;  %v495_v52 = vadd.f32 %v494_v11, %v1815_v32 }
  0xb8   : > { %v532_v31 = vmax.f32 %v507_v9, 0.0  ;;  %v552_v34 = vperm.slane %v544_v8, 0 }
  0xb9   : > { %v524_v39 = vmax.f32 %v483_v33, 0.0  ;;  %v528_v59 = vmax.f32 %v495_v52, 0.0 }
  0xba   : > { %v572_v37 = vmul.f32 %v550_v58, %v532_v31 }
  0xbb   : > { %v564_v51 = vmul.f32 %v546_v4, %v524_v39  ;;  %v568_v3 = vmul.f32 %v548_v44, %v528_v59 }
  0xbc   : > { %v589_v40 = vmul.f32 %v1821_v42, %v572_v37 }
  0xbd   : > { %v509_v45 = vpop.f32.mrf.mxu2  ;;  %v581_v60 = vmul.f32 %v1821_v42, %v564_v51  ;;  %v585_v9 = vmul.f32 %v1821_v42, %v568_v3  ;;  %v642_v51 = vlaneseq }
  0xbe   : > { %616 = vadd.xlane.f32.xlu2 %v589_v40  ;;  %598 = vadd.xlane.f32.xlu1 %v580_v41  ;;  %v485_v47 = vpop.f32.mrf.mxu0  ;;  %v497_v48 = vpop.f32.mrf.mxu1  ;;  %v510_v54 = vadd.f32 %v509_v45, %v1815_v32 }
  0xbf   : > { %v486_v49 = vadd.f32 %v485_v47, %v1815_v32  ;;  %612 = vadd.xlane.f32.xlu0 %v587_v46  ;;  %v498_v56 = vadd.f32 %v497_v48, %v1815_v32 }
  0xc0   : > { %v533_v61 = vmax.f32 %v510_v54, 0.0 }
  0xc1   : > { %v525_v55 = vmax.f32 %v486_v49, 0.0  ;;  %v529_v62 = vmax.f32 %v498_v56, 0.0 }
  0xc2   : > { %v573_v5 = vmul.f32 %v551_v2, %v533_v61 }
  0xc3   : > { %v565_v58 = vmul.f32 %v547_v50, %v525_v55  ;;  %v569_v6 = vmul.f32 %v549_v7, %v529_v62 }
  0xc4   : > { %v590_v12 = vmul.f32 %v1821_v42, %v573_v5 }
  0xc5   : > { %v512_v63 = vpop.f32.mrf.mxu2  ;;  %v582_v0 = vmul.f32 %v1821_v42, %v565_v58  ;;  %v586_v11 = vmul.f32 %v1821_v42, %v569_v6 }
  0xc6   : > { %600 = vadd.xlane.f32.xlu1 %v581_v60  ;;  %v513_v4 = vadd.f32 %v512_v63, %v1815_v32 }
  0xc7   : > { %602 = vadd.xlane.f32.xlu2 %v582_v0  ;;  %606 = vadd.xlane.f32.xlu0 %v584_v1 }
  0xc8   : > { %v534_v50 = vmax.f32 %v513_v4, 0.0 }
  0xca   : > { %v574_v31 = vmul.f32 %v551_v2, %v534_v50 }
  0xcc   : > { %v591_v7 = vmul.f32 %v1821_v42, %v574_v31 }
  0xcd   : > { %v515_v10 = vpop.f32.mrf.mxu2 }
  0xce   : > { %v516_v29 = vadd.f32 %v515_v10, %v1815_v32  ;;  %608 = vadd.xlane.f32.xlu1 %v585_v9 }
  0xcf   : > { %610 = vadd.xlane.f32.xlu2 %v586_v11  ;;  %618 = vadd.xlane.f32.xlu0 %v590_v12 }
  0xd0   : > { %v535_v33 = vmax.f32 %v516_v29, 0.0 }
  0xd2   : > { %v575_v35 = vmul.f32 %v552_v34, %v535_v33 }
  0xd4   : > { %v592_v38 = vmul.f32 %v1821_v42, %v575_v35 }
  0xd5   : > { %v518_v36 = vpop.f32.mrf.mxu2 }
  0xd6   : > { %v519_v37 = vadd.f32 %v518_v36, %v1815_v32  ;;  %620 = vadd.xlane.f32.xlu1 %v591_v7 }
  0xd7   : > { %622 = vadd.xlane.f32.xlu2 %v592_v38 }
  0xd8   : > { %v536_v39 = vmax.f32 %v519_v37, 0.0 }
  0xda   : > { %v576_v40 = vmul.f32 %v552_v34, %v536_v39 }
  0xdc   : > { %v593_v41 = vmul.f32 %v1821_v42, %v576_v40  ;;  %v1879_v42 = vand.u32 127, %v642_v51 }
  0xde   : > { %624 = vadd.xlane.f32.xlu0 %v593_v41  ;;  %v1884_v54 = vadd.s32 4294967288, %v1879_v42 }
 0x121   : > { %v1861_v43 = vpop.xlane.xlu0 %594 }
 0x122   : > { %v644_v61 = vperm.slane %v1861_v43, %v1879_v42 }
 0x123   : > { %v1865_v45 = vpop.xlane.xlu2 %604 }
 0x124   : > { %v653_v0 = vperm.slane %v1865_v45, %v1884_v54 }
 0x129   : > { %v1863_v44 = vpop.xlane.xlu1 %614  ;;  %v1867_v46 = vpop.xlane.xlu0 %596 }
 0x12a   : > { %v646_v57 = vperm.slane %v1867_v46, %v1884_v54  ;;  %v661_v35 = vperm.slane %v1863_v44, %v1879_v42 }
 0x12c   : > { %v648_v1 = vsel %vm647_vm1, %v646_v57, %v644_v61 }
 0x131   : > { %v1869_v47 = vpop.xlane.xlu1 %598  ;;  %v1871_v48 = vpop.xlane.xlu2 %616 }
 0x132   : > { %v1873_v32 = vpop.xlane.xlu0 %612  ;;  %v649_v58 = vperm.slane %v1869_v47, %v1879_v42  ;;  %v662_v31 = vperm.slane %v1871_v48, %v1884_v54 }
 0x133   : > { %v659_v9 = vperm.slane %v1873_v32, %v1884_v54 }
 0x134   : > { %v663_v37 = vsel %vm647_vm1, %v662_v31, %v661_v35 }
 0x139   : > { %v1875_v49 = vpop.xlane.xlu1 %600 }
 0x13a   : > { %v1877_v52 = vpop.xlane.xlu2 %602  ;;  %v1881_v53 = vpop.xlane.xlu0 %606  ;;  %v650_v56 = vperm.slane %v1875_v49, %v1884_v54 }
 0x13b   : > { %v652_v59 = vperm.slane %v1877_v52, %v1879_v42  ;;  %v655_v2 = vperm.slane %v1881_v53, %v1879_v42 }
 0x13c   : > { %v651_v62 = vsel %vm647_vm1, %v650_v56, %v649_v58 }
 0x13d   : > { %v671_v3 = vsel %vm670_vm2, %v651_v62, %v648_v1  ;;  %v654_v4 = vsel %vm647_vm1, %v653_v0, %v652_v59  ;;  %v1583_v59 = vmov 0  }
 0x13e   : > { %v673_v10 = vsel %vm672_vm3, %v654_v4, %v671_v3  ;;  %1451 = vset.pattern.permute.xlu1 %v1583_v59  ;;  %1450 = vset.pattern.permute.xlu0 %v1583_v59 }
 0x13f   : > { %1449 = vset.pattern.permute.xlu2 %v1583_v59 }
 0x141   : > { %v1886_v55 = vpop.xlane.xlu1 %608 }
 0x142   : > { %v611_v60 = vpop.xlane.xlu2 %610  ;;  %v656_v63 = vperm.slane %v1886_v55, %v1884_v54  ;;  %v1909_v6 = vpop.xlane.xlu0 %618 }
 0x143   : > { %v658_v5 = vperm.slane %v611_v60, %v1879_v42  ;;  %v664_v33 = vperm.slane %v1909_v6, %v1879_v42 }
 0x144   : > { %v657_v50 = vsel %vm647_vm1, %v656_v63, %v655_v2 }
 0x145   : > { %v675_v11 = vsel %vm674_vm4, %v657_v50, %v673_v10  ;;  %v660_v12 = vsel %vm647_vm1, %v659_v9, %v658_v5 }
 0x146   : > { %v677_v7 = vsel %vm676_vm5, %v660_v12, %v675_v11 }
 0x147   : > { %v679_v41 = vsel %vm678_vm6, %v663_v37, %v677_v7 }
 0x149   : > { %v1912_v8 = vpop.xlane.xlu1 %620 }
 0x14a   : > { %v665_v29 = vperm.slane %v1912_v8, %v1884_v54  ;;  %v1925_v34 = vpop.xlane.xlu2 %622 }
 0x14b   : > { %v667_v39 = vperm.slane %v1925_v34, %v1879_v42 }
 0x14c   : > { %v666_v38 = vsel %vm647_vm1, %v665_v29, %v664_v33 }
 0x14d   : > { %v681_v56 = vsel %vm680_vm7, %v666_v38, %v679_v41 }
 0x151   : > { %v1930_v36 = vpop.xlane.xlu0 %624 }
 0x152   : > { %v668_v40 = vperm.slane %v1930_v36, %v1884_v54 }
 0x154   : > { %v669_v51 = vsel %vm647_vm1, %v668_v40, %v667_v39 }
 0x155   : > { %v683_v57 = vsel %vm682_vm8, %v669_v51, %v681_v56 }
 0x156   : > { %v686_v58 = vsel %vm685_vm9, %v683_v57, -inf }
 0x157   : > { %687 = vmax.xlane.f32.xlu1 %v686_v58 }
 0x1ca   : > { %v1943_v61 = vpop.xlane.xlu1 %687 }
 0x1cb   : > { %v691_v62 = vperm.slane %v1943_v61, 1  ;;  %v690_v63 = vperm.slane %v1943_v61, 0  ;;  %v692_v3 = vperm.slane %v1943_v61, 2  ;;  %v694_v4 = vperm.slane %v1943_v61, 4 }
 0x1cc   : > { %v697_v39 = vperm.slane %v1943_v61, 7  ;;  %v696_v58 = vperm.slane %v1943_v61, 6 }
 0x1cd   : > { %v708_v0 = vsub.f32 %v1869_v47, %v691_v62  ;;  %v707_v1 = vsub.f32 %v1867_v46, %v690_v63  ;;  %v706_v2 = vsub.f32 %v1861_v43, %v690_v63  ;;  %v711_v10 = vsub.f32 %v1865_v45, %v692_v3 }
 0x1ce   : > { %v714_v11 = vsub.f32 %v611_v60, %v694_v4  ;;  %v709_v12 = vsub.f32 %v1875_v49, %v691_v62  ;;  %v693_v46 = vperm.slane %v1943_v61, 3  ;;  %v695_v43 = vperm.slane %v1943_v61, 5 }
 0x1cf   : > { %v726_v5 = vmul.f32 1.442695, %v708_v0  ;;  %v724_v50 = vmul.f32 1.442695, %v707_v1  ;;  %v722_v9 = vmul.f32 1.442695, %v706_v2  ;;  %v710_v60 = vsub.f32 %v1877_v52, %v692_v3 }
 0x1d0   : > { %v732_v47 = vmul.f32 1.442695, %v711_v10  ;;  %v738_v29 = vmul.f32 1.442695, %v714_v11  ;;  %v728_v33 = vmul.f32 1.442695, %v709_v12  ;;  %v713_v45 = vsub.f32 %v1886_v55, %v693_v46 }
 0x1d1   : > { %1452 = vpow2.f32 %v726_v5  ;;  %v717_v49 = vsub.f32 %v1871_v48, %v695_v43  ;;  %v730_v41 = vmul.f32 1.442695, %v710_v60  ;;  %v716_v48 = vsub.f32 %v1863_v44, %v695_v43 }
 0x1d2   : > { %1454 = vpow2.f32 %v724_v50  ;;  %v736_v38 = vmul.f32 1.442695, %v713_v45  ;;  %v720_v52 = vsub.f32 %v1925_v34, %v697_v39  ;;  %v712_v56 = vsub.f32 %v1881_v53, %v693_v46 }
 0x1d3   : > { %1456 = vpow2.f32 %v722_v9  ;;  %v744_v37 = vmul.f32 1.442695, %v717_v49  ;;  %v742_v57 = vmul.f32 1.442695, %v716_v48  ;;  %v719_v34 = vsub.f32 %v1912_v8, %v696_v58 }
 0x1d4   : > { %1458 = vpow2.f32 %v732_v47  ;;  %v750_v59 = vmul.f32 1.442695, %v720_v52  ;;  %v734_v63 = vmul.f32 1.442695, %v712_v56  ;;  %v715_v53 = vsub.f32 %v1873_v32, %v694_v4 }
 0x1d5   : > { %1460 = vpow2.f32 %v738_v29  ;;  %v748_v61 = vmul.f32 1.442695, %v719_v34  ;;  %v718_v8 = vsub.f32 %v1909_v6, %v696_v58  ;;  %v721_v9 = vsub.f32 %v1930_v36, %v697_v39 }
 0x1d6   : > { %1462 = vpow2.f32 %v728_v33  ;;  %v740_v2 = vmul.f32 1.442695, %v715_v53 }
 0x1d7   : > { %v1956_v31 = vpop.eup %1452  ;;  %1464 = vpow2.f32 %v736_v38  ;;  %v746_v32 = vmul.f32 1.442695, %v718_v8  ;;  %v752_v10 = vmul.f32 1.442695, %v721_v9 }
 0x1d8   : > { %v1958_v35 = vpop.eup %1454  ;;  %777 = vperm.xlu1 %1451, %v1956_v31   ;;  %1466 = vpow2.f32 %v744_v37 }
 0x1d9   : > { %v1961_v7 = vpop.eup %1456  ;;  %774 = vperm.xlu0 %1450, %v1958_v35   ;;  %1468 = vpow2.f32 %v730_v41 }
 0x1da   : > { %771 = vperm.xlu2 %1449, %v1961_v7   ;;  %v1969_v40 = vpop.eup %1458  ;;  %1470 = vpow2.f32 %v742_v57 }
 0x1db   : > { %v1971_v51 = vpop.eup %1460  ;;  %1472 = vpow2.f32 %v750_v59 }
 0x1dc   : > { %v1974_v55 = vpop.eup %1462  ;;  %1474 = vpow2.f32 %v734_v63 }
 0x1dd   : > { %v1982_v62 = vpop.eup %1464  ;;  %1476 = vpow2.f32 %v748_v61 }
 0x1de   : > { %v1984_v0 = vpop.eup %1466  ;;  %1478 = vpow2.f32 %v740_v2 }
 0x1df   : > { %v1987_v44 = vpop.eup %1468  ;;  %1480 = vpow2.f32 %v746_v32 }
 0x1e0   : > { %786 = vperm.xlu1 %1451, %v1969_v40   ;;  %v1993_v1 = vpop.eup %1470  ;;  %1482 = vpow2.f32 %v752_v10 }
 0x1e1   : > { %795 = vperm.xlu0 %1450, %v1971_v51   ;;  %v1995_v3 = vpop.eup %1472 }
 0x1e2   : > { %780 = vperm.xlu2 %1449, %v1974_v55   ;;  %v1998_v5 = vpop.eup %1474 }
 0x1e3   : > { %v2003_v50 = vpop.eup %1476 }
 0x1e4   : > { %v2006_v4 = vpop.eup %1478 }
 0x1e5   : > { %v2010_v11 = vpop.eup %1480 }
 0x1e6   : > { %v2013_v12 = vpop.eup %1482 }
 0x1e8   : > { %792 = vperm.xlu1 %1451, %v1982_v62  }
 0x1e9   : > { %804 = vperm.xlu0 %1450, %v1984_v0  }
 0x1ea   : > { %783 = vperm.xlu2 %1449, %v1987_v44  }
 0x1f0   : > { %801 = vperm.xlu1 %1451, %v1993_v1  }
 0x1f1   : > { %813 = vperm.xlu0 %1450, %v1995_v3  }
 0x1f2   : > { %789 = vperm.xlu2 %1449, %v1998_v5  }
 0x1f8   : > { %810 = vperm.xlu1 %1451, %v2003_v50  }
 0x1fa   : > { %798 = vperm.xlu2 %1449, %v2006_v4  }
 0x202   : > { %807 = vperm.xlu2 %1449, %v2010_v11  }
 0x20a   : > { %816 = vperm.xlu2 %1449, %v2013_v12  }
 0x234   : > { %v772_v6 = vpop.permute.xlu2 %771 }
 0x235   : > { %v818_v52 = vperm.slane %v772_v6, %v1879_v42 }
 0x23c   : > { %v781_v47 = vpop.permute.xlu2 %780 }
 0x23d   : > { %v822_v56 = vperm.slane %v781_v47, %v1884_v54 }
 0x244   : > { %v784_v46 = vpop.permute.xlu2 %783 }
 0x245   : > { %v824_v59 = vperm.slane %v784_v46, %v1879_v42 }
 0x24a   : > { %v778_v29 = vpop.permute.xlu1 %777 }
 0x24b   : > { %v775_v43 = vpop.permute.xlu0 %774  ;;  %v821_v39 = vperm.slane %v778_v29, %v1879_v42 }
 0x24c   : > { %v790_v33 = vpop.permute.xlu2 %789  ;;  %v819_v41 = vperm.slane %v775_v43, %v1884_v54 }
 0x24d   : > { %v823_v63 = vsel %vm647_vm1, %v822_v56, %v821_v39  ;;  %v827_v53 = vperm.slane %v790_v33, %v1879_v42 }
 0x24e   : > { %v820_v34 = vsel %vm647_vm1, %v819_v41, %v818_v52 }
 0x24f   : > { %v842_v32 = vsel %vm670_vm2, %v823_v63, %v820_v34 }
 0x252   : > { %v787_v45 = vpop.permute.xlu1 %786 }
 0x253   : > { %v796_v49 = vpop.permute.xlu0 %795  ;;  %v825_v48 = vperm.slane %v787_v45, %v1884_v54 }
 0x254   : > { %v799_v60 = vpop.permute.xlu2 %798  ;;  %v830_v9 = vperm.slane %v796_v49, %v1879_v42 }
 0x255   : > { %v826_v61 = vsel %vm647_vm1, %v825_v48, %v824_v59  ;;  %v831_v10 = vperm.slane %v799_v60, %v1884_v54 }
 0x256   : > { %v843_v46 = vsel %vm672_vm3, %v826_v61, %v842_v32 }
 0x257   : > { %v832_v41 = vsel %vm647_vm1, %v831_v10, %v830_v9 }
 0x25a   : > { %v793_v36 = vpop.permute.xlu1 %792 }
 0x25b   : > { %v805_v38 = vpop.permute.xlu0 %804  ;;  %v828_v57 = vperm.slane %v793_v36, %v1884_v54 }
 0x25c   : > { %v808_v37 = vpop.permute.xlu2 %807  ;;  %v834_v29 = vperm.slane %v805_v38, %v1884_v54 }
 0x25d   : > { %v829_v2 = vsel %vm647_vm1, %v828_v57, %v827_v53  ;;  %v836_v49 = vperm.slane %v808_v37, %v1879_v42 }
 0x25e   : > { %v844_v43 = vsel %vm674_vm4, %v829_v2, %v843_v46 }
 0x25f   : > { %v845_v48 = vsel %vm676_vm5, %v832_v41, %v844_v43  ;;  %v1103_v41 = vld [vmem:[%s2304_s4 + $0x58] sm:$0xff] }
 0x260   : > { %1120 = vmatpush.msrb.mxu0 %v1103_v41  ;;  %v1141_v41 = vld [vmem:[%s2304_s4 + $0xb8] sm:$0xff] }
 0x262   : > { %v802_v58 = vpop.permute.xlu1 %801 }
 0x263   : > { %v833_v8 = vperm.slane %v802_v58, %v1879_v42  ;;  %v814_v6 = vpop.permute.xlu0 %813 }
 0x264   : > { %v817_v47 = vpop.permute.xlu2 %816  ;;  %v839_v45 = vperm.slane %v814_v6, %v1879_v42 }
 0x265   : > { %v835_v33 = vsel %vm647_vm1, %v834_v29, %v833_v8  ;;  %v840_v36 = vperm.slane %v817_v47, %v1884_v54 }
 0x266   : > { %v846_v38 = vsel %vm678_vm6, %v835_v33, %v845_v48 }
 0x267   : > { %v841_v56 = vsel %vm647_vm1, %v840_v36, %v839_v45 }
 0x26a   : > { %v811_v39 = vpop.permute.xlu1 %810 }
 0x26b   : > { %v837_v60 = vperm.slane %v811_v39, %v1884_v54 }
 0x26d   : > { %v838_v52 = vsel %vm647_vm1, %v837_v60, %v836_v49 }
 0x26e   : > { %v847_v57 = vsel %vm680_vm7, %v838_v52, %v846_v38 }
 0x26f   : > { %v848_v58 = vsel %vm682_vm8, %v841_v56, %v847_v57 }
 0x270   : > { %v850_v59 = vsel %vm685_vm9, %v848_v58, 0.0 }
 0x271   : > { %851 = vadd.xlane.f32.xlu1 %v850_v59 }
 0x2e4   : > { %v852_v63 = vpop.xlane.xlu1 %851 }
 0x2e5   : > { %1484 = vrcp.f32 %v852_v63 }
 0x2eb   : > { %v1485_v42 = vpop.eup %1484 }
 0x2ec   : > { %v860_v37 = vperm.slane %v1485_v42, 5  ;;  %v855_v54 = vperm.slane %v1485_v42, 0  ;;  %v856_v2 = vperm.slane %v1485_v42, 1  ;;  %v857_v9 = vperm.slane %v1485_v42, 2 }
 0x2ed   : > { %v859_v47 = vperm.slane %v1485_v42, 4  ;;  %v861_v46 = vperm.slane %v1485_v42, 6  ;;  %v862_v29 = vperm.slane %v1485_v42, 7 }
 0x2ee   : > { %v881_v34 = vmul.f32 %v1993_v1, %v860_v37  ;;  %v872_v53 = vmul.f32 %v1958_v35, %v855_v54  ;;  %v871_v61 = vmul.f32 %v1961_v7, %v855_v54  ;;  %v874_v8 = vmul.f32 %v1974_v55, %v856_v2 }
 0x2ef   : > { %v873_v32 = vmul.f32 %v1956_v31, %v856_v2  ;;  %v876_v10 = vmul.f32 %v1969_v40, %v857_v9  ;;  %v875_v6 = vmul.f32 %v1987_v44, %v857_v9  ;;  %v858_v35 = vperm.slane %v1485_v42, 3 }
 0x2f0   : > { %939 = vperm.xlu1 %1451, %v881_v34   ;;  %894 = vperm.xlu2 %1449, %v872_v53   ;;  %v880_v55 = vmul.f32 %v2006_v4, %v859_v47  ;;  %v879_v31 = vmul.f32 %v1971_v51, %v859_v47  ;;  %v883_v40 = vmul.f32 %v2010_v11, %v861_v46 }
 0x2f1   : > { %889 = vperm.xlu0 %1450, %v871_v61   ;;  %v878_v7 = vmul.f32 %v1982_v62, %v858_v35  ;;  %v877_v1 = vmul.f32 %v1998_v5, %v858_v35  ;;  %v882_v44 = vmul.f32 %v1984_v0, %v860_v37  ;;  %v885_v62 = vmul.f32 %v1995_v3, %v862_v29 }
 0x2f2   : > { %v884_v5 = vmul.f32 %v2003_v50, %v861_v46  ;;  %v886_v4 = vmul.f32 %v2013_v12, %v862_v29  ;;  %v1102_v12 = vld [vmem:[%s2304_s4 + $0x50] sm:$0xff] }
 0x2f3   : > { %1121 = vmatpush.msrb.mxu0 %v1102_v12  ;;  %v1144_v46 = vld [vmem:[%s2304_s4 + $0xd0] sm:$0xff] }
 0x2f8   : > { %904 = vperm.xlu2 %1449, %v874_v8  }
 0x2f9   : > { %899 = vperm.xlu0 %1450, %v873_v32  }
 0x300   : > { %914 = vperm.xlu2 %1449, %v876_v10  }
 0x301   : > { %909 = vperm.xlu0 %1450, %v875_v6  }
 0x308   : > { %924 = vperm.xlu2 %1449, %v878_v7   ;;  %v1055_v7 = vld [vmem:[%s2304_s4 + $0x20] sm:$0xff] }
 0x309   : > { %919 = vperm.xlu0 %1450, %v877_v1  }
 0x310   : > { %934 = vperm.xlu2 %1449, %v880_v55  }
 0x311   : > { %929 = vperm.xlu0 %1450, %v879_v31   ;;  %v1099_v31 = vld [vmem:[%s326_s14] sm:$0xff]  ;;  %s1239_s14 = sshll.u32 %s2200_s29, 4  ;;  %s1240_s14 = int_to_ptr.vmem [resolvable:$true] %s1239_s14 }
 0x318   : > { %949 = vperm.xlu2 %1449, %v883_v40  }
 0x319   : > { %944 = vperm.xlu0 %1450, %v882_v44  }
 0x320   : > { %959 = vperm.xlu2 %1449, %v885_v62   ;;  %v1143_v62 = vld [vmem:[%s2304_s4 + $0xc8] sm:$0xff] }
 0x321   : > { %954 = vperm.xlu0 %1450, %v884_v5  }
 0x329   : > { %964 = vperm.xlu0 %1450, %v886_v4  }
 0x34a   : > { %v895_v51 = vpop.permute.xlu2 %894 }
 0x34b   : > { %v968_v59 = vmul.f32 %v895_v51, %v1741_v15  ;;  %v1057_v15 = vld [vmem:[%s2304_s4 + $0x30] sm:$0xff] }
 0x34d   : > { %v984_v61 = vsel %vm337_vm0, %v968_v59, 0.0 }
 0x352   : > { %v905_v33 = vpop.permute.xlu2 %904 }
 0x353   : > { %v970_v48 = vmul.f32 %v905_v33, %v1771_v21  ;;  %v1142_v33 = vld [vmem:[%s2304_s4 + $0xc0] sm:$0xff] }
 0x35a   : > { %v915_v36 = vpop.permute.xlu2 %914 }
 0x35b   : > { %v972_v56 = vmul.f32 %v915_v36, %v1744_v16  ;;  %v1058_v16 = vld [vmem:[%s2304_s4 + $0x38] sm:$0xff] }
 0x35c   : > { %1089 = vmatpush.msrb.mxu3 %v1058_v16 }
 0x35d   : > { %v1002_v37 = vsel %vm337_vm0, %v972_v56, 0.0 }
 0x35e   : > { %1090 = vmatpush.msrb.mxu3 %v1057_v15 }
 0x362   : > { %v925_v39 = vpop.permute.xlu2 %924  ;;  %v940_v57 = vpop.permute.xlu1 %939 }
 0x363   : > { %v890_v43 = vpop.permute.xlu0 %889  ;;  %v974_v63 = vmul.f32 %v925_v39, %v1774_v22  ;;  %v977_v21 = vmul.f32 %v940_v57, %v1747_v17  ;;  %v1056_v17 = vld [vmem:[%s2304_s4 + $0x28] sm:$0xff] }
 0x364   : > { %v967_v52 = vmul.f32 %v890_v43, %v1729_v13  ;;  %v1101_v13 = vld [vmem:[%s2304_s4 + $0x48] sm:$0xff]  ;;  %1091 = vmatpush.msrb.mxu3 %v1056_v17  ;;  %v1136_v17 = vld [vmem:[%s2304_s4 + $0x90] sm:$0xff] }
 0x365   : > { %1122 = vmatpush.msrb.mxu0 %v1101_v13  ;;  %v1011_v2 = vsel %vm337_vm0, %v974_v63, 0.0  ;;  %v1028_v1 = vsel %vm337_vm0, %v977_v21, 0.0  ;;  %v1139_v57 = vld [vmem:[%s2304_s4 + $0xa8] sm:$0xff] }
 0x366   : > { %1092 = vmatpush.msrb.mxu3 %v1055_v7 }
 0x36a   : > { %v935_v3 = vpop.permute.xlu2 %934 }
 0x36b   : > { %v900_v45 = vpop.permute.xlu0 %899  ;;  %v976_v42 = vmul.f32 %v935_v3, %v1732_v14  ;;  %v983_v14 = vsel %vm337_vm0, %v967_v52, 0.0 }
 0x36c   : > { %v969_v49 = vmul.f32 %v900_v45, %v1756_v18  ;;  %v985_v9 = vadd.f32 %v984_v61, %v983_v14 }
 0x36d   : > { %v1020_v10 = vsel %vm337_vm0, %v976_v42, 0.0 }
 0x36e   : > { %v992_v18 = vsel %vm337_vm0, %v969_v49, 0.0  ;;  %v986_v5 = vrot.slane %v985_v9, 4 }
 0x370   : > { %v987_v3 = vadd.f32 %v986_v5, %v985_v9  ;;  %v1135_v9 = vld [vmem:[%s2304_s4 + $0x88] sm:$0xff] }
 0x372   : > { %v950_v6 = vpop.permute.xlu2 %949 }
 0x373   : > { %v910_v11 = vpop.permute.xlu0 %909  ;;  %v979_v51 = vmul.f32 %v950_v6, %v1777_v23 }
 0x374   : > { %v971_v60 = vmul.f32 %v910_v11, %v1786_v24 }
 0x375   : > { %v1037_v23 = vsel %vm337_vm0, %v979_v51, 0.0 }
 0x376   : > { %v1001_v24 = vsel %vm337_vm0, %v971_v60, 0.0  ;;  %v1140_v60 = vld [vmem:[%s2304_s4 + $0xb0] sm:$0xff] }
 0x377   : > { %v1003_v8 = vadd.f32 %v1002_v37, %v1001_v24  ;;  %v1138_v24 = vld [vmem:[%s2304_s4 + $0xa0] sm:$0xff] }
 0x379   : > { %v1004_v29 = vrot.slane %v1003_v8, 4 }
 0x37a   : > { %v960_v52 = vpop.permute.xlu2 %959 }
 0x37b   : > { %v920_v0 = vpop.permute.xlu0 %919  ;;  %v1005_v39 = vadd.f32 %v1004_v29, %v1003_v8 }
 0x37c   : > { %v973_v38 = vmul.f32 %v920_v0, %v1759_v19  ;;  %v993_v19 = vsel %vm337_vm0, %v970_v48, 0.0 }
 0x37d   : > { %v994_v54 = vadd.f32 %v993_v19, %v992_v18  ;;  %v1006_v56 = vrot.slane %v1005_v39, 2  ;;  %v981_v18 = vmul.f32 %v960_v52, %v1801_v27  ;;  %v1131_v52 = vld [vmem:[%s2304_s4 + $0x68] sm:$0xff] }
 0x37e   : > { %v1010_v22 = vsel %vm337_vm0, %v973_v38, 0.0 }
 0x37f   : > { %v1012_v35 = vadd.f32 %v1011_v2, %v1010_v22  ;;  %v995_v40 = vrot.slane %v994_v54, 4  ;;  %v1007_v21 = vadd.f32 %v1006_v56, %v1005_v39  ;;  %v1137_v22 = vld [vmem:[%s2304_s4 + $0x98] sm:$0xff] }
 0x380   : > { %v1183_v56 = vld [vmem:[%s2304_s4 + $0x158] sm:$0xff] }
 0x381   : > { %v1013_v4 = vrot.slane %v1012_v35, 4  ;;  %v996_v45 = vadd.f32 %v995_v40, %v994_v54  ;;  %v1046_v54 = vsel %vm337_vm0, %v981_v18, 0.0  ;;  %v1008_v8 = vrot.slane %v1007_v21, 1  ;;  %1185 = vmatpush.msra.mxu3 %v1183_v56  ;;  %v1178_v18 = vld [vmem:[%s2304_s4 + $0x130] sm:$0xff] }
 0x383   : > { %v930_v50 = vpop.permute.xlu0 %929  ;;  %v997_v48 = vrot.slane %v996_v45, 2 }
 0x384   : > { %v975_v58 = vmul.f32 %v930_v50, %v1789_v25  ;;  %v1100_v25 = vld [vmem:[%s2304_s4 + $0x40] sm:$0xff]  ;;  %v1014_v50 = vadd.f32 %v1013_v4, %v1012_v35 }
 0x385   : > { %1123 = vmatpush.msrb.mxu0 %v1100_v25  ;;  %v998_v13 = vadd.f32 %v997_v48, %v996_v45  ;;  %v1132_v48 = vld [vmem:[%s2304_s4 + $0x70] sm:$0xff] }
 0x386   : > { %v1019_v34 = vsel %vm337_vm0, %v975_v58, 0.0  ;;  %1388 = vmatmul.msk.f32.vlgmr.msrb.gmra.mxu0 %vm337_vm0, %v1099_v31  ;;  %v988_v58 = vrot.slane %v987_v3, 2  ;;  %v1015_v59 = vrot.slane %v1014_v50, 2 }
 0x387   : > { %v1021_v47 = vadd.f32 %v1020_v10, %v1019_v34  ;;  %v999_v61 = vrot.slane %v998_v13, 1 }
 0x388   : > { %v989_v25 = vadd.f32 %v988_v58, %v987_v3  ;;  %v1016_v37 = vadd.f32 %v1015_v59, %v1014_v50  ;;  %v1133_v50 = vld [vmem:[%s2304_s4 + $0x78] sm:$0xff]  ;;  %v1181_v58 = vld [vmem:[%s2304_s4 + $0x148] sm:$0xff]  ;;  %v1180_v59 = vld [vmem:[%s2304_s4 + $0x140] sm:$0xff] }
 0x389   : > { %v1022_v43 = vrot.slane %v1021_v47, 4 }
 0x38a   : > { %v990_v10 = vrot.slane %v989_v25, 1  ;;  %v1017_v6 = vrot.slane %v1016_v37, 1 }
 0x38b   : > { %v945_v53 = vpop.permute.xlu0 %944  ;;  %v1023_v12 = vadd.f32 %v1022_v43, %v1021_v47  ;;  %v1000_v47 = vadd.f32 %v999_v61, %v998_v13  ;;  %v1175_v13 = vld [vmem:[%s2304_s4 + $0x118] sm:$0xff]  ;;  %v1170_v61 = vld [vmem:[%s2304_s4 + $0xf0] sm:$0xff] }
 0x38c   : > { %v978_v32 = vmul.f32 %v945_v53, %v1762_v20  ;;  %v1145_v20 = vld [vmem:[%s2304_s4 + $0xd8] sm:$0xff]  ;;  %v991_v40 = vadd.f32 %v990_v10, %v989_v25 }
 0x38d   : > { %1147 = vmatpush.msra.mxu1 %v1145_v20  ;;  %v1024_v42 = vrot.slane %v1023_v12, 2  ;;  %v1009_v20 = vadd.f32 %v1008_v8, %v1007_v21  ;;  %v1171_v25 = vld [vmem:[%s2304_s4 + $0xf8] sm:$0xff] }
 0x38e   : > { %v1029_v55 = vsel %vm337_vm0, %v978_v32, 0.0  ;;  %v1068_v5 = vsel %vm670_vm2, %v1000_v47, %v991_v40 }
 0x38f   : > { %v1030_v44 = vadd.f32 %v1029_v55, %v1028_v1  ;;  %1148 = vmatpush.msra.mxu1 %v1144_v46  ;;  %v1025_v34 = vadd.f32 %v1024_v42, %v1023_v12  ;;  %v1134_v1 = vld [vmem:[%s2304_s4 + $0x80] sm:$0xff]  ;;  %v1069_v43 = vsel %vm672_vm3, %v1009_v20, %v1068_v5  ;;  %v1177_v42 = vld [vmem:[%s2304_s4 + $0x128] sm:$0xff] }
 0x391   : > { %v1031_v36 = vrot.slane %v1030_v44, 4  ;;  %1149 = vmatpush.msra.mxu1 %v1143_v62  ;;  %v1026_v7 = vrot.slane %v1025_v34, 1 }
 0x393   : > { %v955_v11 = vpop.permute.xlu0 %954  ;;  %1150 = vmatpush.msra.mxu1 %v1142_v33  ;;  %v1032_v38 = vadd.f32 %v1031_v36, %v1030_v44  ;;  %v1018_v44 = vadd.f32 %v1017_v6, %v1016_v37  ;;  %v1027_v62 = vadd.f32 %v1026_v7, %v1025_v34 }
 0x394   : > { %v980_v0 = vmul.f32 %v955_v11, %v1792_v26 }
 0x395   : > { %1151 = vmatpush.msra.mxu1 %v1141_v41  ;;  %v1033_v16 = vrot.slane %v1032_v38, 2  ;;  %v1070_v36 = vsel %vm674_vm4, %v1018_v44, %v1069_v43 }
 0x396   : > { %v1038_v49 = vsel %vm337_vm0, %v980_v0, 0.0  ;;  %v1071_v11 = vsel %vm676_vm5, %v1027_v62, %v1070_v36 }
 0x397   : > { %v1039_v26 = vadd.f32 %v1038_v49, %v1037_v23  ;;  %1152 = vmatpush.msra.mxu1 %v1140_v60  ;;  %v1034_v2 = vadd.f32 %v1033_v16, %v1032_v38  ;;  %v2180_v23 = vld [vmem:[%s2305_s5] sm:$0xff]  ;;  %v1174_v16 = vld [vmem:[%s2304_s4 + $0x110] sm:$0xff] }
 0x398   : > { %v1104_v12 = vperm.slane %v2180_v23, 4  ;;  %v1059_v21 = vperm.slane %v2180_v23, 3 }
 0x399   : > { %v1040_v63 = vrot.slane %v1039_v26, 4  ;;  %1153 = vmatpush.msra.mxu1 %v1139_v57  ;;  %v1035_v55 = vrot.slane %v1034_v2, 1  ;;  %v1182_v57 = vld [vmem:[%s2304_s4 + $0x150] sm:$0xff] }
 0x39a   : > { %1186 = vmatpush.msra.mxu3 %v1182_v57 }
 0x39b   : > { %v1041_v15 = vadd.f32 %v1040_v63, %v1039_v26  ;;  %v965_v19 = vpop.permute.xlu0 %964  ;;  %1154 = vmatpush.msra.mxu1 %v1138_v24  ;;  %v1036_v4 = vadd.f32 %v1035_v55, %v1034_v2  ;;  %v1130_v26 = vld [vmem:[%s2304_s4 + $0x60] sm:$0xff]  ;;  %v1179_v63 = vld [vmem:[%s2304_s4 + $0x138] sm:$0xff] }
 0x39c   : > { %v982_v14 = vmul.f32 %v965_v19, %v1806_v28  ;;  %1187 = vmatpush.msra.mxu3 %v1181_v58  ;;  %v1176_v24 = vld [vmem:[%s2304_s4 + $0x120] sm:$0xff]  ;;  %v1173_v19 = vld [vmem:[%s2304_s4 + $0x108] sm:$0xff] }
 0x39d   : > { %v1042_v27 = vrot.slane %v1041_v15, 2  ;;  %1155 = vmatpush.msra.mxu1 %v1137_v22  ;;  %v1072_v0 = vsel %vm678_vm6, %v1036_v4, %v1071_v11  ;;  %v1168_v2 = vld [vmem:[%s2304_s4 + $0xe0] sm:$0xff] }
 0x39e   : > { %v1047_v53 = vsel %vm337_vm0, %v982_v14, 0.0  ;;  %1188 = vmatpush.msra.mxu3 %v1180_v59  ;;  %v1172_v14 = vld [vmem:[%s2304_s4 + $0x100] sm:$0xff] }
 0x39f   : > { %v1048_v28 = vadd.f32 %v1047_v53, %v1046_v54  ;;  %v1043_v32 = vadd.f32 %v1042_v27, %v1041_v15  ;;  %1156 = vmatpush.msra.mxu1 %v1136_v17  ;;  %v384_v15 = vperm.slane %v2180_v23, 2 }
 0x3a0   : > { %1189 = vmatpush.msra.mxu3 %v1179_v63 }
 0x3a1   : > { %v1049_v35 = vrot.slane %v1048_v28, 4  ;;  %1157 = vmatpush.msra.mxu1 %v1135_v9  ;;  %v1044_v46 = vrot.slane %v1043_v32, 1  ;;  %v385_v22 = vadd.f32 %v384_v15, %v1813_v30  ;;  %v1169_v30 = vld [vmem:[%s2304_s4 + $0xe8] sm:$0xff] }
 0x3a2   : > { %1190 = vmatpush.msra.mxu3 %v1178_v18 }
 0x3a3   : > { %v1050_v31 = vadd.f32 %v1049_v35, %v1048_v28  ;;  %1158 = vmatpush.msra.mxu1 %v1134_v1  ;;  %v1045_v33 = vadd.f32 %v1044_v46, %v1043_v32  ;;  %v386_v54 = vmax.f32 %v385_v22, 0.0  ;;  %v1146_v28 = vperm.slane %v2180_v23, 5 }
 0x3a4   : > { %1191 = vmatpush.msra.mxu3 %v1177_v42 }
 0x3a5   : > { %v1051_v29 = vrot.slane %v1050_v31, 2  ;;  %v1073_v41 = vsel %vm680_vm7, %v1045_v33, %v1072_v0  ;;  %1159 = vmatpush.msra.mxu1 %v1133_v50 }
 0x3a6   : > { %1192 = vmatpush.msra.mxu3 %v1176_v24 }
 0x3a7   : > { %v1052_v51 = vadd.f32 %v1051_v29, %v1050_v31  ;;  %1160 = vmatpush.msra.mxu1 %v1132_v48 }
 0x3a8   : > { %1193 = vmatpush.msra.mxu3 %v1175_v13 }
 0x3a9   : > { %v1053_v45 = vrot.slane %v1052_v51, 1  ;;  %1161 = vmatpush.msra.mxu1 %v1131_v52 }
 0x3aa   : > { %1194 = vmatpush.msra.mxu3 %v1174_v16 }
 0x3ab   : > { %v1054_v39 = vadd.f32 %v1053_v45, %v1052_v51  ;;  %1162 = vmatpush.msra.mxu1 %v1130_v26 }
 0x3ac   : > { %1195 = vmatpush.msra.mxu3 %v1173_v19 }
 0x3ad   : > { %v1074_v3 = vsel %vm682_vm8, %v1054_v39, %v1073_v41 }
 0x3ae   : > { %1387 = vmatmul.msk.f32.vlgmr.msrb.gmra.mxu3 %vm337_vm0, %v1074_v3 }
 0x3af   : > { %1196 = vmatpush.msra.mxu3 %v1172_v14 }
 0x3b1   : > { %1197 = vmatpush.msra.mxu3 %v1171_v25 }
 0x3b3   : > { %1198 = vmatpush.msra.mxu3 %v1170_v61 }
 0x3b5   : > { %1199 = vmatpush.msra.mxu3 %v1169_v30 }
 0x3b7   : > { %1200 = vmatpush.msra.mxu3 %v1168_v2 }
 0x403   : > { %v1125_v49 = vpop.f32.mrf.mxu0 }
 0x404   : > { %v1126_v60 = vadd.f32 %v1125_v49, %v1104_v12 }
 0x406   : > { %v1128_v38 = vmax.f32 %v1126_v60, 0.0 }
 0x408   : > { %1206 = vst [vmem:[%s2200_s29] sm:$0xff] %v1128_v38 }
 0x431   : > { %v1094_v37 = vpop.f32.mrf.mxu3 }
 0x432   : > { %v1095_v27 = vadd.f32 %v1094_v37, %v1059_v21 }
 0x434   : > { %v1097_v34 = vmax.f32 %v1095_v27, 0.0 }
 0x436   : > { %v1098_v53 = vmul.f32 %v1097_v34, %v386_v54 }
 0x438   : > { %v1129_v17 = vmul.f32 %v1128_v38, %v1098_v53 }
 0x43a   : > { %1163 = vmatmul.f32.vlgmr.msra.gmra.mxu1 %v1129_v17 }
 0x4b7   : > { %v1164_v8 = vpop.f32.mrf.mxu1 }
 0x4b8   : > { %v1165_v32 = vadd.f32 %v1164_v8, %v1146_v28 }
 0x4ba   : > { %v1167_v9 = vmax.f32 %v1165_v32, 0.0 }
 0x4bc   : > { %1201 = vmatmul.f32.vlgmr.msra.gmra.mxu3 %v1167_v9 }
 0x4bd   : > { %1514 = shalt.err (!%p1511_p4)
}
 0x4be   : > { %1405 = dma.vmem_to_hbm [thread:$0]  (%p1662_p5), %s1240_s14, 128, %s1242_s15, %s1213_s16   ;;  %v1184_v10 = vperm.slane %v2180_v23, 6 }
 0x4bf   : > { %s1223_s8 = scalar_lea.hbm %s2306_s6, %s1683_s19  ;;  %s2313_s9 = sshll.u32 %s2171_s13, 3 }
 0x4c0   : > { %s304_s0 = scalar_lea.vmem [#allocation2], %s2313_s9  ;;  %s1227_s17 = sshll.u32 %s1223_s8, 4  ;;  %s1228_s17 = int_to_ptr.hbm [resolvable:$true] %s1227_s17 }
 0x4c1   : > { %s1225_s28 = sshll.u32 %s304_s0, 4  ;;  %s1208_s20 = scalar_lea.sflag [#allocation3], %s2171_s13  ;;  %s1226_s28 = int_to_ptr.vmem [resolvable:$true] %s1225_s28 }
 0x4c2   : > { %s1529_s21 = sshra.s32 %s1228_s17, 4  ;;  %s1535_s16 = scalar_lea.hbm %s2306_s6, 16  ;;  %s1530_s21 = int_to_ptr.hbm [resolvable:$true] %s1529_s21 }
 0x4c3   : > { %s1531_s14 = scalar_lea.hbm %s1530_s21, 8  ;;  %p1536_p10 = scmp.lt.s32.totalorder %s1530_s21, %s2306_s6 }
 0x4c4   : > { %p1532_p7 = scmp.ne.s32.totalorder %s1530_s21, %s1531_s14  ;;  %p1537_p11 = scmp.lt.s32.totalorder %s1535_s16, %s1531_s14 }
 0x4c6   : > { %p1533_p8 = pnand %p1532_p7, %p1662_p5  ;;  %p1538_p12 = por %p1537_p11, %p1536_p10 }
 0x4c8   : > { %p1534_p9 = pneg %p1533_p8 }
 0x4ca   : > { %p1539_p13 = pnand %p1538_p12, %p1534_p9 }
 0x53f   : > { %v1202_v6 = vpop.f32.mrf.mxu3 }
 0x540   : > { %v1203_v35 = vadd.f32 %v1202_v6, %v1184_v10 }
 0x542   : > { %1205 = vst [vmem:[%s304_s0] sm:$0xff] %v1203_v35 }
 0x543   : > { %1542 = shalt.err (!%p1539_p13)
}
 0x544   : > { %1404 = dma.vmem_to_hbm [thread:$0]  (%p1662_p5), %s1226_s28, 128, %s1228_s17, %s1208_s20  }
 0x545 PF: > { %p1415_p0 = scmp.ge.s32.totalorder %s1581_s27, 2  ;;  %s1253_s13 = sand.u32 1, %s1569_s24  }
 0x546   : > { %s1254_s29 = scalar_lea.sflag [#allocation3], %s1253_s13 }
 0x547   : > { %p1409_p1 = pnand %p1415_p0, %p1666_p6 }
 0x549   : > { %p1410_p2 = pneg %p1409_p1 }
 0x54b   : > { %1560 = dma.done.wait (%p1410_p2), %s1254_s29, 128  }
 0x54c   : > { %1562 = vsyncadd (%p1410_p2), %s1254_s29, 4294967168  ;;  %s1264_s23 = scalar_lea.sflag [#allocation5], %s1253_s13 }
 0x54d   : > { %1564 = dma.done.wait (%p1410_p2), %s1264_s23, 128  }
 0x54e   : > { %1566 = vsyncadd (%p1410_p2), %s1264_s23, 4294967168  ;;  %p21_p5 = scmp.ge.s32.totalorder %s1649_s30, 4   ;;  %s2314_s24 = smov %s1573_s25 }
 0x54f   : > { %s2315_s25 = smov %s1577_s26  ;;  %s2316_s26 = smov %s1660_s10 }
 0x550   : > { %s2317_s27 = smov %s1649_s30  ;;  %23 = sbr.rel (!%p21_p5) target bundleno = 7 (0x7), region = 102 }
 0x555   :  { %1270 = vsyncpa [#allocation3], 1 }
 0x556   :  { %1272 = vsyncpa [#allocation3 + $0x1], 1 }
 0x557   :  { %1273 = vsyncpa [#allocation5], 1 }
 0x558   :  { %1275 = vsyncpa [#allocation5 + $0x1], 1 }

</bundles_post_ra>
